<compile_context>
chip_gen: v5e
topology: v5e:2x2
jax: 0.10.0
libtpu: 0.0.40
codegen_flags: <defaults>
</compile_context>

<pallas_src>
import functools

import jax
import jax.numpy as jnp
from jax.experimental import pallas as pl
from jax.experimental.pallas import tpu as pltpu

D_IN = 3         # coordinate dimension
D_HID = 32       # hidden width of each sub-net
D_CAT = 3 * D_HID   # fused hidden width (96)
D_OUT = 1        # scalar field output per head
TM_MAX = 4096    # max batch (lane) tile
W0_FIRST = 30.0  # Siren first-layer frequency (folded into packed params)


def mixnet_kernel(x_ref, w1_ref, b1_ref, w2_ref, b2_ref, w3_ref, b3_ref, out_ref):
    # x_ref: (3, TM) f32  — batch on the lane axis.
    xT = x_ref[...]

    # ---- fused layer 1 (f32: w0=30 folded into the Siren rows; keep sin args exact) ----
    pre1 = jnp.dot(w1_ref[...], xT, preferred_element_type=jnp.float32) + b1_ref[...]
    row = jax.lax.broadcasted_iota(jnp.int32, pre1.shape, 0)
    is_sin = (row >= D_HID) & (row < 2 * D_HID)          # Siren rows 32:64
    h1 = jnp.where(is_sin, jnp.sin(pre1), jnp.maximum(pre1, 0.0))

    # ---- fused layer 2 (block-diagonal, bf16 MXU inputs, f32 accumulate) ----
    pre2 = jnp.dot(w2_ref[...], h1.astype(jnp.bfloat16),
                   preferred_element_type=jnp.float32) + b2_ref[...]
    h2 = jnp.where(is_sin, jnp.sin(pre2), jnp.maximum(pre2, 0.0))

    # ---- fused layer 3: rows = [y1, y2, p_logit] ----
    head = jnp.dot(w3_ref[...], h2.astype(jnp.bfloat16),
                   preferred_element_type=jnp.float32) + b3_ref[...]   # (3, TM)

    y1 = head[0:1, :]
    y2 = head[1:2, :]
    p = jax.nn.sigmoid(head[2:3, :])
    mix = p * y1 + (1.0 - p) * y2

    # Single packed, lane-dense output: rows = [base, fine, inter, mix].
    out_ref[...] = jnp.concatenate([y1, y2, p, mix], axis=0)           # (4, TM)


def make_params(key):
    """Deterministic per-sub-net parameter init (weights (in, out), biases (1, out))."""
    def linear(key, fan_in, fan_out, scale):
        kw, kb = jax.random.split(key)
        w = jax.random.uniform(kw, (fan_in, fan_out), jnp.float32, -scale, scale)
        b = jax.random.uniform(kb, (1, fan_out), jnp.float32, -scale, scale)
        return w, b

    keys = jax.random.split(key, 9)
    params = []
    # base MLP
    for i, (fi, fo) in enumerate([(D_IN, D_HID), (D_HID, D_HID), (D_HID, D_OUT)]):
        params += list(linear(keys[i], fi, fo, (6.0 / fi) ** 0.5))
    # fine Siren: first layer U(-1/in, 1/in); rest U(-sqrt(6/in)/w0, +)
    params += list(linear(keys[3], D_IN, D_HID, 1.0 / D_IN))
    params += list(linear(keys[4], D_HID, D_HID, (6.0 / D_HID) ** 0.5 / W0_FIRST))
    params += list(linear(keys[5], D_HID, D_OUT, (6.0 / D_HID) ** 0.5 / W0_FIRST))
    # inter PSNet
    for i, (fi, fo) in enumerate([(D_IN, D_HID), (D_HID, D_HID), (D_HID, D_OUT)]):
        params += list(linear(keys[6 + i], fi, fo, (6.0 / fi) ** 0.5))
    return tuple(params)


def pack_params(params):
    """Fuse the three sub-nets into 3 (transposed) layers; fold w0; bf16 for big matmuls."""
    (bw1, bb1, bw2, bb2, bw3, bb3,
     sw1, sb1, sw2, sb2, sw3, sb3,
     pw1, pb1, pw2, pb2, pw3, pb3) = params
    H = D_HID
    # layer 1: concat along the output axis (Siren gets w0 folded in)
    w1 = jnp.concatenate([bw1, W0_FIRST * sw1, pw1], axis=1)          # (3, 96)
    b1 = jnp.concatenate([bb1, W0_FIRST * sb1, pb1], axis=1)          # (1, 96)
    # layer 2: block-diagonal
    w2 = jnp.zeros((D_CAT, D_CAT), jnp.float32)
    w2 = (w2.at[0:H, 0:H].set(bw2)
             .at[H:2 * H, H:2 * H].set(sw2)
             .at[2 * H:3 * H, 2 * H:3 * H].set(pw2))                  # (96, 96)
    b2 = jnp.concatenate([bb2, sb2, pb2], axis=1)                     # (1, 96)
    # layer 3: block-diagonal into the three heads [y1, y2, p_logit]
    w3 = jnp.zeros((D_CAT, 3), jnp.float32)
    w3 = (w3.at[0:H, 0:1].set(bw3)
             .at[H:2 * H, 1:2].set(sw3)
             .at[2 * H:3 * H, 2:3].set(pw3))                          # (96, 3)
    b3 = jnp.concatenate([bb3, sb3, pb3], axis=1)                     # (1, 3)
    # Transpose everything: features on sublanes, batch on lanes inside the kernel.
    return (w1.T,                          # (96, 3)  f32
            b1.T,                          # (96, 1)  f32
            w2.T.astype(jnp.bfloat16),     # (96, 96) bf16
            b2.T,                          # (96, 1)  f32
            w3.T.astype(jnp.bfloat16),     # (3, 96)  bf16
            b3.T)                          # (3, 1)   f32


@jax.jit
def mixnet_forward(x, packed):
    N = x.shape[0]
    TM = N if N <= TM_MAX else TM_MAX
    assert N % TM == 0, "N must be a multiple of the row tile"
    assert TM == N or TM % 128 == 0, "row tile must be lane-aligned"

    xT = x.T  # (D_IN, N): lane-dense input layout for the kernel

    param_specs = [pl.BlockSpec(p.shape, lambda i: (0, 0)) for p in packed]

    out = pl.pallas_call(
        mixnet_kernel,
        out_shape=jax.ShapeDtypeStruct((4, N), jnp.float32),
        grid_spec=pltpu.PrefetchScalarGridSpec(
            num_scalar_prefetch=0,
            grid=(N // TM,),
            in_specs=[pl.BlockSpec((D_IN, TM), lambda i: (0, i))] + param_specs,
            out_specs=pl.BlockSpec((4, TM), lambda i: (0, i)),
        ),
        compiler_params=pltpu.CompilerParams(
            dimension_semantics=("parallel",)),
    )(xT, *packed)

    return {"base": out[0][:, None],
            "fine": out[1][:, None],
            "inter": out[2][:, None],
            "mix": out[3][:, None]}


def mixnet_reference(x, params):
    (bw1, bb1, bw2, bb2, bw3, bb3,
     sw1, sb1, sw2, sb2, sw3, sb3,
     pw1, pb1, pw2, pb2, pw3, pb3) = params
    h = jnp.maximum(x @ bw1 + bb1, 0.0)
    h = jnp.maximum(h @ bw2 + bb2, 0.0)
    y1 = h @ bw3 + bb3
    h = jnp.sin(W0_FIRST * (x @ sw1 + sb1))
    h = jnp.sin(h @ sw2 + sb2)
    y2 = h @ sw3 + sb3
    h = jnp.maximum(x @ pw1 + pb1, 0.0)
    h = jnp.maximum(h @ pw2 + pb2, 0.0)
    p = jax.nn.sigmoid(h @ pw3 + pb3)
    return {"base": y1, "fine": y2, "inter": p, "mix": p * y1 + (1 - p) * y2}


if __name__ == "__main__":
    key = jax.random.PRNGKey(0)
    kx, kp = jax.random.split(key)
    N = 256
    x = jax.random.uniform(kx, (N, D_IN), jnp.float32, -1.0, 1.0)
    params = make_params(kp)
    packed = pack_params(params)

    out = mixnet_forward(x, packed)
    jax.block_until_ready(out)

    ref = mixnet_reference(x, params)
    for name in ("base", "fine", "inter", "mix"):
        diff = float(jnp.max(jnp.abs(out[name] - ref[name])))
        scale = float(jnp.max(jnp.abs(ref[name])))
        # bf16 matmul inputs (f32 accumulate) -> loosened tolerance vs f32 reference.
        tol = 1e-2 + 5e-2 * scale
        assert diff <= tol, f"{name} mismatch: {diff} (tol {tol})"

    print("KERNEL_OK")
</pallas_src>

<mosaic_0001>
module attributes {stable_mosaic.version = 11 : i64} {
  func.func @mixnet_kernel(%arg0: i32, %arg1: memref<3x256xf32, #tpu.memory_space<vmem>>, %arg2: memref<96x3xf32, #tpu.memory_space<vmem>>, %arg3: memref<96x1xf32, #tpu.memory_space<vmem>>, %arg4: memref<96x96xbf16, #tpu.memory_space<vmem>>, %arg5: memref<96x1xf32, #tpu.memory_space<vmem>>, %arg6: memref<3x96xbf16, #tpu.memory_space<vmem>>, %arg7: memref<3x1xf32, #tpu.memory_space<vmem>>, %arg8: memref<4x256xf32, #tpu.memory_space<vmem>>) attributes {dimension_semantics = [#tpu.dimension_semantics<parallel>], iteration_bounds = array<i64: 1>, scalar_prefetch = 0 : i64, scratch_operands = 0 : i64, tpu.core_type = #tpu.core_type<tc>, window_params = [{transform_indices = @transform_0, window_bounds = array<i64: 3, 256>}, {pipeline_mode = #tpu.pipeline_mode<synchronous>, transform_indices = @transform_1, window_bounds = array<i64: 96, 3>}, {pipeline_mode = #tpu.pipeline_mode<synchronous>, transform_indices = @transform_2, window_bounds = array<i64: 96, 1>}, {pipeline_mode = #tpu.pipeline_mode<synchronous>, transform_indices = @transform_3, window_bounds = array<i64: 96, 96>}, {pipeline_mode = #tpu.pipeline_mode<synchronous>, transform_indices = @transform_4, window_bounds = array<i64: 96, 1>}, {pipeline_mode = #tpu.pipeline_mode<synchronous>, transform_indices = @transform_5, window_bounds = array<i64: 3, 96>}, {pipeline_mode = #tpu.pipeline_mode<synchronous>, transform_indices = @transform_6, window_bounds = array<i64: 3, 1>}, {transform_indices = @transform_7, window_bounds = array<i64: 4, 256>}]} {
    %c0 = arith.constant 0 : index
    %c0_0 = arith.constant 0 : index
    %0 = vector.load %arg1[%c0, %c0_0] : memref<3x256xf32, #tpu.memory_space<vmem>>, vector<3x256xf32>
    %c0_1 = arith.constant 0 : index
    %c0_2 = arith.constant 0 : index
    %1 = vector.load %arg2[%c0_1, %c0_2] : memref<96x3xf32, #tpu.memory_space<vmem>>, vector<96x3xf32>
    %cst = arith.constant dense<0.000000e+00> : vector<96x256xf32>
    %2 = tpu.matmul %1, %0, %cst {dimension_numbers = #tpu.dot_dimension_numbers<[1], [0], [0], [1], [0, 0, 1, 1], [], []>} : vector<96x3xf32>, vector<3x256xf32>, vector<96x256xf32> -> vector<96x256xf32>
    %c0_3 = arith.constant 0 : index
    %c0_4 = arith.constant 0 : index
    %3 = vector.load %arg3[%c0_3, %c0_4] : memref<96x1xf32, #tpu.memory_space<vmem>>, vector<96x1xf32>
    %4 = vector.broadcast %3 : vector<96x1xf32> to vector<96x256xf32>
    %5 = arith.addf %2, %4 : vector<96x256xf32>
    %6 = tpu.iota {dimensions = array<i32: 0>} : vector<96x256xi32>
    %c32_i32 = arith.constant 32 : i32
    %7 = vector.broadcast %c32_i32 : i32 to vector<96x256xi32>
    %8 = arith.cmpi sge, %6, %7 : vector<96x256xi32>
    %c64_i32 = arith.constant 64 : i32
    %9 = vector.broadcast %c64_i32 : i32 to vector<96x256xi32>
    %10 = arith.cmpi slt, %6, %9 : vector<96x256xi32>
    %11 = arith.andi %8, %10 : vector<96x256xi1>
    %12 = math.sin %5 : vector<96x256xf32>
    %cst_5 = arith.constant 0.000000e+00 : f32
    %13 = vector.broadcast %cst_5 : f32 to vector<96x256xf32>
    %14 = arith.maximumf %5, %13 : vector<96x256xf32>
    %15 = arith.select %11, %12, %14 : vector<96x256xi1>, vector<96x256xf32>
    %c0_6 = arith.constant 0 : index
    %c0_7 = arith.constant 0 : index
    %16 = vector.load %arg4[%c0_6, %c0_7] : memref<96x96xbf16, #tpu.memory_space<vmem>>, vector<96x96xbf16>
    %17 = arith.truncf %15 : vector<96x256xf32> to vector<96x256xbf16>
    %cst_8 = arith.constant dense<0.000000e+00> : vector<96x256xf32>
    %18 = tpu.matmul %16, %17, %cst_8 {dimension_numbers = #tpu.dot_dimension_numbers<[1], [0], [0], [1], [0, 0, 1, 1], [], []>} : vector<96x96xbf16>, vector<96x256xbf16>, vector<96x256xf32> -> vector<96x256xf32>
    %c0_9 = arith.constant 0 : index
    %c0_10 = arith.constant 0 : index
    %19 = vector.load %arg5[%c0_9, %c0_10] : memref<96x1xf32, #tpu.memory_space<vmem>>, vector<96x1xf32>
    %20 = vector.broadcast %19 : vector<96x1xf32> to vector<96x256xf32>
    %21 = arith.addf %18, %20 : vector<96x256xf32>
    %22 = math.sin %21 : vector<96x256xf32>
    %cst_11 = arith.constant 0.000000e+00 : f32
    %23 = vector.broadcast %cst_11 : f32 to vector<96x256xf32>
    %24 = arith.maximumf %21, %23 : vector<96x256xf32>
    %25 = arith.select %11, %22, %24 : vector<96x256xi1>, vector<96x256xf32>
    %c0_12 = arith.constant 0 : index
    %c0_13 = arith.constant 0 : index
    %26 = vector.load %arg6[%c0_12, %c0_13] : memref<3x96xbf16, #tpu.memory_space<vmem>>, vector<3x96xbf16>
    %27 = arith.truncf %25 : vector<96x256xf32> to vector<96x256xbf16>
    %cst_14 = arith.constant dense<0.000000e+00> : vector<3x256xf32>
    %28 = tpu.matmul %26, %27, %cst_14 {dimension_numbers = #tpu.dot_dimension_numbers<[1], [0], [0], [1], [0, 0, 1, 1], [], []>} : vector<3x96xbf16>, vector<96x256xbf16>, vector<3x256xf32> -> vector<3x256xf32>
    %c0_15 = arith.constant 0 : index
    %c0_16 = arith.constant 0 : index
    %29 = vector.load %arg7[%c0_15, %c0_16] : memref<3x1xf32, #tpu.memory_space<vmem>>, vector<3x1xf32>
    %30 = vector.broadcast %29 : vector<3x1xf32> to vector<3x256xf32>
    %31 = arith.addf %28, %30 : vector<3x256xf32>
    %32 = vector.extract_strided_slice %31 {offsets = [0, 0], sizes = [1, 256], strides = [1, 1]} : vector<3x256xf32> to vector<1x256xf32>
    %33 = vector.extract_strided_slice %31 {offsets = [1, 0], sizes = [1, 256], strides = [1, 1]} : vector<3x256xf32> to vector<1x256xf32>
    %34 = vector.extract_strided_slice %31 {offsets = [2, 0], sizes = [1, 256], strides = [1, 1]} : vector<3x256xf32> to vector<1x256xf32>
    %35 = arith.negf %34 : vector<1x256xf32>
    %36 = math.exp %35 : vector<1x256xf32>
    %cst_17 = arith.constant 1.000000e+00 : f32
    %37 = vector.broadcast %cst_17 : f32 to vector<1x256xf32>
    %38 = arith.addf %37, %36 : vector<1x256xf32>
    %39 = arith.divf %37, %38 : vector<1x256xf32>
    %40 = arith.mulf %39, %32 : vector<1x256xf32>
    %cst_18 = arith.constant 1.000000e+00 : f32
    %41 = vector.broadcast %cst_18 : f32 to vector<1x256xf32>
    %42 = arith.subf %41, %39 : vector<1x256xf32>
    %43 = arith.mulf %42, %33 : vector<1x256xf32>
    %44 = arith.addf %40, %43 : vector<1x256xf32>
    %45 = tpu.concatenate %32, %33, %39, %44 in 0 : vector<1x256xf32>, vector<1x256xf32>, vector<1x256xf32>, vector<1x256xf32> -> vector<4x256xf32>
    %c0_19 = arith.constant 0 : index
    %c0_20 = arith.constant 0 : index
    %46 = vector.load %arg8[%c0_19, %c0_20] : memref<4x256xf32, #tpu.memory_space<vmem>>, vector<4x256xf32>
    tpu.vector_store %arg8[%c0_19, %c0_20], %45 {strides = array<i32>} : memref<4x256xf32, #tpu.memory_space<vmem>>, vector<4x256xf32>,
    return
  }
  func.func @transform_0(%arg0: i32) -> (i32, i32) {
    %c0_i32 = arith.constant 0 : i32
    %c0_i32_0 = arith.constant 0 : i32
    return %c0_i32, %arg0 : i32, i32
  }
  func.func @transform_1(%arg0: i32) -> (i32, i32) {
    %c0_i32 = arith.constant 0 : i32
    %c0_i32_0 = arith.constant 0 : i32
    %c0_i32_1 = arith.constant 0 : i32
    return %c0_i32, %c0_i32_0 : i32, i32
  }
  func.func @transform_2(%arg0: i32) -> (i32, i32) {
    %c0_i32 = arith.constant 0 : i32
    %c0_i32_0 = arith.constant 0 : i32
    %c0_i32_1 = arith.constant 0 : i32
    return %c0_i32, %c0_i32_0 : i32, i32
  }
  func.func @transform_3(%arg0: i32) -> (i32, i32) {
    %c0_i32 = arith.constant 0 : i32
    %c0_i32_0 = arith.constant 0 : i32
    %c0_i32_1 = arith.constant 0 : i32
    return %c0_i32, %c0_i32_0 : i32, i32
  }
  func.func @transform_4(%arg0: i32) -> (i32, i32) {
    %c0_i32 = arith.constant 0 : i32
    %c0_i32_0 = arith.constant 0 : i32
    %c0_i32_1 = arith.constant 0 : i32
    return %c0_i32, %c0_i32_0 : i32, i32
  }
  func.func @transform_5(%arg0: i32) -> (i32, i32) {
    %c0_i32 = arith.constant 0 : i32
    %c0_i32_0 = arith.constant 0 : i32
    %c0_i32_1 = arith.constant 0 : i32
    return %c0_i32, %c0_i32_0 : i32, i32
  }
  func.func @transform_6(%arg0: i32) -> (i32, i32) {
    %c0_i32 = arith.constant 0 : i32
    %c0_i32_0 = arith.constant 0 : i32
    %c0_i32_1 = arith.constant 0 : i32
    return %c0_i32, %c0_i32_0 : i32, i32
  }
  func.func @transform_7(%arg0: i32) -> (i32, i32) {
    %c0_i32 = arith.constant 0 : i32
    %c0_i32_0 = arith.constant 0 : i32
    return %c0_i32, %arg0 : i32, i32
  }
}

</mosaic_0001>

<bundles_post_ra>
// kernel: mixnet_forward.1
= control target key start
LH: loop header
LB: loop body
LE: loop exit
PB: predicated region body
PF: predicated region fallthrough
CT: control target
= control target key end

     0   :  { %v11416_v0 = vmov 0   ;;  %vm153_vm0 = vcmask 1042432   ;;  %vm116_vm1 = vcmask 23552   ;;  %s11404_s2 = inlined_call_operand.vmem [shape: f32[96,1], index: 2, kind: input, shape index: {}]   ;;  %s11405_s0 = inlined_call_operand.vmem [shape: f32[3,256], index: 0, kind: input, shape index: {}]   ;;  %s11406_s1 = inlined_call_operand.vmem [shape: f32[96,3], index: 1, kind: input, shape index: {}]   ;;  %s11407_s4 = inlined_call_operand.vmem [shape: f32[96,1], index: 4, kind: input, shape index: {}]   ;;  %s11408_s6 = inlined_call_operand.vmem [shape: f32[3,1], index: 6, kind: input, shape index: {}]   ;;  %s11409_s3 = inlined_call_operand.vmem [shape: bf16[96,96], index: 3, kind: input, shape index: {}]   ;;  %s11410_s5 = inlined_call_operand.vmem [shape: bf16[3,96], index: 5, kind: input, shape index: {}]   ;;  %s11411_s7 = inlined_call_operand.vmem [shape: f32[4,256], index: 7, kind: output, shape index: {}]  }
   0x1   :  { %8422 = vset.pattern.permute.xlu1 %v11416_v0  ;;  %v44_v1 = vld [vmem:[%s11404_s2 + $0x20] sm:$0xff]  ;;  %8421 = vset.pattern.permute.xlu0 %v11416_v0  ;;  %v46_v2 = vld [vmem:[%s11404_s2 + $0x30] sm:$0xff]  ;;  %v45_v5 = vld [vmem:[%s11404_s2 + $0x28] sm:$0xff] }
   0x2   :  { %74 = vperm.xlu1 %8422, %v44_v1   ;;  %84 = vperm.xlu0 %8421, %v46_v2   ;;  %v27_v3 = vld [vmem:[%s11405_s0] sm:$0x77]  ;;  %v50_v4 = vld [vmem:[%s11404_s2 + $0x50] sm:$0xff]  ;;  %v47_v6 = vld [vmem:[%s11404_s2 + $0x38] sm:$0xff] }
   0x3   :  { %113 = vst [vmem:[#allocation1] ss:$2 sm:$0xff] %v27_v3  ;;  %8423 = vset.pattern.permute.xlu2 %v11416_v0  ;;  %v28_v7 = vld [vmem:[%s11406_s1] sm:$0xff]  ;;  %v51_v8 = vld [vmem:[%s11404_s2 + $0x58] sm:$0xff]  ;;  %v49_v11 = vld [vmem:[%s11404_s2 + $0x48] sm:$0xff] }
   0x4   :  { %104 = vperm.xlu2 %8423, %v50_v4   ;;  %v48_v12 = vld [vmem:[%s11404_s2 + $0x40] sm:$0xff]  ;;  %v29_v13 = vld [vmem:[%s11406_s1 + $0x8] sm:$0xff]  ;;  %v42_v14 = vld [vmem:[%s11404_s2 + $0x10] sm:$0xff] }
   0x5   :  { %v40_v15 = vld [vmem:[%s11404_s2] sm:$0xff]  ;;  %v43_v16 = vld [vmem:[%s11404_s2 + $0x18] sm:$0xff]  ;;  %v30_v17 = vld [vmem:[%s11406_s1 + $0x10] sm:$0xff] }
   0x6   :  { %v41_v18 = vld [vmem:[%s11404_s2 + $0x8] sm:$0xff]  ;;  %v4111_v19 = vld [vmem:[%s11407_s4 + $0x30] sm:$0xff]  ;;  %v4112_v20 = vld [vmem:[%s11407_s4 + $0x38] sm:$0xff] }
   0x7   :  { %v31_v21 = vld [vmem:[%s11406_s1 + $0x18] sm:$0xff]  ;;  %v4110_v22 = vld [vmem:[%s11407_s4 + $0x28] sm:$0xff]  ;;  %v4115_v23 = vld [vmem:[%s11407_s4 + $0x50] sm:$0xff] }
   0x8   :  { %v32_v24 = vld [vmem:[%s11406_s1 + $0x20] sm:$0xff]  ;;  %v4114_v26 = vld [vmem:[%s11407_s4 + $0x48] sm:$0xff]  ;;  %v4108_v28 = vld [vmem:[%s11407_s4 + $0x18] sm:$0xff] }
   0x9   :  { %v4113_v25 = vld [vmem:[%s11407_s4 + $0x40] sm:$0xff]  ;;  %v33_v27 = vld [vmem:[%s11406_s1 + $0x28] sm:$0xff]  ;;  %v34_v30 = vld [vmem:[%s11406_s1 + $0x30] sm:$0xff] }
   0xa   :  { %79 = vperm.xlu1 %8422, %v45_v5   ;;  %v114_v9 = vld.sshfl [vmem:[#allocation1] sm:$0xff pattern:$0x75316420]  ;;  %v115_v10 = vld.sshfl [vmem:[#allocation1 + $0x8] sm:$0xff pattern:$0x75316420]  ;;  %89 = vperm.xlu0 %8421, %v47_v6  }
   0xb   :  { %8198 = vmatpush.msk.msra.mxu0 %vm153_vm0, %v114_v9  ;;  %8211 = vmatpush.msk.msra.mxu1 %vm153_vm0, %v115_v10  ;;  %v4105_v29 = vld [vmem:[%s11407_s4] sm:$0xff]  ;;  %v35_v32 = vld [vmem:[%s11406_s1 + $0x38] sm:$0xff]  ;;  %v37_v34 = vld [vmem:[%s11406_s1 + $0x48] sm:$0xff] }
   0xc   :  { %8199 = vmatmul.msk.f32.vlgmr.msra.gmra.mxu0 %vm116_vm1, %v28_v7  ;;  %8212 = vmatmul.msk.f32.vlgmr.msra.gmra.mxu1 %vm116_vm1, %v28_v7  ;;  %v8085_v31 = vld [vmem:[%s11408_s6] sm:$0x7]  ;;  %v38_v35 = vld [vmem:[%s11406_s1 + $0x50] sm:$0xff]  ;;  %v39_v36 = vld [vmem:[%s11406_s1 + $0x58] sm:$0xff] }
   0xd   :  { %109 = vperm.xlu2 %8423, %v51_v8   ;;  %v36_v33 = vld [vmem:[%s11406_s1 + $0x40] sm:$0xff]  ;;  %v4116_v38 = vld [vmem:[%s11407_s4 + $0x58] sm:$0xff]  ;;  %v4107_v47 = vld [vmem:[%s11407_s4 + $0x10] sm:$0xff] }
   0xe   :  { %v4109_v37 = vld [vmem:[%s11407_s4 + $0x20] sm:$0xff] }
  0x12   :  { %99 = vperm.xlu1 %8422, %v49_v11   ;;  %94 = vperm.xlu0 %8421, %v48_v12  }
  0x14   :  { %8200 = vmatmul.msk.f32.gmra.mxu0 %vm116_vm1, %v29_v13  ;;  %8213 = vmatmul.msk.f32.gmra.mxu1 %vm116_vm1, %v29_v13 }
  0x15   :  { %64 = vperm.xlu2 %8423, %v42_v14  }
  0x1a   :  { %54 = vperm.xlu1 %8422, %v40_v15   ;;  %69 = vperm.xlu0 %8421, %v43_v16  }
  0x1c   :  { %8201 = vmatmul.msk.f32.gmra.mxu0 %vm116_vm1, %v30_v17  ;;  %8214 = vmatmul.msk.f32.gmra.mxu1 %vm116_vm1, %v30_v17 }
  0x1d   :  { %59 = vperm.xlu2 %8423, %v41_v18  }
  0x22   :  { %4149 = vperm.xlu0 %8421, %v4111_v19   ;;  %4154 = vperm.xlu1 %8422, %v4112_v20   ;;  %v4106_v20 = vld [vmem:[%s11407_s4 + $0x8] sm:$0xff] }
  0x24   :  { %8202 = vmatmul.msk.f32.gmra.mxu0 %vm116_vm1, %v31_v21  ;;  %8215 = vmatmul.msk.f32.gmra.mxu1 %vm116_vm1, %v31_v21 }
  0x25   :  { %4139 = vperm.xlu2 %8423, %v4109_v37  }
  0x2a   :  { %4144 = vperm.xlu0 %8421, %v4110_v22   ;;  %4169 = vperm.xlu1 %8422, %v4115_v23  }
  0x2c   :  { %8203 = vmatmul.msk.f32.gmra.mxu0 %vm116_vm1, %v32_v24  ;;  %8216 = vmatmul.msk.f32.gmra.mxu1 %vm116_vm1, %v32_v24 }
  0x2d   :  { %4174 = vperm.xlu2 %8423, %v4116_v38   ;;  %v11418_v38 = vmov 2102212464  }
  0x32   :  { %4159 = vperm.xlu0 %8421, %v4113_v25   ;;  %4164 = vperm.xlu1 %8422, %v4114_v26  }
  0x34   :  { %8204 = vmatmul.msk.f32.gmra.mxu0 %vm116_vm1, %v33_v27  ;;  %8217 = vmatmul.msk.f32.gmra.mxu1 %vm116_vm1, %v33_v27 }
  0x35   :  { %4129 = vperm.xlu2 %8423, %v4107_v47   ;;  %v11424_v47 = vmov 2475754826  }
  0x3a   :  { %4134 = vperm.xlu0 %8421, %v4108_v28   ;;  %4119 = vperm.xlu1 %8422, %v4105_v29  }
  0x3c   :  { %8205 = vmatmul.msk.f32.gmra.mxu0 %vm116_vm1, %v34_v30  ;;  %8218 = vmatmul.msk.f32.gmra.mxu1 %vm116_vm1, %v34_v30  ;;  %v11422_v30 = vmov 920167782  }
  0x3d   :  { %4124 = vperm.xlu2 %8423, %v4106_v20  }
  0x42   :  { %8088 = vperm.xlu0 %8421, %v8085_v31  }
  0x44   :  { %8206 = vmatmul.msk.f32.gmra.mxu0 %vm116_vm1, %v35_v32  ;;  %8219 = vmatmul.msk.f32.gmra.mxu1 %vm116_vm1, %v35_v32  ;;  %v11428_v32 = vmov 1326507024  }
  0x4c   :  { %8207 = vmatmul.msk.f32.gmra.mxu0 %vm116_vm1, %v36_v33  ;;  %8220 = vmatmul.msk.f32.gmra.mxu1 %vm116_vm1, %v36_v33 }
  0x54   :  { %8208 = vmatmul.msk.f32.gmra.mxu0 %vm116_vm1, %v37_v34  ;;  %8221 = vmatmul.msk.f32.gmra.mxu1 %vm116_vm1, %v37_v34 }
  0x5c   :  { %8209 = vmatmul.msk.f32.gmra.mxu0 %vm116_vm1, %v38_v35  ;;  %8222 = vmatmul.msk.f32.gmra.mxu1 %vm116_vm1, %v38_v35 }
  0x5e   :  { %v8616_v44 = vpop.permute.xlu2 %104 }
  0x64   :  { %8210 = vmatmul.msk.f32.gmra.mxu0 %vm116_vm1, %v39_v36  ;;  %8223 = vmatmul.msk.f32.gmra.mxu1 %vm116_vm1, %v39_v36  ;;  %v11420_v36 = vmov 2131351028  }
  0x67   :  { %v8623_v52 = vpop.permute.xlu2 %109 }
  0x6f   :  { %v65_v59 = vpop.permute.xlu2 %64 }
  0x74   :  { %v75_v43 = vpop.permute.xlu1 %74  ;;  %v8621_v51 = vpop.permute.xlu0 %84 }
  0x77   :  { %v60_v10 = vpop.permute.xlu2 %59 }
  0x7c   :  { %v80_v48 = vpop.permute.xlu1 %79  ;;  %v8631_v58 = vpop.permute.xlu0 %89 }
  0x84   :  { %v8625_v55 = vpop.permute.xlu1 %99  ;;  %v8639_v9 = vpop.permute.xlu0 %94 }
  0x89   :  { %v175_v39 = vpop.f32.mrf.mxu0  ;;  %v228_v40 = vpop.f32.mrf.mxu1 }
  0x8c   :  { %v55_v7 = vpop.permute.xlu1 %54  ;;  %v70_v34 = vpop.permute.xlu0 %69 }
  0x8d   :  { %v8641_v12 = vadd.f32 %v175_v39, %v55_v7  ;;  %v8645_v16 = vadd.f32 %v228_v40, %v55_v7 }
  0x8f   :  { %11602 = vst [vmem:[#allocation6_spill] sm:$0xff] %v8641_v12 }
  0x90   :  { %11603 = vst [vmem:[#allocation7_spill] sm:$0xff] %v8645_v16  ;;  %v11649_v16 = vmov 2131351028  }
  0x91   :  { %v178_v41 = vpop.f32.mrf.mxu0  ;;  %v231_v42 = vpop.f32.mrf.mxu1 }
  0x92   :  { %v8647_v17 = vadd.f32 %v178_v41, %v60_v10  ;;  %v8649_v18 = vadd.f32 %v231_v42, %v60_v10 }
  0x94   :  { %11604 = vst [vmem:[#allocation8_spill] sm:$0xff] %v8647_v17 }
  0x95   :  { %11605 = vst [vmem:[#allocation9_spill] sm:$0xff] %v8649_v18 }
  0x99   :  { %v181_v45 = vpop.f32.mrf.mxu0  ;;  %v234_v46 = vpop.f32.mrf.mxu1 }
  0x9a   :  { %v8662_v28 = vadd.f32 %v181_v45, %v65_v59  ;;  %v8666_v35 = vadd.f32 %v234_v46, %v65_v59  ;;  %v11432_v59 = vmov 683565275  }
  0x9c   :  { %11606 = vst [vmem:[#allocation10_spill] sm:$0xff] %v8662_v28 }
  0x9d   :  { %11607 = vst [vmem:[#allocation11_spill] sm:$0xff] %v8666_v35 }
  0xa1   :  { %v184_v49 = vpop.f32.mrf.mxu0  ;;  %v237_v50 = vpop.f32.mrf.mxu1 }
  0xa2   :  { %v8670_v41 = vadd.f32 %v184_v49, %v70_v34  ;;  %v8672_v42 = vadd.f32 %v237_v50, %v70_v34 }
  0xa4   :  { %11608 = vst [vmem:[#allocation12_spill] sm:$0xff] %v8670_v41 }
  0xa5   :  { %11609 = vst [vmem:[#allocation13_spill] sm:$0xff] %v8672_v42 }
  0xa9   :  { %v187_v53 = vpop.f32.mrf.mxu0  ;;  %v240_v54 = vpop.f32.mrf.mxu1 }
  0xaa   :  { %v8627_v56 = vadd.f32 %v187_v53, %v75_v43  ;;  %v8629_v57 = vadd.f32 %v240_v54, %v75_v43 }
  0xac   :  { %11598 = vst [vmem:[#allocation2_spill] sm:$0xff] %v8627_v56  ;;  %v1556_v60 = vand.u32 2139095040, %v8627_v56  ;;  %v1711_v62 = vand.u32 2139095040, %v8629_v57  ;;  %v11414_v13 = vand.u32 2147483647, %v8627_v56 }
  0xad   :  { %11599 = vst [vmem:[#allocation3_spill] sm:$0xff] %v8629_v57  ;;  %v11412_v15 = vand.u32 2147483647, %v8629_v57 }
  0xae   :  { %v1557_v61 = vshrl.u32 %v1556_v60, 23  ;;  %v1712_v4 = vshrl.u32 %v1711_v62, 23  ;;  %v1560_v22 = vand.u32 8388607, %v11414_v13 }
  0xaf   :  { %v1715_v24 = vand.u32 8388607, %v11412_v15 }
  0xb0   :  { %v8248_v63 = vadd.s32 4294967169, %v1557_v61  ;;  %v8251_v11 = vadd.s32 4294967169, %v1712_v4  ;;  %v1561_v29 = vor.u32 8388608, %v1560_v22 }
  0xb1   :  { %v190_v1 = vpop.f32.mrf.mxu0  ;;  %v243_v2 = vpop.f32.mrf.mxu1  ;;  %v1716_v40 = vor.u32 8388608, %v1715_v24 }
  0xb2   :  { %v1563_v3 = vadd.s32 1, %v8248_v63  ;;  %v8635_v5 = vadd.f32 %v190_v1, %v80_v48  ;;  %v8637_v6 = vadd.f32 %v243_v2, %v80_v48  ;;  %v1718_v19 = vadd.s32 1, %v8251_v11 }
  0xb3   :  { %v8683_v61 = vshll.u32 %v1561_v29, 8  ;;  %v8686_v2 = vshll.u32 %v1716_v40, 8 }
  0xb4   :  { %11600 = vst [vmem:[#allocation4_spill] sm:$0xff] %v8635_v5  ;;  %vm1564_vm2 = vcmp.gt.s32.totalorder %v1563_v3, 0  ;;  %vm1719_vm3 = vcmp.gt.s32.totalorder %v1718_v19, 0 }
  0xb5   :  { %11601 = vst [vmem:[#allocation5_spill] sm:$0xff] %v8637_v6  ;;  %v1565_v8 = vsel %vm1564_vm2, %v1563_v3, 0  ;;  %v1720_v45 = vsel %vm1719_vm3, %v1718_v19, 0  ;;  %v8698_v24 = vand.u32 65535, %v8683_v61  ;;  %v8706_v34 = vand.u32 65535, %v8686_v2 }
  0xb6   :  { %v1567_v14 = vand.u32 31, %v1565_v8  ;;  %v8674_v43 = vshrl.u32 %v1565_v8, 5  ;;  %11610 = vst [vmem:[#allocation14_spill] sm:$0xff] %v8683_v61  ;;  %v1722_v1 = vand.u32 31, %v1720_v45  ;;  %v11413_v8 = vand.u32 2147483647, %v8635_v5 }
  0xb7   :  { %11611 = vst [vmem:[#allocation15_spill] sm:$0xff] %v8686_v2 }
  0xb8   :  { %v1568_v23 = vsub.s32 32, %v1567_v14  ;;  %v1582_v31 = vshll.u32 %v11422_v30, %v1567_v14  ;;  %v1576_v37 = vshll.u32 %v11420_v36, %v1567_v14  ;;  %v1573_v48 = vshll.u32 %v11424_v47, %v1567_v14  ;;  %11612 = vst [vmem:[#allocation16_spill] sm:$0xff] %v8698_v24 }
  0xb9   :  { %v1579_v53 = vshll.u32 %v11418_v38, %v1567_v14  ;;  %v1570_v60 = vshll.u32 %v11432_v59, %v1567_v14  ;;  %vm1588_vm4 = vcmp.lt.s32.totalorder %v8674_v43, 4  ;;  %v1866_v14 = vand.u32 2139095040, %v8635_v5  ;;  %11614 = vst [vmem:[#allocation18_spill] sm:$0xff] %v8706_v34  ;;  %v246_v57 = vpop.f32.mrf.mxu1 }
  0xba   :  { %v1583_v33 = vshrl.u32 %v11428_v32, %v1568_v23  ;;  %v1577_v39 = vshrl.u32 %v11418_v38, %v1568_v23  ;;  %v1574_v46 = vshrl.u32 %v11420_v36, %v1568_v23  ;;  %v1580_v54 = vshrl.u32 %v11422_v30, %v1568_v23 }
  0xbb   :  { %v1571_v49 = vshrl.u32 %v11424_v47, %v1568_v23  ;;  %v1569_v19 = vshrl.u32 %v11432_v59, %v1568_v23  ;;  %vm1585_vm5 = vcmp.lt.s32.totalorder %v8674_v43, 1  ;;  %vm1587_vm6 = vcmp.lt.s32.totalorder %v8674_v43, 3 }
  0xbc   :  { %v1584_v50 = vor.u32 %v1583_v33, %v1582_v31  ;;  %v1578_v63 = vor.u32 %v1577_v39, %v1576_v37  ;;  %v1575_v10 = vor.u32 %v1574_v46, %v1573_v48  ;;  %v1581_v11 = vor.u32 %v1580_v54, %v1579_v53 }
  0xbd   :  { %v1572_v20 = vor.u32 %v1571_v49, %v1570_v60  ;;  %v8703_v31 = vshrl.u32 %v8683_v61, 16  ;;  %v1723_v33 = vsub.s32 32, %v1722_v1  ;;  %v8710_v23 = vshrl.u32 %v1720_v45, 5 }
  0xbe   :  { %v1598_v22 = vsel %vm1588_vm4, %v1584_v50, 1326507024  ;;  %v1590_v29 = vsel %vm1588_vm4, %v1578_v63, 2102212464  ;;  %v8713_v37 = vshrl.u32 %v8686_v2, 16  ;;  %v1597_v39 = vsel %vm1585_vm5, %v1575_v10, %v1578_v63 }
  0xbf   :  { %11613 = vst [vmem:[#allocation17_spill] sm:$0xff] %v8703_v31  ;;  %v1599_v40 = vsel %vm1587_vm6, %v1581_v11, %v1598_v22  ;;  %v1867_v48 = vshrl.u32 %v1866_v14, 23  ;;  %v8721_v46 = vand.u32 8388607, %v11413_v8  ;;  %vm1586_vm7 = vcmp.lt.s32.totalorder %v8674_v43, 2 }
  0xc0   :  { %11615 = vst [vmem:[#allocation19_spill] sm:$0xff] %v8713_v37  ;;  %v1589_v45 = vsel %vm1585_vm5, %v1569_v19, %v1572_v20  ;;  %v1591_v53 = vsel %vm1587_vm6, %v1575_v10, %v1590_v29  ;;  %v1594_v54 = vsel %vm1588_vm4, %v1581_v11, 920167782  ;;  %v1725_v60 = vshll.u32 %v11432_v59, %v1722_v1 }
  0xc1   :  { %v1728_v49 = vshll.u32 %v11424_v47, %v1722_v1  ;;  %v1732_v50 = vshrl.u32 %v11418_v38, %v1723_v33  ;;  %v1738_v14 = vshrl.u32 %v11428_v32, %v1723_v33  ;;  %v1593_v22 = vsel %vm1585_vm5, %v1572_v20, %v1575_v10 }
  0xc2   :  { %v8738_v19 = vsel %vm1586_vm7, %v1597_v39, %v1599_v40  ;;  %v1735_v29 = vshrl.u32 %v11422_v30, %v1723_v33  ;;  %v8254_v15 = vadd.s32 4294967169, %v1867_v48  ;;  %v8743_v11 = vsel %vm1586_vm7, %v1589_v45, %v1591_v53 }
  0xc3   :  { %11616 = vst [vmem:[#allocation20_spill] sm:$0xff] %v8738_v19  ;;  %v1595_v27 = vsel %vm1587_vm6, %v1578_v63, %v1594_v54  ;;  %v1731_v25 = vshll.u32 %v11420_v36, %v1722_v1  ;;  %v1737_v26 = vshll.u32 %v11422_v30, %v1722_v1  ;;  %v1726_v10 = vshrl.u32 %v11424_v47, %v1723_v33 }
  0xc4   :  { %11617 = vst [vmem:[#allocation21_spill] sm:$0xff] %v8743_v11  ;;  %v1729_v20 = vshrl.u32 %v11420_v36, %v1723_v33  ;;  %v1734_v39 = vshll.u32 %v11418_v38, %v1722_v1  ;;  %v1873_v40 = vadd.s32 1, %v8254_v15  ;;  %v1605_v48 = vshrl.u32 %v8738_v19, 16 }
  0xc5   :  { %v1733_v21 = vor.u32 %v1732_v50, %v1731_v25  ;;  %v1739_v7 = vor.u32 %v1738_v14, %v1737_v26  ;;  %v2021_v45 = vand.u32 2139095040, %v8637_v6  ;;  %v8756_v63 = vsel %vm1586_vm7, %v1593_v22, %v1595_v27 }
  0xc6   :  { %11618 = vst [vmem:[#allocation22_spill] sm:$0xff] %v8756_v63  ;;  %v1724_v53 = vshrl.u32 %v11432_v59, %v1723_v33  ;;  %v1736_v54 = vor.u32 %v1735_v29, %v1734_v39  ;;  %vm1874_vm8 = vcmp.gt.s32.totalorder %v1873_v40, 0  ;;  %v11415_v3 = vand.u32 65535, %v8738_v19 }
  0xc7   :  { %v1875_v15 = vsel %vm1874_vm8, %v1873_v40, 0  ;;  %v2022_v4 = vshrl.u32 %v2021_v45, 23  ;;  %v1727_v62 = vor.u32 %v1726_v10, %v1725_v60  ;;  %v1730_v25 = vor.u32 %v1729_v20, %v1728_v49 }
  0xc8   :  { %vm1743_vm9 = vcmp.lt.s32.totalorder %v8710_v23, 4  ;;  %v1877_v26 = vand.u32 31, %v1875_v15  ;;  %v8764_v43 = vmul.u32 %v1605_v48, %v8698_v24  ;;  %v1627_v27 = vshrl.u32 %v8756_v63, 16 }
  0xc9   :  { %v1745_v33 = vsel %vm1743_vm9, %v1733_v21, 2102212464  ;;  %v1753_v50 = vsel %vm1743_vm9, %v1739_v7, 1326507024  ;;  %v1749_v22 = vsel %vm1743_vm9, %v1736_v54, 920167782  ;;  %v8771_v60 = vmul.u32 %v11415_v3, %v8698_v24 }
  0xca   :  { %11619 = vst [vmem:[#allocation23_spill] sm:$0xff] %v8764_v43  ;;  %v1878_v29 = vsub.s32 32, %v1877_v26  ;;  %v8257_v39 = vadd.s32 4294967169, %v2022_v4  ;;  %v8774_v49 = vmul.u32 %v1605_v48, %v8703_v31  ;;  %vm1740_vm10 = vcmp.lt.s32.totalorder %v8710_v23, 1 }
  0xcb   :  { %11620 = vst [vmem:[#allocation24_spill] sm:$0xff] %v8771_v60  ;;  %vm1742_vm11 = vcmp.lt.s32.totalorder %v8710_v23, 3  ;;  %v1744_v10 = vsel %vm1740_vm10, %v1724_v53, %v1727_v62  ;;  %v1752_v7 = vsel %vm1740_vm10, %v1730_v25, %v1733_v21  ;;  %v11426_v45 = vshll.u32 %v8764_v43, 16 }
  0xcc   :  { %11621 = vst [vmem:[#allocation25_spill] sm:$0xff] %v8774_v49  ;;  %v1746_v20 = vsel %vm1742_vm11, %v1730_v25, %v1745_v33  ;;  %v1754_v40 = vsel %vm1742_vm11, %v1736_v54, %v1753_v50  ;;  %v8780_v4 = vmul.u32 %v1627_v27, %v8698_v24  ;;  %v1748_v8 = vsel %vm1740_vm10, %v1727_v62, %v1730_v25 }
  0xcd   :  { %v1750_v13 = vsel %vm1742_vm11, %v1733_v21, %v1749_v22  ;;  %vm1741_vm12 = vcmp.lt.s32.totalorder %v8710_v23, 2  ;;  %v1892_v48 = vshll.u32 %v11422_v30, %v1877_v26  ;;  %v1893_v1 = vshrl.u32 %v11428_v32, %v1878_v29 }
  0xce   :  { %11622 = vst [vmem:[#allocation26_spill] sm:$0xff] %v8780_v4  ;;  %v2028_v14 = vadd.s32 1, %v8257_v39  ;;  %v8785_v3 = vsel %vm1741_vm12, %v1744_v10, %v1746_v20  ;;  %v8787_v53 = vsel %vm1741_vm12, %v1752_v7, %v1754_v40  ;;  %v1886_v54 = vshll.u32 %v11420_v36, %v1877_v26 }
  0xcf   :  { %11623 = vst [vmem:[#allocation27_spill] sm:$0xff] %v8785_v3  ;;  %v1887_v33 = vshrl.u32 %v11418_v38, %v1878_v29  ;;  %v8791_v50 = vsel %vm1741_vm12, %v1748_v8, %v1750_v13  ;;  %v1889_v62 = vshll.u32 %v11418_v38, %v1877_v26  ;;  %v1890_v21 = vshrl.u32 %v11422_v30, %v1878_v29 }
  0xd0   :  { %11624 = vst [vmem:[#allocation28_spill] sm:$0xff] %v8787_v53  ;;  %v11427_v23 = vand.u32 2147483647, %v8637_v6  ;;  %v1876_v25 = vshrl.u32 %v1875_v15, 5  ;;  %v1883_v22 = vshll.u32 %v11424_v47, %v1877_v26  ;;  %v1884_v39 = vshrl.u32 %v11420_v36, %v1878_v29 }
  0xd1   :  { %11625 = vst [vmem:[#allocation29_spill] sm:$0xff] %v8791_v50  ;;  %vm2029_vm13 = vcmp.gt.s32.totalorder %v2028_v14, 0  ;;  %v1760_v10 = vshrl.u32 %v8787_v53, 16  ;;  %v1880_v20 = vshll.u32 %v11432_v59, %v1877_v26  ;;  %v1881_v7 = vshrl.u32 %v11424_v47, %v1878_v29  ;;  %v193_v47 = vpop.f32.mrf.mxu0 }
  0xd2   :  { %v1894_v13 = vor.u32 %v1893_v1, %v1892_v48  ;;  %v8804_v8 = vadd.s32 %v11426_v45, %v8771_v60  ;;  %v8807_v40 = vmul.u32 %v1627_v27, %v8703_v31  ;;  %v1871_v15 = vor.u32 8388608, %v8721_v46 }
  0xd3   :  { %v1888_v0 = vor.u32 %v1887_v33, %v1886_v54  ;;  %v1891_v36 = vor.u32 %v1890_v21, %v1889_v62  ;;  %v2025_v26 = vand.u32 8388607, %v11427_v23  ;;  %v2030_v30 = vsel %vm2029_vm13, %v2028_v14, 0 }
  0xd4   :  { %11626 = vst [vmem:[#allocation30_spill] sm:$0xff] %v8804_v8  ;;  %v1782_v1 = vshrl.u32 %v8791_v50, 16  ;;  %v1885_v45 = vor.u32 %v1884_v39, %v1883_v22  ;;  %vm1898_vm14 = vcmp.lt.s32.totalorder %v1876_v25, 4  ;;  %v8817_v27 = vmul.u32 %v1760_v10, %v8706_v34 }
  0xd5   :  { %11627 = vst [vmem:[#allocation31_spill] sm:$0xff] %v8807_v40  ;;  %v1879_v46 = vshrl.u32 %v11432_v59, %v1878_v29  ;;  %v1882_v54 = vor.u32 %v1881_v7, %v1880_v20  ;;  %v1908_v33 = vsel %vm1898_vm14, %v1894_v13, 1326507024  ;;  %v1900_v21 = vsel %vm1898_vm14, %v1888_v0, 2102212464 }
  0xd6   :  { %11628 = vst [vmem:[#allocation32_spill] sm:$0xff] %v8817_v27  ;;  %v2032_v23 = vand.u32 31, %v2030_v30  ;;  %v8822_v14 = vadd.f32 %v193_v47, %v8621_v51  ;;  %vm1895_vm15 = vcmp.lt.s32.totalorder %v1876_v25, 1  ;;  %vm1897_vm1 = vcmp.lt.s32.totalorder %v1876_v25, 3 }
  0xd7   :  { %v1904_v38 = vsel %vm1898_vm14, %v1891_v36, 920167782  ;;  %v2026_v48 = vor.u32 8388608, %v2025_v26  ;;  %v8825_v22 = vmul.u32 %v1782_v1, %v8706_v34  ;;  %v1907_v39 = vsel %vm1895_vm15, %v1885_v45, %v1888_v0 }
  0xd8   :  { %11629 = vst [vmem:[#allocation33_spill] sm:$0xff] %v8822_v14  ;;  %v1909_v32 = vsel %vm1897_vm1, %v1891_v36, %v1908_v33  ;;  %v8827_v6 = vshll.u32 %v1871_v15, 8  ;;  %v11437_v29 = vshll.u32 %v8817_v27, 16  ;;  %v8831_v20 = vmul.u32 %v1782_v1, %v8713_v37 }
  0xd9   :  { %11630 = vst [vmem:[#allocation34_spill] sm:$0xff] %v8825_v22  ;;  %v1899_v7 = vsel %vm1895_vm15, %v1879_v46, %v1882_v54  ;;  %v1901_v13 = vsel %vm1897_vm1, %v1885_v45, %v1900_v21  ;;  %vm1896_vm2 = vcmp.lt.s32.totalorder %v1876_v25, 2  ;;  %v1903_v47 = vsel %vm1895_vm15, %v1882_v54, %v1885_v45 }
  0xda   :  { %11631 = vst [vmem:[#allocation35_spill] sm:$0xff] %v8827_v6  ;;  %v1905_v59 = vsel %vm1897_vm1, %v1888_v0, %v1904_v38  ;;  %v2033_v62 = vsub.s32 32, %v2032_v23  ;;  %v11633_v26 = vand.u32 65535, %v8787_v53  ;;  %v8838_v36 = vsel %vm1896_vm2, %v1907_v39, %v1909_v32 }
  0xdb   :  { %11632 = vst [vmem:[#allocation36_spill] sm:$0xff] %v8831_v20  ;;  %v8840_v15 = vshll.u32 %v2026_v48, 8  ;;  %v2176_v33 = vand.u32 2139095040, %v8822_v14  ;;  %v8844_v1 = vmul.u32 %v1760_v10, %v8713_v37  ;;  %v8846_v46 = vsel %vm1896_vm2, %v1899_v7, %v1901_v13 }
  0xdc   :  { %v8836_v18 = vmul.u32 %v11633_v26, %v8706_v34  ;;  %11635 = vst [vmem:[#allocation38_spill] sm:$0xff] %v8838_v36  ;;  %v8849_v0 = vand.u32 65535, %v8827_v6  ;;  %v8852_v38 = vshrl.u32 %v8827_v6, 16  ;;  %v8859_v45 = vsel %vm1896_vm2, %v1903_v47, %v1905_v59 }
  0xdd   :  { %11636 = vst [vmem:[#allocation39_spill] sm:$0xff] %v8840_v15  ;;  %v2177_v25 = vshrl.u32 %v2176_v33, 23  ;;  %v8862_v48 = vadd.f32 %v246_v57, %v8621_v51  ;;  %v1915_v10 = vshrl.u32 %v8838_v36, 16  ;;  %v8865_v54 = vshrl.u32 %v2030_v30, 5 }
  0xde   :  { %11634 = vst [vmem:[#allocation37_spill] sm:$0xff] %v8836_v18  ;;  %v8857_v32 = vadd.s32 %v11437_v29, %v8836_v18  ;;  %v11645_v21 = vmov 1326507024   ;;  %v8872_v26 = vand.u32 65535, %v8840_v15  ;;  %v8875_v59 = vshrl.u32 %v8840_v15, 16 }
  0xdf   :  { %11637 = vst [vmem:[#allocation40_spill] sm:$0xff] %v8844_v1  ;;  %v2048_v39 = vshrl.u32 %v11645_v21, %v2033_v62  ;;  %v8260_v47 = vadd.s32 4294967169, %v2177_v25  ;;  %v11648_v30 = vmov 920167782   ;;  %v1937_v7 = vshrl.u32 %v8859_v45, 16 }
  0xe0   :  { %11638 = vst [vmem:[#allocation41_spill] sm:$0xff] %v8846_v46  ;;  %v2045_v33 = vshrl.u32 %v11648_v30, %v2033_v62  ;;  %v2047_v29 = vshll.u32 %v11648_v30, %v2032_v23  ;;  %v2039_v17 = vshrl.u32 %v11649_v16, %v2033_v62  ;;  %v11650_v13 = vmov 2102212464  }
  0xe1   :  { %11639 = vst [vmem:[#allocation42_spill] sm:$0xff] %v8849_v0  ;;  %v2042_v12 = vshrl.u32 %v11650_v13, %v2033_v62  ;;  %v2183_v42 = vadd.s32 1, %v8260_v47  ;;  %v8885_v35 = vmul.u32 %v1915_v10, %v8849_v0  ;;  %v2044_v25 = vshll.u32 %v11650_v13, %v2032_v23 }
  0xe2   :  { %11640 = vst [vmem:[#allocation43_spill] sm:$0xff] %v8852_v38  ;;  %v2049_v15 = vor.u32 %v2048_v39, %v2047_v29  ;;  %vm2050_vm3 = vcmp.lt.s32.totalorder %v8865_v54, 1  ;;  %v11652_v57 = vmov 2475754826   ;;  %v2041_v28 = vshll.u32 %v11649_v16, %v2032_v23 }
  0xe3   :  { %11641 = vst [vmem:[#allocation44_spill] sm:$0xff] %v8857_v32  ;;  %v2036_v51 = vshrl.u32 %v11652_v57, %v2033_v62  ;;  %v2038_v41 = vshll.u32 %v11652_v57, %v2032_v23  ;;  %vm2184_vm4 = vcmp.gt.s32.totalorder %v2183_v42, 0  ;;  %v11653_v3 = vmov 683565275  }
  0xe4   :  { %11642 = vst [vmem:[#allocation45_spill] sm:$0xff] %v8859_v45  ;;  %v2035_v2 = vshll.u32 %v11653_v3, %v2032_v23  ;;  %v2046_v5 = vor.u32 %v2045_v33, %v2044_v25  ;;  %v2185_v20 = vsel %vm2184_vm4, %v2183_v42, 0  ;;  %v2331_v47 = vand.u32 2139095040, %v8862_v48 }
  0xe5   :  { %11643 = vst [vmem:[#allocation46_spill] sm:$0xff] %v8862_v48  ;;  %v8894_v56 = vor.u32 %v2039_v17, %v2038_v41  ;;  %v2043_v34 = vor.u32 %v2042_v12, %v2041_v28  ;;  %vm2053_vm5 = vcmp.lt.s32.totalorder %v8865_v54, 4  ;;  %v2187_v29 = vand.u32 31, %v2185_v20 }
  0xe6   :  { %11644 = vst [vmem:[#allocation47_spill] sm:$0xff] %v8865_v54  ;;  %vm2051_vm6 = vcmp.lt.s32.totalorder %v8865_v54, 2  ;;  %vm2052_vm7 = vcmp.lt.s32.totalorder %v8865_v54, 3  ;;  %v2063_v22 = vsel %vm2053_vm5, %v2049_v15, 1326507024  ;;  %v11654_v42 = vand.u32 65535, %v8838_v36 }
  0xe7   :  { %11646 = vst [vmem:[#allocation48_spill] sm:$0xff] %v8872_v26  ;;  %v2037_v17 = vor.u32 %v2036_v51, %v2035_v2  ;;  %v2188_v41 = vsub.s32 32, %v2187_v29  ;;  %v2332_v12 = vshrl.u32 %v2331_v47, 23  ;;  %v8908_v28 = vmul.u32 %v1915_v10, %v8852_v38 }
  0xe8   :  { %11647 = vst [vmem:[#allocation49_spill] sm:$0xff] %v8875_v59  ;;  %v8905_v23 = vmul.u32 %v11654_v42, %v8849_v0  ;;  %v8911_v33 = vmul.u32 %v1937_v7, %v8849_v0  ;;  %v8914_v25 = vmul.u32 %v1937_v7, %v8852_v38  ;;  %v2059_v15 = vsel %vm2053_vm5, %v2046_v5, 920167782 }
  0xe9   :  { %11651 = vst [vmem:[#allocation50_spill] sm:$0xff] %v8885_v35  ;;  %v2034_v39 = vshrl.u32 %v11653_v3, %v2033_v62  ;;  %v2062_v2 = vsel %vm2050_vm3, %v8894_v56, %v2043_v34  ;;  %v2064_v51 = vsel %vm2052_vm7, %v2046_v5, %v2063_v22  ;;  %v11659_v47 = vshll.u32 %v8885_v35, 16 }
  0xea   :  { %11655 = vst [vmem:[#allocation51_spill] sm:$0xff] %v8905_v23  ;;  %v11661_v7 = vand.u32 2147483647, %v8822_v14  ;;  %v2197_v1 = vshrl.u32 %v11650_v13, %v2188_v41  ;;  %v2203_v62 = vshrl.u32 %v11645_v21, %v2188_v41  ;;  %v2058_v5 = vsel %vm2050_vm3, %v2037_v17, %v8894_v56 }
  0xeb   :  { %11656 = vst [vmem:[#allocation52_spill] sm:$0xff] %v8908_v28  ;;  %v8928_v42 = vadd.s32 %v11659_v47, %v8905_v23  ;;  %v8936_v46 = vsel %vm2050_vm3, %v2034_v39, %v2037_v17  ;;  %v2060_v22 = vsel %vm2052_vm7, %v2043_v34, %v2059_v15  ;;  %v8263_v47 = vadd.s32 4294967169, %v2332_v12  ;;  %v196_v39 = vpop.f32.mrf.mxu0 }
  0xec   :  { %11657 = vst [vmem:[#allocation53_spill] sm:$0xff] %v8911_v33  ;;  %v2180_v50 = vand.u32 8388607, %v11661_v7  ;;  %v8945_v10 = vsel %vm2051_vm6, %v2062_v2, %v2064_v51  ;;  %v2196_v7 = vshll.u32 %v11649_v16, %v2187_v29  ;;  %v2200_v6 = vshrl.u32 %v11648_v30, %v2188_v41 }
  0xed   :  { %11658 = vst [vmem:[#allocation54_spill] sm:$0xff] %v8914_v25  ;;  %v2202_v32 = vshll.u32 %v11648_v30, %v2187_v29  ;;  %v2191_v53 = vshrl.u32 %v11652_v57, %v2188_v41  ;;  %v2194_v17 = vshrl.u32 %v11649_v16, %v2188_v41  ;;  %v11664_v37 = vand.u32 2147483647, %v8862_v48 }
  0xee   :  { %11660 = vst [vmem:[#allocation55_spill] sm:$0xff] %v8928_v42  ;;  %v2198_v12 = vor.u32 %v2197_v1, %v2196_v7  ;;  %v2199_v25 = vshll.u32 %v11650_v13, %v2187_v29  ;;  %v2338_v51 = vadd.s32 1, %v8263_v47  ;;  %v2181_v11 = vor.u32 8388608, %v2180_v50 }
  0xef   :  { %11662 = vst [vmem:[#allocation56_spill] sm:$0xff] %v8936_v46  ;;  %v2186_v46 = vshrl.u32 %v2185_v20, 5  ;;  %v2335_v15 = vand.u32 8388607, %v11664_v37  ;;  %v2204_v2 = vor.u32 %v2203_v62, %v2202_v32  ;;  %v2190_v61 = vshll.u32 %v11653_v3, %v2187_v29 }
  0xf0   :  { %11663 = vst [vmem:[#allocation57_spill] sm:$0xff] %v8945_v10  ;;  %v2193_v18 = vshll.u32 %v11652_v57, %v2187_v29  ;;  %v8958_v27 = vadd.f32 %v196_v39, %v8631_v58  ;;  %v2055_v20 = vsel %vm2053_vm5, %v2043_v34, 2102212464  ;;  %v8964_v0 = vsel %vm2051_vm6, %v2058_v5, %v2060_v22 }
  0xf1   :  { %11666 = vst [vmem:[#allocation59_spill] sm:$0xff] %v8964_v0  ;;  %v2201_v37 = vor.u32 %v2200_v6, %v2199_v25  ;;  %vm2339_vm8 = vcmp.gt.s32.totalorder %v2338_v51, 0  ;;  %v2192_v32 = vor.u32 %v2191_v53, %v2190_v61  ;;  %vm2208_vm9 = vcmp.lt.s32.totalorder %v2186_v46, 4 }
  0xf2   :  { %11665 = vst [vmem:[#allocation58_spill] sm:$0xff] %v8958_v27  ;;  %v2195_v50 = vor.u32 %v2194_v17, %v2193_v18  ;;  %v2210_v62 = vsel %vm2208_vm9, %v2198_v12, 2102212464  ;;  %v2218_v47 = vsel %vm2208_vm9, %v2204_v2, 1326507024  ;;  %v2336_v29 = vor.u32 8388608, %v2335_v15  ;;  %v249_v2 = vpop.f32.mrf.mxu1 }
  0xf3   :  { %v2340_v7 = vsel %vm2339_vm8, %v2338_v51, 0  ;;  %v2189_v33 = vshrl.u32 %v11653_v3, %v2188_v41  ;;  %v8969_v34 = vshll.u32 %v2181_v11, 8  ;;  %v2486_v5 = vand.u32 2139095040, %v8958_v27 }
  0xf4   :  { %vm2205_vm10 = vcmp.lt.s32.totalorder %v2186_v46, 1  ;;  %vm2207_vm11 = vcmp.lt.s32.totalorder %v2186_v46, 3  ;;  %v2214_v6 = vsel %vm2208_vm9, %v2201_v37, 920167782  ;;  %v2342_v25 = vand.u32 31, %v2340_v7 }
  0xf5   :  { %v2209_v22 = vsel %vm2205_vm10, %v2189_v33, %v2192_v32  ;;  %v2211_v61 = vsel %vm2207_vm11, %v2195_v50, %v2210_v62  ;;  %v2217_v18 = vsel %vm2205_vm10, %v2195_v50, %v2198_v12  ;;  %v2219_v53 = vsel %vm2207_vm11, %v2201_v37, %v2218_v47 }
  0xf6   :  { %v8975_v17 = vsel %vm2052_vm7, %v8894_v56, %v2055_v20  ;;  %v2343_v41 = vsub.s32 32, %v2342_v25  ;;  %v8978_v11 = vshll.u32 %v2336_v29, 8  ;;  %vm2206_vm12 = vcmp.lt.s32.totalorder %v2186_v46, 2 }
  0xf7   :  { %11667 = vst [vmem:[#allocation60_spill] sm:$0xff] %v8975_v17  ;;  %v2213_v51 = vsel %vm2205_vm10, %v2192_v32, %v2195_v50  ;;  %v2215_v39 = vsel %vm2207_vm11, %v2198_v12, %v2214_v6  ;;  %v2487_v1 = vshrl.u32 %v2486_v5, 23  ;;  %v11669_v33 = vand.u32 65535, %v8945_v10 }
  0xf8   :  { %11668 = vst [vmem:[#allocation61_spill] sm:$0xff] %v8978_v11  ;;  %v8986_v47 = vsel %vm2206_vm12, %v2209_v22, %v2211_v61  ;;  %v8988_v56 = vsel %vm2206_vm12, %v2217_v18, %v2219_v53  ;;  %v11671_v20 = vshrl.u32 %v8945_v10, 16  ;;  %v8996_v46 = vand.u32 65535, %v8969_v34 }
  0xf9   :  { %v8983_v62 = vmul.u32 %v11669_v33, %v8872_v26  ;;  %v8999_v12 = vshrl.u32 %v8969_v34, 16  ;;  %v2358_v32 = vshrl.u32 %v11645_v21, %v2343_v41  ;;  %v9002_v50 = vsel %vm2206_vm12, %v2213_v51, %v2215_v39 }
  0xfa   :  { %v8993_v29 = vmul.u32 %v11671_v20, %v8872_v26  ;;  %v9005_v5 = vand.u32 65535, %v8978_v11  ;;  %v9009_v22 = vadd.f32 %v249_v2, %v8631_v58  ;;  %v2357_v53 = vshll.u32 %v11648_v30, %v2342_v25 }
  0xfb   :  { %11670 = vst [vmem:[#allocation62_spill] sm:$0xff] %v8983_v62  ;;  %v8266_v33 = vadd.s32 4294967169, %v2487_v1  ;;  %v9015_v20 = vshrl.u32 %v2340_v7, 5  ;;  %v2349_v39 = vshrl.u32 %v11649_v16, %v2343_v41  ;;  %v2352_v51 = vshrl.u32 %v11650_v13, %v2343_v41 }
  0xfc   :  { %11672 = vst [vmem:[#allocation63_spill] sm:$0xff] %v8993_v29  ;;  %v2355_v15 = vshrl.u32 %v11648_v30, %v2343_v41  ;;  %v2225_v37 = vshrl.u32 %v8988_v56, 16  ;;  %v2247_v58 = vshrl.u32 %v9002_v50, 16  ;;  %v2348_v2 = vshll.u32 %v11652_v57, %v2342_v25  ;;  %v9039_v29 = vpop.f32.mrf.mxu0 }
  0xfd   :  { %11673 = vst [vmem:[#allocation64_spill] sm:$0xff] %v9009_v22  ;;  %v2359_v6 = vor.u32 %v2358_v32, %v2357_v53  ;;  %v2346_v18 = vshrl.u32 %v11652_v57, %v2343_v41  ;;  %v2351_v61 = vshll.u32 %v11649_v16, %v2342_v25  ;;  %v2354_v1 = vshll.u32 %v11650_v13, %v2342_v25 }
  0xfe   :  { %v2493_v7 = vadd.s32 1, %v8266_v33  ;;  %v11674_v54 = vand.u32 65535, %v8988_v56  ;;  %v2345_v45 = vshll.u32 %v11653_v3, %v2342_v25  ;;  %v9034_v42 = vshrl.u32 %v8978_v11, 16  ;;  %v9041_v33 = vpop.f32.mrf.mxu1 }
  0xff   :  { %v9036_v32 = vor.u32 %v2349_v39, %v2348_v2  ;;  %v2353_v53 = vor.u32 %v2352_v51, %v2351_v61  ;;  %v2356_v28 = vor.u32 %v2355_v15, %v2354_v1  ;;  %vm2363_vm13 = vcmp.lt.s32.totalorder %v9015_v20, 4 }
 0x100   :  { %v9029_v17 = vmul.u32 %v11674_v54, %v8996_v46  ;;  %v9044_v54 = vmul.u32 %v2225_v37, %v8996_v46  ;;  %v2373_v62 = vsel %vm2363_vm13, %v2359_v6, 1326507024  ;;  %vm2494_vm14 = vcmp.gt.s32.totalorder %v2493_v7, 0 }
 0x101   :  { %v2641_v25 = vand.u32 2139095040, %v9009_v22  ;;  %v9050_v39 = vmul.u32 %v2225_v37, %v8999_v12  ;;  %v9053_v15 = vmul.u32 %v2247_v58, %v8996_v46  ;;  %v2347_v61 = vor.u32 %v2346_v18, %v2345_v45 }
 0x102   :  { %v11675_v51 = vand.u32 2147483647, %v8958_v27  ;;  %vm2360_vm15 = vcmp.lt.s32.totalorder %v9015_v20, 1  ;;  %vm2362_vm1 = vcmp.lt.s32.totalorder %v9015_v20, 3  ;;  %v2495_v1 = vsel %vm2494_vm14, %v2493_v7, 0 }
 0x103   :  { %v2642_v36 = vshrl.u32 %v2641_v25, 23  ;;  %v2344_v6 = vshrl.u32 %v11653_v3, %v2343_v41  ;;  %v2372_v38 = vsel %vm2360_vm15, %v9036_v32, %v2353_v53  ;;  %v2374_v37 = vsel %vm2362_vm1, %v2356_v28, %v2373_v62 }
 0x104   :  { %v2490_v2 = vand.u32 8388607, %v11675_v51  ;;  %v2497_v40 = vand.u32 31, %v2495_v1  ;;  %v9065_v45 = vmul.u32 %v2247_v58, %v8999_v12  ;;  %vm2361_vm2 = vcmp.lt.s32.totalorder %v9015_v20, 2  ;;  %v202_v49 = vpop.f32.mrf.mxu0 }
 0x105   :  { %v2364_v51 = vsel %vm2360_vm15, %v2344_v6, %v2347_v61  ;;  %v2368_v7 = vsel %vm2360_vm15, %v2347_v61, %v9036_v32  ;;  %v2369_v41 = vsel %vm2363_vm13, %v2356_v28, 920167782  ;;  %v9074_v62 = vsel %vm2361_vm2, %v2372_v38, %v2374_v37 }
 0x106   :  { %v2498_v25 = vsub.s32 32, %v2497_v40  ;;  %v2491_v24 = vor.u32 8388608, %v2490_v2  ;;  %v9076_v4 = vshrl.u32 %v2495_v1, 5  ;;  %v8269_v58 = vadd.s32 4294967169, %v2642_v36  ;;  %v9089_v8 = vpop.f32.mrf.mxu1 }
 0x107   :  { %v2503_v23 = vshll.u32 %v11652_v57, %v2497_v40  ;;  %v2506_v6 = vshll.u32 %v11649_v16, %v2497_v40  ;;  %v2509_v18 = vshll.u32 %v11650_v13, %v2497_v40  ;;  %v2512_v63 = vshll.u32 %v11648_v30, %v2497_v40 }
 0x108   :  { %v2504_v35 = vshrl.u32 %v11649_v16, %v2498_v25  ;;  %v2507_v61 = vshrl.u32 %v11650_v13, %v2498_v25  ;;  %v2510_v28 = vshrl.u32 %v11648_v30, %v2498_v25  ;;  %v2513_v38 = vshrl.u32 %v11645_v21, %v2498_v25 }
 0x109   :  { %v2370_v2 = vsel %vm2362_vm1, %v2353_v53, %v2369_v41  ;;  %v2501_v36 = vshrl.u32 %v11652_v57, %v2498_v25  ;;  %v2380_v19 = vshrl.u32 %v9074_v62, 16  ;;  %v2648_v60 = vadd.s32 1, %v8269_v58 }
 0x10a   :  { %v2505_v1 = vor.u32 %v2504_v35, %v2503_v23  ;;  %v2508_v37 = vor.u32 %v2507_v61, %v2506_v6  ;;  %v2511_v31 = vor.u32 %v2510_v28, %v2509_v18  ;;  %v2514_v48 = vor.u32 %v2513_v38, %v2512_v63 }
 0x10b   :  { %v2365_v43 = vsel %vm2363_vm13, %v2353_v53, 2102212464  ;;  %v2500_v0 = vshll.u32 %v11653_v3, %v2497_v40  ;;  %vm2515_vm3 = vcmp.lt.s32.totalorder %v9076_v4, 1  ;;  %vm2518_vm4 = vcmp.lt.s32.totalorder %v9076_v4, 4 }
 0x10c   :  { %vm2517_vm5 = vcmp.lt.s32.totalorder %v9076_v4, 3  ;;  %v2527_v35 = vsel %vm2515_vm3, %v2505_v1, %v2508_v37  ;;  %v2528_v23 = vsel %vm2518_vm4, %v2514_v48, 1326507024  ;;  %vm2649_vm7 = vcmp.gt.s32.totalorder %v2648_v60, 0 }
 0x10d   :  { %v9102_v63 = vsel %vm2361_vm2, %v2368_v7, %v2370_v2  ;;  %v2502_v18 = vor.u32 %v2501_v36, %v2500_v0  ;;  %v2529_v53 = vsel %vm2517_vm5, %v2511_v31, %v2528_v23  ;;  %v2650_v40 = vsel %vm2649_vm7, %v2648_v60, 0 }
 0x10e   :  { %v2366_v41 = vsel %vm2362_vm1, %v9036_v32, %v2365_v43  ;;  %v9110_v58 = vmul.u32 %v2380_v19, %v9005_v5  ;;  %vm2516_vm8 = vcmp.lt.s32.totalorder %v9076_v4, 2  ;;  %v9113_v48 = vshll.u32 %v2491_v24, 8 }
 0x10f   :  { %v2499_v6 = vshrl.u32 %v11653_v3, %v2498_v25  ;;  %v2520_v7 = vsel %vm2518_vm4, %v2508_v37, 2102212464  ;;  %v2524_v61 = vsel %vm2518_vm4, %v2511_v31, 920167782  ;;  %v9118_v0 = vsel %vm2516_vm8, %v2527_v35, %v2529_v53  ;;  %v258_v31 = vpop.f32.mrf.mxu1 }
 0x110   :  { %11676 = vst [vmem:[#allocation65_spill] sm:$0xff] %v9113_v48  ;;  %v11677_v60 = vshll.u32 %v9044_v54, 16  ;;  %v11495_v43 = vand.u32 65535, %v9074_v62  ;;  %v2402_v32 = vshrl.u32 %v9102_v63, 16  ;;  %v2652_v38 = vand.u32 31, %v2650_v40 }
 0x111   :  { %v9129_v24 = vsel %vm2361_vm2, %v2364_v51, %v2366_v41  ;;  %v2519_v25 = vsel %vm2515_vm3, %v2499_v6, %v2502_v18  ;;  %v11679_v2 = vand.u32 2147483647, %v9009_v22  ;;  %v2521_v35 = vsel %vm2517_vm5, %v2505_v1, %v2520_v7 }
 0x112   :  { %v9123_v28 = vadd.s32 %v11677_v60, %v9029_v17  ;;  %11678 = vst [vmem:[#allocation66_spill] sm:$0xff] %v9129_v24  ;;  %v2523_v23 = vsel %vm2515_vm3, %v2502_v18, %v2505_v1  ;;  %v2525_v53 = vsel %vm2517_vm5, %v2508_v37, %v2524_v61  ;;  %v2535_v20 = vshrl.u32 %v9118_v0, 16 }
 0x113   :  { %v2645_v36 = vand.u32 8388607, %v11679_v2  ;;  %v9145_v41 = vand.u32 65535, %v9113_v48  ;;  %v9148_v6 = vshrl.u32 %v9113_v48, 16  ;;  %v2653_v60 = vsub.s32 32, %v2652_v38  ;;  %v205_v2 = vpop.f32.mrf.mxu0 }
 0x114   :  { %v9153_v1 = vmul.u32 %v11495_v43, %v9005_v5  ;;  %v9156_v37 = vmul.u32 %v2380_v19, %v9034_v42  ;;  %v9159_v18 = vmul.u32 %v2402_v32, %v9005_v5  ;;  %v9161_v7 = vshrl.u32 %v2650_v40, 5 }
 0x115   :  { %v9164_v61 = vmul.u32 %v2402_v32, %v9034_v42  ;;  %v9168_v51 = vsel %vm2516_vm8, %v2519_v25, %v2521_v35  ;;  %v9172_v22 = vsel %vm2516_vm8, %v2523_v23, %v2525_v53  ;;  %v9176_v19 = vadd.f32 %v9039_v29, %v8639_v9 }
 0x116   :  { %11681 = vst [vmem:[#allocation68_spill] sm:$0xff] %v9168_v51  ;;  %v9180_v40 = vmul.u32 %v2535_v20, %v9145_v41  ;;  %v2646_v26 = vor.u32 8388608, %v2645_v36  ;;  %v9184_v32 = vadd.f32 %v9041_v33, %v8639_v9  ;;  %v11682_v25 = vshll.u32 %v9110_v58, 16 }
 0x117   :  { %11680 = vst [vmem:[#allocation67_spill] sm:$0xff] %v9164_v61  ;;  %v2656_v35 = vshrl.u32 %v11652_v57, %v2653_v60  ;;  %v2662_v29 = vshrl.u32 %v11650_v13, %v2653_v60  ;;  %v9194_v23 = vadd.f32 %v202_v49, %v8625_v55  ;;  %v11683_v53 = vshll.u32 %v9044_v54, 16 }
 0x118   :  { %v9189_v4 = vadd.s32 %v11682_v25, %v9153_v1  ;;  %v2557_v33 = vshrl.u32 %v9172_v22, 16  ;;  %vm2670_vm10 = vcmp.lt.s32.totalorder %v9161_v7, 1  ;;  %v2655_v43 = vshll.u32 %v11653_v3, %v2652_v38 }
 0x119   :  { %vm9199_vm9 = vc.u32 %v9029_v17, %v11683_v53  ;;  %v2659_v49 = vshrl.u32 %v11649_v16, %v2653_v60  ;;  %v2661_v27 = vshll.u32 %v11649_v16, %v2652_v38  ;;  %v2665_v17 = vshrl.u32 %v11648_v30, %v2653_v60 }
 0x11a   :  { %v11686_v53 = vand.u32 65535, %v9118_v0  ;;  %v9216_v9 = vmul.u32 %v2535_v20, %v9148_v6  ;;  %v2540_v11 = vshll.u32 %v9180_v40, 16  ;;  %v2668_v25 = vshrl.u32 %v11645_v21, %v2653_v60 }
 0x11b   :  { %v2657_v24 = vor.u32 %v2656_v35, %v2655_v43  ;;  %v2658_v10 = vshll.u32 %v11652_v57, %v2652_v38  ;;  %v2663_v59 = vor.u32 %v2662_v29, %v2661_v27  ;;  %v2664_v51 = vshll.u32 %v11650_v13, %v2652_v38  ;;  %v208_v29 = vpop.f32.mrf.mxu0  ;;  %v261_v57 = vpop.f32.mrf.mxu1 }
 0x11c   :  { %v2536_v14 = vmul.u32 %v11686_v53, %v9145_v41  ;;  %v9223_v16 = vmul.u32 %v2557_v33, %v9145_v41  ;;  %v9226_v48 = vmul.u32 %v2557_v33, %v9148_v6  ;;  %v2654_v53 = vshrl.u32 %v11653_v3, %v2653_v60 }
 0x11d   :  { %v2667_v20 = vshll.u32 %v11648_v30, %v2652_v38  ;;  %vm2672_vm11 = vcmp.lt.s32.totalorder %v9161_v7, 3  ;;  %v9231_v61 = vor.u32 %v2659_v49, %v2658_v10  ;;  %v2666_v43 = vor.u32 %v2665_v17, %v2664_v51 }
 0x11e   :  { %v206_v35 = vadd.f32 %v205_v2, %v8616_v44  ;;  %v259_v27 = vadd.f32 %v258_v31, %v8616_v44  ;;  %v9235_v13 = vadd.s32 %v2540_v11, %v2536_v14  ;;  %vm2673_vm12 = vcmp.lt.s32.totalorder %v9161_v7, 4 }
 0x11f   :  { %v2669_v21 = vor.u32 %v2668_v25, %v2667_v20  ;;  %v9238_v33 = vshll.u32 %v2646_v26, 8  ;;  %vm9240_vm13 = vc.u32 %v2536_v14, %v2540_v11  ;;  %v9246_v10 = vsel %vm2670_vm10, %v2654_v53, %v2657_v24 }
 0x120   :  { %v9248_v51 = vsel %vm2673_vm12, %v2663_v59, 2102212464  ;;  %v4049_v44 = vmax.f32 %v9176_v19, 0.0  ;;  %v256_v31 = vadd.f32 %v9089_v8, %v8625_v55  ;;  %v4053_v60 = vmax.f32 %v206_v35, 0.0 }
 0x121   :  { %v4054_v2 = vmax.f32 %v259_v27, 0.0  ;;  %v209_v26 = vadd.f32 %v208_v29, %v8623_v52  ;;  %v262_v14 = vadd.f32 %v261_v57, %v8623_v52  ;;  %v9258_v11 = vsel %vm2670_vm10, %v2657_v24, %v9231_v61 }
 0x122   :  { %v2679_v25 = vsel %vm2673_vm12, %v2666_v43, 920167782  ;;  %v2682_v49 = vsel %vm2670_vm10, %v9231_v61, %v2663_v59  ;;  %v11689_v19 = vand.u32 65535, %v8988_v56  ;;  %v2683_v8 = vsel %vm2673_vm12, %v2669_v21, 1326507024 }
 0x123   :  { %v9267_v17 = vand.u32 65535, %v9238_v33  ;;  %v4055_v53 = vmax.f32 %v209_v26, 0.0  ;;  %v4056_v52 = vmax.f32 %v262_v14, 0.0  ;;  %v4051_v57 = vmax.f32 %v9194_v23, 0.0 }
 0x124   :  { %v2228_v55 = vmul.u32 %v11689_v19, %v8999_v12  ;;  %v4052_v20 = vmax.f32 %v256_v31, 0.0  ;;  %v11690_v35 = vmov 0   ;;  %v11691_v21 = vand.u32 65535, %v9002_v50 }
 0x125   :  { %v2235_v27 = vsel %vm9199_vm9, 1, %v11690_v35  ;;  %v4103_v29 = vpack.c.bf16 %v4055_v53, %v4053_v60  ;;  %v4104_v3 = vpack.c.bf16 %v4056_v52, %v4054_v2  ;;  %v9279_v26 = vsel %vm2672_vm11, %v2663_v59, %v2679_v25 }
 0x126   :  { %v2232_v24 = vshll.u32 %v2228_v55, 16  ;;  %v2237_v30 = vadd.s32 %v2235_v27, %v9050_v39  ;;  %v2250_v56 = vmul.u32 %v11691_v21, %v8999_v12  ;;  %v11692_v23 = vmov %v11691_v21 }
 0x127   :  { %v2248_v31 = vmul.u32 %v11692_v23, %v8996_v46  ;;  %v2252_v36 = vshll.u32 %v9053_v15, 16  ;;  %vm2671_vm15 = vcmp.lt.s32.totalorder %v9161_v7, 2  ;;  %v4050_v39 = vmax.f32 %v9184_v32, 0.0  ;;  %4228 = vmatpush.bf16.msra.mxu2 %v4103_v29  ;;  %4267 = vmatpush.bf16.msra.mxu3 %v4104_v3 }
 0x128   :  { %vm2238_vm14 = vc.u32 %v9123_v28, %v2232_v24  ;;  %v2231_v12 = vshrl.u32 %v9044_v54, 16  ;;  %v2254_v59 = vshll.u32 %v2250_v56, 16  ;;  %v11693_v2 = vshll.u32 %v9110_v58, 16 }
 0x129   :  { %v2239_v60 = vsel %vm2238_vm14, 1, %v11690_v35  ;;  %vm2256_vm2 = vc.u32 %v2248_v31, %v2252_v36  ;;  %v2258_v50 = vadd.s32 %v2252_v36, %v2248_v31  ;;  %v11696_v32 = vand.u32 65535, %v9118_v0 }
 0x12a   :  { %vm9293_vm1 = vc.u32 %v9153_v1, %v11693_v2  ;;  %v2241_v46 = vadd.s32 %v2239_v60, %v2237_v30  ;;  %v2684_v3 = vsel %vm2672_vm11, %v2666_v43, %v2683_v8  ;;  %v4101_v54 = vpack.c.bf16 %v4051_v57, %v4049_v44 }
 0x12b   :  { %v2538_v14 = vmul.u32 %v11696_v32, %v9148_v6  ;;  %v4102_v25 = vpack.c.bf16 %v4052_v20, %v4050_v39  ;;  %v2257_v19 = vsel %vm2256_vm2, 1, %v11690_v35  ;;  %v2233_v53 = vshrl.u32 %v2228_v55, 16 }
 0x12c   :  { %v2242_v52 = vadd.s32 %v2241_v46, %v2231_v12  ;;  %v2259_v1 = vadd.s32 %v2257_v19, %v9065_v45  ;;  %vm2260_vm3 = vc.u32 %v2258_v50, %v2254_v59  ;;  %4229 = vmatpush.bf16.msra.mxu2 %v4101_v54  ;;  %v2545_v0 = vsel %vm9240_vm13, 1, %v11690_v35 }
 0x12d   :  { %4268 = vmatpush.bf16.msra.mxu3 %v4102_v25  ;;  %v2261_v30 = vsel %vm2260_vm3, 1, %v11690_v35  ;;  %v2542_v24 = vshll.u32 %v2538_v14, 16  ;;  %v11697_v43 = vand.u32 65535, %v9172_v22  ;;  %v2253_v8 = vshrl.u32 %v9053_v15, 16 }
 0x12e   :  { %v2263_v55 = vadd.s32 %v2261_v30, %v2259_v1  ;;  %v2547_v57 = vadd.s32 %v2545_v0, %v9216_v9  ;;  %v2562_v45 = vshll.u32 %v9223_v16, 16  ;;  %v9314_v20 = vadd.s32 %v2242_v52, %v2233_v53 }
 0x12f   :  { %v2560_v44 = vmul.u32 %v11697_v43, %v9148_v6  ;;  %v2255_v27 = vshrl.u32 %v2250_v56, 16  ;;  %vm2548_vm4 = vc.u32 %v9235_v13, %v2542_v24  ;;  %v11698_v38 = vmov %v11697_v43 }
 0x130   :  { %v2558_v29 = vmul.u32 %v11698_v38, %v9145_v41  ;;  %v9320_v21 = vadd.s32 %v2258_v50, %v2254_v59  ;;  %v2264_v23 = vadd.s32 %v2263_v55, %v2253_v8  ;;  %v2541_v6 = vshrl.u32 %v9180_v40, 16 }
 0x131   :  { %v2549_v15 = vsel %vm2548_vm4, 1, %v11690_v35  ;;  %v2564_v9 = vshll.u32 %v2560_v44, 16  ;;  %v9326_v56 = vsel %vm2671_vm15, %v2682_v49, %v2684_v3  ;;  %v11699_v22 = vand.u32 65535, %v9074_v62 }
 0x132   :  { %v2551_v31 = vadd.s32 %v2549_v15, %v2547_v57  ;;  %vm2566_vm5 = vc.u32 %v2558_v29, %v2562_v45  ;;  %v2568_v36 = vadd.s32 %v2562_v45, %v2558_v29  ;;  %v2265_v13 = vadd.s32 %v2264_v23, %v2255_v27  ;;  %v11703_v57 = vld [vmem:[#allocation67_spill] sm:$0xff]  ;;  %v11704_v15 = vld [vmem:[#allocation65_spill] sm:$0xff] }
 0x133   :  { %v2567_v39 = vsel %vm2566_vm5, 1, %v11690_v35  ;;  %v2383_v41 = vmul.u32 %v11699_v22, %v9034_v42  ;;  %vm2268_vm7 = vc.u32 %v9314_v20, %v9320_v21  ;;  %v2543_v59 = vshrl.u32 %v2538_v14, 16 }
 0x134   :  { %v2552_v40 = vadd.s32 %v2551_v31, %v2541_v6  ;;  %v2569_v12 = vadd.s32 %v2567_v39, %v9226_v48  ;;  %vm2570_vm8 = vc.u32 %v2568_v36, %v2564_v9  ;;  %v2269_v60 = vadd.s32 1, %v2265_v13  ;;  %v11705_v31 = vld [vmem:[#allocation68_spill] sm:$0xff] }
 0x135   :  { %v2571_v2 = vsel %vm2570_vm8, 1, %v11690_v35  ;;  %v2387_v49 = vshll.u32 %v2383_v41, 16  ;;  %v2690_v46 = vshrl.u32 %v9326_v56, 16  ;;  %v2563_v50 = vshrl.u32 %v9223_v16, 16 }
 0x136   :  { %v2573_v32 = vadd.s32 %v2571_v2, %v2569_v12  ;;  %v2390_v62 = vsel %vm9293_vm1, 1, %v11690_v35  ;;  %v2270_v3 = vsel %vm2268_vm7, %v2269_v60, %v2265_v13  ;;  %v9341_v54 = vadd.s32 %v2552_v40, %v2543_v59 }
 0x137   :  { %v2392_v48 = vadd.s32 %v2390_v62, %v9156_v37  ;;  %vm2393_vm9 = vc.u32 %v9189_v4, %v2387_v49  ;;  %v11700_v14 = vmul.u32 %v8969_v34, %v8986_v47  ;;  %v2565_v19 = vshrl.u32 %v2560_v44, 16 }
 0x138   :  { %v9348_v53 = vadd.s32 %v2568_v36, %v2564_v9  ;;  %v2574_v16 = vadd.s32 %v2573_v32, %v2563_v50  ;;  %v2394_v52 = vsel %vm2393_vm9, 1, %v11690_v35  ;;  %v11701_v28 = vand.u32 65535, %v9102_v63 }
 0x139   :  { %v2271_v25 = vadd.s32 %v2270_v3, %v11700_v14  ;;  %v2407_v4 = vshll.u32 %v9159_v18, 16  ;;  %v2386_v34 = vshrl.u32 %v9110_v58, 16  ;;  %v2396_v47 = vadd.s32 %v2394_v52, %v2392_v48 }
 0x13a   :  { %v2403_v1 = vmul.u32 %v11701_v28, %v9005_v5  ;;  %v11702_v30 = vmov %v11701_v28  ;;  %v2575_v0 = vadd.s32 %v2574_v16, %v2565_v19  ;;  %vm2578_vm10 = vc.u32 %v9341_v54, %v9348_v53  ;;  %v11710_v19 = vld [vmem:[#allocation57_spill] sm:$0xff]  ;;  %v11712_v28 = vld [vmem:[#allocation66_spill] sm:$0xff] }
 0x13b   :  { %v2405_v37 = vmul.u32 %v11702_v30, %v9034_v42  ;;  %v2272_v24 = vadd.s32 536870912, %v2271_v25  ;;  %v9364_v5 = vmul.u32 %v2690_v46, %v9267_v17  ;;  %v2689_v55 = vand.u32 65535, %v9326_v56 }
 0x13c   :  { %vm2411_vm12 = vc.u32 %v2403_v1, %v2407_v4  ;;  %v2413_v44 = vadd.s32 %v2407_v4, %v2403_v1  ;;  %v2579_v42 = vadd.s32 1, %v2575_v0  ;;  %v2397_v58 = vadd.s32 %v2396_v47, %v2386_v34  ;;  %v11713_v1 = vld [vmem:[#allocation61_spill] sm:$0xff] }
 0x13d   :  { %v2409_v43 = vshll.u32 %v2405_v37, 16  ;;  %v9366_v63 = vshrl.u32 %v2272_v24, 30  ;;  %v2412_v8 = vsel %vm2411_vm12, 1, %v11690_v35  ;;  %v2676_v27 = vsel %vm2672_vm11, %v9231_v61, %v9248_v51 }
 0x13e   :  { %v2414_v45 = vadd.s32 %v2412_v8, %v11703_v57  ;;  %v9376_v38 = vshrl.u32 %v9238_v33, 16  ;;  %v2580_v23 = vsel %vm2578_vm10, %v2579_v42, %v2575_v0  ;;  %v9383_v6 = vsel %vm2671_vm15, %v9258_v11, %v9279_v26  ;;  %v11714_v0 = vld [vmem:[#allocation33_spill] sm:$0xff] }
 0x13f   :  { %vm2415_vm13 = vc.u32 %v2413_v44, %v2409_v43  ;;  %v2274_v29 = vshll.u32 %v9366_v63, 30  ;;  %v11706_v9 = vmul.u32 %v11704_v15, %v11705_v31  ;;  %v2388_v13 = vshrl.u32 %v2383_v41, 16 }
 0x140   :  { %v2416_v39 = vsel %vm2415_vm13, 1, %v11690_v35  ;;  %v2695_v61 = vshll.u32 %v9364_v5, 16  ;;  %v2408_v22 = vshrl.u32 %v9159_v18, 16  ;;  %v2691_v12 = vmul.u32 %v2689_v55, %v9267_v17 }
 0x141   :  { %v2581_v36 = vadd.s32 %v2580_v23, %v11706_v9  ;;  %v2275_v51 = vsub.s32 %v2271_v25, %v2274_v29  ;;  %v2418_v40 = vadd.s32 %v2416_v39, %v2414_v45  ;;  %v9392_v59 = vadd.s32 %v2397_v58, %v2388_v13  ;;  %v11709_v25 = vld [vmem:[#allocation49_spill] sm:$0xff] }
 0x142   :  { %v2410_v11 = vshrl.u32 %v2405_v37, 16  ;;  %v9395_v49 = vmul.u32 %v2689_v55, %v9376_v38  ;;  %v9400_v41 = vsel %vm2671_vm15, %v9246_v10, %v2676_v27  ;;  %v2712_v18 = vshrl.u32 %v9383_v6, 16 }
 0x143   :  { %v2582_v60 = vadd.s32 536870912, %v2581_v36  ;;  %vm2276_vm11 = vcmp.lt.s32.totalorder %v2275_v51, 0  ;;  %v2277_v26 = vsub.s32 0, %v2275_v51  ;;  %v2419_v2 = vadd.s32 %v2418_v40, %v2408_v22 }
 0x144   :  { %v9405_v32 = vadd.s32 %v2413_v44, %v2409_v43  ;;  %vm9407_vm14 = vc.u32 %v2691_v12, %v2695_v61  ;;  %v2701_v3 = vadd.s32 %v2695_v61, %v2691_v12  ;;  %v11711_v16 = vshrl.u32 %v11710_v19, 16 }
 0x145   :  { %v9403_v50 = vshrl.u32 %v2582_v60, 30  ;;  %v2278_v48 = vsel %vm2276_vm11, %v2277_v26, %v2275_v51  ;;  %v2420_v14 = vadd.s32 %v2419_v2, %v2410_v11  ;;  %v2421_v30 = vmul.u32 %v11713_v1, %v11712_v28 }
 0x146   :  { %v9414_v52 = vmul.u32 %v11711_v16, %v11709_v25  ;;  %v2279_v7 = vclz %v2278_v48  ;;  %vm2423_vm15 = vc.u32 %v9392_v59, %v9405_v32  ;;  %v2731_v37 = vmul.u32 %v9238_v33, %v9400_v41 }
 0x147   :  { %v2584_v10 = vshll.u32 %v9403_v50, 30  ;;  %v2424_v4 = vadd.s32 1, %v2420_v14  ;;  %v2697_v24 = vshll.u32 %v9395_v49, 16  ;;  %vm2175_vm1 = vcmp.lt.s32.totalorder %v11714_v0, 0 }
 0x148   :  { %v2711_v34 = vand.u32 65535, %v9383_v6  ;;  %v8261_v47 = vadd.s32 4294967294, %v2279_v7  ;;  %v2700_v44 = vsel %vm9407_vm14, 1, %v11690_v35  ;;  %v2694_v42 = vmul.u32 %v2690_v46, %v9376_v38 }
 0x149   :  { %v2585_v43 = vsub.s32 %v2581_v36, %v2584_v10  ;;  %v9433_v8 = vmul.u32 %v2712_v18, %v9267_v17  ;;  %v2425_v55 = vsel %vm2423_vm15, %v2424_v4, %v2420_v14  ;;  %vm2703_vm2 = vc.u32 %v2701_v3, %v2697_v24  ;;  %v11718_v14 = vld [vmem:[#allocation58_spill] sm:$0xff] }
 0x14a   :  { %v2716_v58 = vmul.u32 %v2712_v18, %v9376_v38  ;;  %vm8262_vm3 = vcmp.lt.s32.totalorder %v8261_v47, 0  ;;  %v2267_v45 = vadd.s32 %v9320_v21, %v9314_v20  ;;  %v2426_v29 = vadd.s32 %v2425_v55, %v2421_v30 }
 0x14b   :  { %vm2586_vm4 = vcmp.lt.s32.totalorder %v2585_v43, 0  ;;  %v2587_v57 = vsub.s32 0, %v2585_v43  ;;  %v2282_v27 = vsel %vm8262_vm3, 0, %v8261_v47  ;;  %v2702_v23 = vadd.s32 %v2700_v44, %v2694_v42 }
 0x14c   :  { %v2283_v6 = vsub.s32 32, %v2282_v27  ;;  %v2287_v15 = vsub.s32 4294967266, %v2282_v27  ;;  %v2704_v46 = vsel %vm2703_vm2, 1, %v11690_v35  ;;  %v2297_v31 = vsub.s32 4, %v9366_v63 }
 0x14d   :  { %v2588_v56 = vsel %vm2586_vm4, %v2587_v57, %v2585_v43  ;;  %v2427_v36 = vadd.s32 536870912, %v2426_v29  ;;  %v2717_v13 = vshll.u32 %v9433_v8, 16  ;;  %v2284_v39 = vshll.u32 %v2275_v51, %v2282_v27 }
 0x14e   :  { %v2589_v9 = vclz %v2588_v56  ;;  %v2285_v61 = vshrl.u32 %v2267_v45, %v2283_v6  ;;  %v2288_v22 = vadd.s32 127, %v2287_v15  ;;  %v2715_v40 = vmul.u32 %v2711_v34, %v9376_v38 }
 0x14f   :  { %v2577_v20 = vadd.s32 %v9348_v53, %v9341_v54  ;;  %v2706_v12 = vadd.s32 %v2704_v46, %v2702_v23  ;;  %v2713_v60 = vmul.u32 %v2711_v34, %v9267_v17  ;;  %v11715_v11 = vand.u32 2147483647, %v11714_v0 }
 0x150   :  { %v8267_v21 = vadd.s32 4294967294, %v2589_v9  ;;  %v2286_v2 = vor.u32 %v2285_v61, %v2284_v39  ;;  %v2289_v18 = vshll.u32 %v2288_v22, 23  ;;  %v9451_v51 = vshrl.u32 %v2427_v36, 30 }
 0x151   :  { %vm9447_vm5 = vcmp.le.f32.partialorder %v11715_v11, 0.7853982  ;;  %v2696_v62 = vshrl.u32 %v9364_v5, 16  ;;  %v2298_v54 = vsel %vm2175_vm1, %v2297_v31, %v9366_v63  ;;  %vm2721_vm8 = vc.u32 %v2713_v60, %v2717_v13 }
 0x152   :  { %vm8268_vm7 = vcmp.lt.s32.totalorder %v8267_v21, 0  ;;  %v2723_v53 = vadd.s32 %v2717_v13, %v2713_v60  ;;  %v2290_v17 = vor.u32 4788187, %v2289_v18  ;;  %v2429_v3 = vshll.u32 %v9451_v51, 30 }
 0x153   :  { %v2592_v38 = vsel %vm8268_vm7, 0, %v8267_v21  ;;  %v2719_v48 = vshll.u32 %v2715_v40, 16  ;;  %vm2485_vm9 = vcmp.lt.s32.totalorder %v11718_v14, 0  ;;  %v2293_v16 = vcvt.s32.f32 %v2286_v2 }
 0x154   :  { %v2593_v7 = vsub.s32 32, %v2592_v38  ;;  %v2597_v10 = vsub.s32 4294967266, %v2592_v38  ;;  %v2707_v28 = vadd.s32 %v2706_v12, %v2696_v62  ;;  %v2291_v1 = vand.u32 2147483647, %v2290_v17 }
 0x155   :  { %v9459_v5 = vsub.s32 %v2426_v29, %v2429_v3  ;;  %v2722_v30 = vsel %vm2721_vm8, 1, %v11690_v35  ;;  %vm2725_vm10 = vc.u32 %v2723_v53, %v2719_v48  ;;  %v2594_v63 = vshll.u32 %v2585_v43, %v2592_v38 }
 0x156   :  { %v2595_v4 = vshrl.u32 %v2577_v20, %v2593_v7  ;;  %v2598_v24 = vadd.s32 127, %v2597_v10  ;;  %v2724_v34 = vadd.s32 %v2722_v30, %v2716_v58  ;;  %v2294_v47 = vmul.f32 %v2293_v16, %v2291_v1  ;;  %v11722_v1 = vld [vmem:[#allocation48_spill] sm:$0xff]  ;;  %v11723_v30 = vld [vmem:[#allocation59_spill] sm:$0xff] }
 0x157   :  { %v11719_v44 = vand.u32 2147483647, %v11718_v14  ;;  %vm2431_vm13 = vcmp.lt.s32.totalorder %v9459_v5, 0  ;;  %v2432_v55 = vsub.s32 0, %v9459_v5  ;;  %v2698_v57 = vshrl.u32 %v9395_v49, 16 }
 0x158   :  { %v2596_v45 = vor.u32 %v2595_v4, %v2594_v63  ;;  %v2599_v27 = vshll.u32 %v2598_v24, 23  ;;  %v2607_v43 = vsub.s32 4, %v9403_v50  ;;  %v2726_v29 = vsel %vm2725_vm10, 1, %v11690_v35 }
 0x159   :  { %vm9464_vm12 = vcmp.le.f32.partialorder %v11719_v44, 0.7853982  ;;  %v2295_v58 = vxor.u32 2147483648, %v2294_v47  ;;  %v2433_v23 = vsel %vm2431_vm13, %v2432_v55, %v9459_v5  ;;  %v2718_v6 = vshrl.u32 %v9433_v8, 16  ;;  %v11727_v55 = vld [vmem:[#allocation24_spill] sm:$0xff] }
 0x15a   :  { %v2728_v15 = vadd.s32 %v2726_v29, %v2724_v34  ;;  %v2300_v56 = vsel %vm9447_vm5, 0, %v2298_v54  ;;  %v2600_v46 = vor.u32 4788187, %v2599_v27  ;;  %v2434_v31 = vclz %v2433_v23  ;;  %v11730_v27 = vld [vmem:[#allocation46_spill] sm:$0xff] }
 0x15b   :  { %v9477_v9 = vadd.s32 %v2707_v28, %v2698_v57  ;;  %v2296_v49 = vsel %vm2175_vm1, %v2295_v58, %v2294_v47  ;;  %v2720_v36 = vshrl.u32 %v2715_v40, 16  ;;  %v9481_v13 = vadd.s32 %v2723_v53, %v2719_v48  ;;  %v11725_v47 = vld [vmem:[#allocation23_spill] sm:$0xff] }
 0x15c   :  { %v2729_v39 = vadd.s32 %v2728_v15, %v2718_v6  ;;  %v2299_v61 = vsel %vm9447_vm5, %v11714_v0, %v2296_v49  ;;  %v2601_v8 = vand.u32 2147483647, %v2600_v46  ;;  %v2603_v22 = vcvt.s32.f32 %v2596_v45 }
 0x15d   :  { %v8264_v20 = vadd.s32 4294967294, %v2434_v31  ;;  %v2301_v21 = vmul.f32 %v2299_v61, %v2299_v61  ;;  %v2608_v12 = vsel %vm2485_vm9, %v2607_v43, %v9403_v50  ;;  %v2422_v60 = vadd.s32 %v9405_v32, %v9392_v59 }
 0x15e   :  { %v2730_v11 = vadd.s32 %v2729_v39, %v2720_v36  ;;  %v2317_v40 = vadd.s32 3, %v2300_v56  ;;  %v2604_v2 = vmul.f32 %v2603_v22, %v2601_v8  ;;  %vm2733_vm14 = vc.u32 %v9477_v9, %v9481_v13  ;;  %v11740_v36 = vld [vmem:[#allocation64_spill] sm:$0xff] }
 0x15f   :  { %vm8265_vm11 = vcmp.lt.s32.totalorder %v8264_v20, 0  ;;  %v2302_v26 = vmul.f32 -0.001358992, %v2301_v21  ;;  %v2309_v18 = vmul.f32 -0.00019511016, %v2301_v21  ;;  %v2610_v17 = vsel %vm9464_vm12, 0, %v2608_v12 }
 0x160   :  { %v2437_v62 = vsel %vm8265_vm11, 0, %v8264_v20  ;;  %v2734_v54 = vadd.s32 1, %v2730_v11  ;;  %v2605_v53 = vxor.u32 2147483648, %v2604_v2  ;;  %v11724_v63 = vshrl.u32 %v11723_v30, 16 }
 0x161   :  { %v2438_v38 = vsub.s32 32, %v2437_v62  ;;  %v2442_v50 = vsub.s32 4294967266, %v2437_v62  ;;  %v2303_v3 = vadd.f32 0.041655596, %v2302_v26  ;;  %v2310_v48 = vadd.f32 0.008332121, %v2309_v18 }
 0x162   :  { %v2439_v59 = vshll.u32 %v9459_v5, %v2437_v62  ;;  %v2735_v32 = vsel %vm2733_vm14, %v2734_v54, %v2730_v11  ;;  %v2606_v16 = vsel %vm2485_vm9, %v2605_v53, %v2604_v2  ;;  %v9504_v4 = vmul.u32 %v11724_v63, %v11722_v1 }
 0x163   :  { %v2440_v7 = vshrl.u32 %v2422_v60, %v2438_v38  ;;  %v2443_v10 = vadd.s32 127, %v2442_v50  ;;  %v2736_v28 = vadd.s32 %v2735_v32, %v2731_v37  ;;  %v2304_v24 = vmul.f32 %v2303_v3, %v2301_v21  ;;  %v11736_v38 = vld [vmem:[#allocation20_spill] sm:$0xff] }
 0x164   :  { %v2311_v34 = vmul.f32 %v2310_v48, %v2301_v21  ;;  %v9509_v5 = vsel %vm9464_vm12, %v11718_v14, %v2606_v16  ;;  %v11726_v44 = vshll.u32 %v11725_v47, 16  ;;  %vm2330_vm1 = vcmp.lt.s32.totalorder %v11730_v27, 0 }
 0x165   :  { %v2611_v33 = vmul.f32 %v9509_v5, %v9509_v5  ;;  %v2441_v41 = vor.u32 %v2440_v7, %v2439_v59  ;;  %v2444_v37 = vshll.u32 %v2443_v10, 23  ;;  %v2737_v45 = vadd.s32 536870912, %v2736_v28 }
 0x166   :  { %vm9514_vm15 = vc.u32 %v11727_v55, %v11726_v44  ;;  %v2305_v43 = vadd.f32 -0.4999988, %v2304_v24  ;;  %v2312_v29 = vadd.f32 -0.16666654, %v2311_v34  ;;  %v9521_v42 = vand.u32 3, %v2317_v40 }
 0x167   :  { %v2627_v58 = vadd.s32 3, %v2610_v17  ;;  %v11731_v23 = vmov %v11724_v63  ;;  %v2612_v15 = vmul.f32 -0.001358992, %v2611_v33  ;;  %v2619_v56 = vmul.f32 -0.00019511016, %v2611_v33 }
 0x168   :  { %v9526_v6 = vmul.u32 %v11731_v23, %v11709_v25  ;;  %v2445_v46 = vor.u32 4788187, %v2444_v37  ;;  %v2313_v31 = vmul.f32 %v2312_v29, %v2301_v21  ;;  %v11732_v49 = vand.u32 2147483647, %v11730_v27  ;;  %v11738_v23 = vld [vmem:[#allocation30_spill] sm:$0xff] }
 0x169   :  { %v2448_v39 = vcvt.s32.f32 %v2441_v41  ;;  %v9534_v8 = vshrl.u32 %v2737_v45, 30  ;;  %v2306_v22 = vmul.f32 %v2305_v43, %v2301_v21  ;;  %v2613_v20 = vadd.f32 0.041655596, %v2612_v15  ;;  %v11735_v21 = vld [vmem:[#allocation17_spill] sm:$0xff] }
 0x16a   :  { %vm9530_vm2 = vcmp.le.f32.partialorder %v11732_v49, 0.7853982  ;;  %v2620_v12 = vadd.f32 0.008332121, %v2619_v56  ;;  %v2446_v60 = vand.u32 2147483647, %v2445_v46  ;;  %vm2316_vm12 = vweird.f32 %v11714_v0 }
 0x16b   :  { %v2314_v11 = vadd.f32 1.0, %v2313_v31  ;;  %vm2320_vm3 = vcmp.eq.s32.totalorder %v9521_v42, 0  ;;  %v9537_v40 = vand.u32 3, %v2627_v58  ;;  %v2739_v2 = vshll.u32 %v9534_v8, 30 }
 0x16c   :  { %v2614_v26 = vmul.f32 %v2613_v20, %v2611_v33  ;;  %v2621_v18 = vmul.f32 %v2620_v12, %v2611_v33  ;;  %v2449_v62 = vmul.f32 %v2448_v39, %v2446_v60  ;;  %v2452_v54 = vsub.s32 4, %v9451_v51 }
 0x16d   :  { %v2315_v53 = vmul.f32 %v2314_v11, %v2299_v61  ;;  %vm2323_vm4 = vcmp.eq.s32.totalorder %v9521_v42, 2  ;;  %v9542_v17 = vsub.s32 %v2736_v28, %v2739_v2  ;;  %v11737_v50 = vand.u32 65535, %v11736_v38 }
 0x16e   :  { %v2307_v48 = vadd.f32 1.0, %v2306_v22  ;;  %vm2319_vm5 = vcmp.lt.s32.totalorder %v9521_v42, 2  ;;  %v2615_v59 = vadd.f32 -0.4999988, %v2614_v26  ;;  %v2622_v32 = vadd.f32 -0.16666654, %v2621_v18 }
 0x16f   :  { %v9547_v3 = vmul.u32 %v11737_v50, %v11735_v21  ;;  %v2450_v16 = vxor.u32 2147483648, %v2449_v62  ;;  %v2321_v7 = vxor.u32 2147483648, %v2315_v53  ;;  %vm2630_vm7 = vcmp.eq.s32.totalorder %v9537_v40, 0  ;;  %v11739_v22 = vld [vmem:[#allocation25_spill] sm:$0xff]  ;;  %v11743_v50 = vld [vmem:[#allocation50_spill] sm:$0xff] }
 0x170   :  { %vm2633_vm8 = vcmp.eq.s32.totalorder %v9537_v40, 2  ;;  %vm2741_vm9 = vcmp.lt.s32.totalorder %v9542_v17, 0  ;;  %v2742_v61 = vsub.s32 0, %v9542_v17  ;;  %v2616_v10 = vmul.f32 %v2615_v59, %v2611_v33  ;;  %v11745_v59 = vld [vmem:[#allocation51_spill] sm:$0xff] }
 0x171   :  { %v2623_v28 = vmul.f32 %v2622_v32, %v2611_v33  ;;  %vm2629_vm10 = vcmp.lt.s32.totalorder %v9537_v40, 2  ;;  %v2451_v63 = vsel %vm2330_vm1, %v2450_v16, %v2449_v62  ;;  %v2453_v24 = vsel %vm2330_vm1, %v2452_v54, %v9451_v51  ;;  %v11741_v54 = vld [vmem:[#allocation22_spill] sm:$0xff] }
 0x172   :  { %vm2626_vm13 = vweird.f32 %v11718_v14  ;;  %v9565_v34 = vsel %vm9530_vm2, %v11730_v27, %v2451_v63  ;;  %v2743_v44 = vsel %vm2741_vm9, %v2742_v61, %v9542_v17  ;;  %v1612_v55 = vshll.u32 %v9547_v3, 16 }
 0x173   :  { %v1615_v33 = vsel %vm9514_vm15, 1, %v11690_v35  ;;  %v2324_v41 = vxor.u32 2147483648, %v2307_v48  ;;  %v2617_v37 = vadd.f32 1.0, %v2616_v10  ;;  %v2624_v51 = vadd.f32 1.0, %v2623_v28 }
 0x174   :  { %v9574_v45 = vmul.f32 %v9565_v34, %v9565_v34  ;;  %v2322_v43 = vsel %vm2320_vm3, %v2307_v48, %v2321_v7  ;;  %v2455_v29 = vsel %vm9530_vm2, 0, %v2453_v24  ;;  %v2744_v58 = vclz %v2743_v44  ;;  %v11750_v44 = vld [vmem:[#allocation26_spill] sm:$0xff] }
 0x175   :  { %vm1618_vm11 = vc.u32 %v11738_v23, %v1612_v55  ;;  %v2625_v15 = vmul.f32 %v2624_v51, %v9509_v5  ;;  %v2634_v57 = vxor.u32 2147483648, %v2617_v37  ;;  %v2732_v31 = vadd.s32 %v9481_v13, %v9477_v9 }
 0x176   :  { %v2457_v56 = vmul.f32 -0.001358992, %v9574_v45  ;;  %v2464_v46 = vmul.f32 -0.00019511016, %v9574_v45  ;;  %v8270_v49 = vadd.s32 4294967294, %v2744_v58  ;;  %v2762_v39 = vsub.s32 4, %v9534_v8 }
 0x177   :  { %v1617_v20 = vadd.s32 %v1615_v33, %v11739_v22  ;;  %vm2640_vm14 = vcmp.lt.s32.totalorder %v11740_v36, 0  ;;  %v2325_v12 = vsel %vm2323_vm4, %v2324_v41, %v2315_v53  ;;  %v2631_v60 = vxor.u32 2147483648, %v2625_v15  ;;  %v11751_v22 = vld [vmem:[#allocation31_spill] sm:$0xff] }
 0x178   :  { %v2465_v5 = vadd.f32 0.008332121, %v2464_v46  ;;  %v1619_v11 = vsel %vm1618_vm11, 1, %v11690_v35  ;;  %v2326_v2 = vsel %vm2319_vm5, %v2322_v43, %v2325_v12  ;;  %v2635_v9 = vsel %vm2633_vm8, %v2634_v57, %v2625_v15 }
 0x179   :  { %v2458_v13 = vadd.f32 0.041655596, %v2457_v56  ;;  %vm8271_vm15 = vcmp.lt.s32.totalorder %v8270_v49, 0  ;;  %v2632_v26 = vsel %vm2630_vm7, %v2617_v37, %v2631_v60  ;;  %v11742_v53 = vand.u32 65535, %v11741_v54 }
 0x17a   :  { %v2466_v18 = vmul.f32 %v2465_v5, %v9574_v45  ;;  %v2747_v62 = vsel %vm8271_vm15, 0, %v8270_v49  ;;  %v11744_v48 = vshll.u32 %v11743_v50, 16  ;;  %v2636_v32 = vsel %vm2629_vm10, %v2632_v26, %v2635_v9  ;;  %v11753_v9 = vld [vmem:[#allocation38_spill] sm:$0xff] }
 0x17b   :  { %v1630_v38 = vmul.u32 %v11742_v53, %v11735_v21  ;;  %v2748_v16 = vsub.s32 32, %v2747_v62  ;;  %v2752_v7 = vsub.s32 4294967266, %v2747_v62  ;;  %v1621_v61 = vadd.s32 %v1619_v11, %v1617_v20  ;;  %v11748_v21 = vld [vmem:[#allocation16_spill] sm:$0xff] }
 0x17c   :  { %vm9605_vm1 = vc.u32 %v11745_v59, %v11744_v48  ;;  %v2327_v10 = vsel %vm2316_vm12, nan, %v2326_v2  ;;  %v2637_v28 = vsel %vm2626_vm13, nan, %v2636_v32  ;;  %v11749_v63 = vmov %v11742_v53  ;;  %v11752_v2 = vld [vmem:[#allocation43_spill] sm:$0xff] }
 0x17d   :  { %v1628_v24 = vmul.u32 %v11749_v63, %v11748_v21  ;;  %v1632_v55 = vshll.u32 %v11750_v44, 16  ;;  %v4099_v33 = vpack.c.bf16 %v2637_v28, %v2327_v10  ;;  %v2749_v41 = vshll.u32 %v9542_v17, %v2747_v62 }
 0x17e   :  { %v2750_v40 = vshrl.u32 %v2732_v31, %v2748_v16  ;;  %v2753_v37 = vadd.s32 127, %v2752_v7  ;;  %v2459_v51 = vmul.f32 %v2458_v13, %v9574_v45  ;;  %v2467_v43 = vadd.f32 -0.16666654, %v2466_v18  ;;  %v11755_v18 = vld [vmem:[#allocation63_spill] sm:$0xff] }
 0x17f   :  { %v1611_v0 = vshrl.u32 %v11725_v47, 16  ;;  %v1634_v58 = vshll.u32 %v1630_v38, 16  ;;  %4230 = vmatpush.bf16.msra.mxu2 %v4099_v33  ;;  %vm1636_vm2 = vc.u32 %v1628_v24, %v1632_v55  ;;  %v1638_v15 = vadd.s32 %v1632_v55, %v1628_v24  ;;  %v11760_v33 = vld [vmem:[#allocation55_spill] sm:$0xff] }
 0x180   :  { %v2751_v14 = vor.u32 %v2750_v40, %v2749_v41  ;;  %v2754_v23 = vshll.u32 %v2753_v37, 23  ;;  %v2472_v57 = vadd.s32 3, %v2455_v29  ;;  %v1613_v56 = vshrl.u32 %v9547_v3, 16  ;;  %v11763_v40 = vld [vmem:[#allocation53_spill] sm:$0xff] }
 0x181   :  { %v1622_v46 = vadd.s32 %v1621_v61, %v1611_v0  ;;  %v1637_v49 = vsel %vm1636_vm2, 1, %v11690_v35  ;;  %v9627_v31 = vsel %vm2640_vm14, %v2762_v39, %v9534_v8  ;;  %vm1640_vm3 = vc.u32 %v1638_v15, %v1634_v58  ;;  %v11764_v0 = vld [vmem:[#allocation42_spill] sm:$0xff] }
 0x182   :  { %v2755_v17 = vor.u32 4788187, %v2754_v23  ;;  %v1639_v47 = vadd.s32 %v1637_v49, %v11751_v22  ;;  %v2460_v20 = vadd.f32 -0.4999988, %v2459_v51  ;;  %v2468_v12 = vmul.f32 %v2467_v43, %v9574_v45  ;;  %v11766_v23 = vld [vmem:[#allocation32_spill] sm:$0xff] }
 0x183   :  { %v1633_v60 = vshrl.u32 %v11750_v44, 16  ;;  %v1641_v29 = vsel %vm1640_vm3, 1, %v11690_v35  ;;  %v2758_v5 = vcvt.s32.f32 %v2751_v14  ;;  %v11754_v13 = vand.u32 65535, %v11753_v9  ;;  %v11759_v44 = vld [vmem:[#allocation52_spill] sm:$0xff] }
 0x184   :  { %v2756_v3 = vand.u32 2147483647, %v2755_v17  ;;  %v1643_v11 = vadd.s32 %v1641_v29, %v1639_v47  ;;  %v2075_v8 = vshll.u32 %v11755_v18, 16  ;;  %v9637_v39 = vand.u32 3, %v2472_v57  ;;  %v11768_v57 = vld [vmem:[#allocation37_spill] sm:$0xff] }
 0x185   :  { %v1918_v26 = vmul.u32 %v11754_v13, %v11752_v2  ;;  %v11756_v62 = vand.u32 2147483647, %v11740_v36  ;;  %v9645_v53 = vadd.s32 %v1622_v46, %v1613_v56  ;;  %v1635_v32 = vshrl.u32 %v1630_v38, 16  ;;  %v11761_v38 = vld [vmem:[#allocation45_spill] sm:$0xff] }
 0x186   :  { %v2759_v48 = vmul.f32 %v2758_v5, %v2756_v3  ;;  %v1644_v16 = vadd.s32 %v1643_v11, %v1633_v60  ;;  %v2461_v7 = vmul.f32 %v2460_v20, %v9574_v45  ;;  %v9651_v61 = vadd.s32 %v1638_v15, %v1634_v58  ;;  %v11771_v60 = vld [vmem:[#allocation14_spill] sm:$0xff]  ;;  %v11772_v29 = vld [vmem:[#allocation21_spill] sm:$0xff] }
 0x187   :  { %vm9641_vm4 = vcmp.le.f32.partialorder %v11756_v62, 0.7853982  ;;  %v1922_v10 = vshll.u32 %v1918_v26, 16  ;;  %v1925_v28 = vsel %vm9605_vm1, 1, %v11690_v35  ;;  %v2469_v21 = vadd.f32 1.0, %v2468_v12 }
 0x188   :  { %v2765_v59 = vsel %vm9641_vm4, 0, %v9627_v31  ;;  %v2760_v63 = vxor.u32 2147483648, %v2759_v48  ;;  %v1645_v24 = vadd.s32 %v1644_v16, %v1635_v32  ;;  %v1927_v55 = vadd.s32 %v1925_v28, %v11759_v44 }
 0x189   :  { %vm1648_vm5 = vc.u32 %v9645_v53, %v9651_v61  ;;  %vm1928_vm7 = vc.u32 %v11760_v33, %v1922_v10  ;;  %v11762_v45 = vand.u32 65535, %v11761_v38  ;;  %v1942_v37 = vshll.u32 %v11763_v40, 16  ;;  %v11776_v33 = vld [vmem:[#allocation28_spill] sm:$0xff] }
 0x18a   :  { %v2761_v42 = vsel %vm2640_vm14, %v2760_v63, %v2759_v48  ;;  %v1649_v51 = vadd.s32 1, %v1645_v24  ;;  %v1929_v43 = vsel %vm1928_vm7, 1, %v11690_v35  ;;  %v11767_v15 = vshll.u32 %v11766_v23, 16 }
 0x18b   :  { %v1940_v41 = vmul.u32 %v11762_v45, %v11752_v2  ;;  %v11765_v58 = vmov %v11762_v45  ;;  %v2764_v46 = vsel %vm9641_vm4, %v11740_v36, %v2761_v42  ;;  %v1921_v49 = vshrl.u32 %v11743_v50, 16  ;;  %v11774_v50 = vld [vmem:[#allocation54_spill] sm:$0xff] }
 0x18c   :  { %v1938_v14 = vmul.u32 %v11765_v58, %v11764_v0  ;;  %vm9673_vm8 = vc.u32 %v11768_v57, %v11767_v15  ;;  %v1931_v17 = vadd.s32 %v1929_v43, %v1927_v55  ;;  %vm2475_vm9 = vcmp.eq.s32.totalorder %v9637_v39, 0  ;;  %v11775_v55 = vld [vmem:[#allocation19_spill] sm:$0xff] }
 0x18d   :  { %v1944_v31 = vshll.u32 %v1940_v41, 16  ;;  %v2766_v22 = vmul.f32 %v2764_v46, %v2764_v46  ;;  %v1650_v47 = vsel %vm1648_vm5, %v1649_v51, %v1645_v24  ;;  %v2470_v12 = vmul.f32 %v2469_v21, %v9565_v34 }
 0x18e   :  { %vm1946_vm10 = vc.u32 %v1938_v14, %v1942_v37  ;;  %v1948_v20 = vadd.s32 %v1942_v37, %v1938_v14  ;;  %v11773_v3 = vmul.u32 %v11771_v60, %v11772_v29  ;;  %v1932_v11 = vadd.s32 %v1931_v17, %v1921_v49  ;;  %v11778_v29 = vld [vmem:[#allocation44_spill] sm:$0xff] }
 0x18f   :  { %v1947_v2 = vsel %vm1946_vm10, 1, %v11690_v35  ;;  %v2767_v9 = vmul.f32 -0.001358992, %v2766_v22  ;;  %v2774_v13 = vmul.f32 -0.00019511016, %v2766_v22  ;;  %v2462_v54 = vadd.f32 1.0, %v2461_v7 }
 0x190   :  { %v1651_v5 = vadd.s32 %v1650_v47, %v11773_v3  ;;  %v1949_v62 = vadd.s32 %v1947_v2, %v11774_v50  ;;  %vm1950_vm12 = vc.u32 %v1948_v20, %v1944_v31  ;;  %v1923_v32 = vshrl.u32 %v1918_v26, 16  ;;  %v11780_v50 = vld [vmem:[#allocation41_spill] sm:$0xff] }
 0x191   :  { %v1951_v16 = vsel %vm1950_vm12, 1, %v11690_v35  ;;  %vm2474_vm13 = vcmp.lt.s32.totalorder %v9637_v39, 2  ;;  %v2768_v34 = vadd.f32 0.041655596, %v2767_v9  ;;  %v2775_v10 = vadd.f32 0.008332121, %v2774_v13 }
 0x192   :  { %v1652_v48 = vadd.s32 536870912, %v1651_v5  ;;  %v1943_v28 = vshrl.u32 %v11763_v40, 16  ;;  %v1953_v21 = vadd.s32 %v1951_v16, %v1949_v62  ;;  %v2476_v63 = vxor.u32 2147483648, %v2470_v12  ;;  %v11779_v13 = vld [vmem:[#allocation35_spill] sm:$0xff] }
 0x193   :  { %v9693_v44 = vadd.s32 %v1932_v11, %v1923_v32  ;;  %v11777_v38 = vand.u32 65535, %v11776_v33  ;;  %v2769_v26 = vmul.f32 %v2768_v34, %v2766_v22  ;;  %v2776_v45 = vmul.f32 %v2775_v10, %v2766_v22 }
 0x194   :  { %v9691_v24 = vshrl.u32 %v1652_v48, 30  ;;  %v1945_v37 = vshrl.u32 %v1940_v41, 16  ;;  %v1954_v42 = vadd.s32 %v1953_v21, %v1943_v28  ;;  %vm2478_vm11 = vcmp.eq.s32.totalorder %v9637_v39, 2 }
 0x195   :  { %v9698_v7 = vmul.u32 %v11777_v38, %v11775_v55  ;;  %v2782_v51 = vadd.s32 3, %v2765_v59  ;;  %v9702_v43 = vadd.s32 %v1948_v20, %v1944_v31  ;;  %v2479_v0 = vxor.u32 2147483648, %v2462_v54 }
 0x196   :  { %v1654_v40 = vshll.u32 %v9691_v24, 30  ;;  %v2770_v58 = vadd.f32 -0.4999988, %v2769_v26  ;;  %v2777_v14 = vadd.f32 -0.16666654, %v2776_v45  ;;  %v1955_v15 = vadd.s32 %v1954_v42, %v1945_v37 }
 0x197   :  { %v2477_v57 = vsel %vm2475_vm9, %v2462_v54, %v2476_v63  ;;  %vm1958_vm14 = vc.u32 %v9693_v44, %v9702_v43  ;;  %v1767_v41 = vshll.u32 %v9698_v7, 16  ;;  %v1770_v31 = vsel %vm9673_vm8, 1, %v11690_v35  ;;  %v11782_v54 = vld [vmem:[#allocation40_spill] sm:$0xff] }
 0x198   :  { %v1655_v49 = vsub.s32 %v1651_v5, %v1654_v40  ;;  %v2771_v17 = vmul.f32 %v2770_v58, %v2766_v22  ;;  %v2778_v47 = vmul.f32 %v2777_v14, %v2766_v22  ;;  %v1959_v59 = vadd.s32 1, %v1955_v15 }
 0x199   :  { %v2783_v20 = vand.u32 3, %v2782_v51  ;;  %vm1773_vm1 = vc.u32 %v11778_v29, %v1767_v41  ;;  %v2480_v3 = vsel %vm2478_vm11, %v2479_v0, %v2470_v12  ;;  %v11781_v62 = vmul.u32 %v11779_v13, %v11780_v50  ;;  %v11785_v0 = vld [vmem:[#allocation34_spill] sm:$0xff] }
 0x19a   :  { %vm1656_vm15 = vcmp.lt.s32.totalorder %v1655_v49, 0  ;;  %v1657_v60 = vsub.s32 0, %v1655_v49  ;;  %v2772_v5 = vadd.f32 1.0, %v2771_v17  ;;  %v2779_v11 = vadd.f32 1.0, %v2778_v47  ;;  %v11789_v47 = vld [vmem:[#allocation18_spill] sm:$0xff] }
 0x19b   :  { %v1960_v2 = vsel %vm1958_vm14, %v1959_v59, %v1955_v15  ;;  %v2481_v9 = vsel %vm2474_vm13, %v2477_v57, %v2480_v3  ;;  %v1772_v48 = vadd.s32 %v1770_v31, %v11782_v54  ;;  %v1774_v10 = vsel %vm1773_vm1, 1, %v11690_v35  ;;  %v11786_v57 = vld [vmem:[#allocation62_spill] sm:$0xff] }
 0x19c   :  { %v1658_v22 = vsel %vm1656_vm15, %v1657_v60, %v1655_v49  ;;  %v1961_v56 = vadd.s32 %v1960_v2, %v11781_v62  ;;  %v2780_v32 = vmul.f32 %v2779_v11, %v2764_v46  ;;  %v2789_v16 = vxor.u32 2147483648, %v2772_v5  ;;  %v11792_v62 = vld [vmem:[#allocation36_spill] sm:$0xff] }
 0x19d   :  { %v1659_v34 = vclz %v1658_v22  ;;  %vm2471_vm2 = vweird.f32 %v11730_v27  ;;  %vm2781_vm3 = vweird.f32 %v11740_v36  ;;  %vm2784_vm4 = vcmp.lt.s32.totalorder %v2783_v20, 2  ;;  %v11783_v27 = vld [vmem:[#allocation29_spill] sm:$0xff]  ;;  %v11791_v22 = vld [vmem:[#allocation2_spill] sm:$0xff] }
 0x19e   :  { %v1962_v12 = vadd.s32 536870912, %v1961_v56  ;;  %vm2785_vm5 = vcmp.eq.s32.totalorder %v2783_v20, 0  ;;  %v2786_v39 = vxor.u32 2147483648, %v2780_v32  ;;  %vm2788_vm7 = vcmp.eq.s32.totalorder %v2783_v20, 2 }
 0x19f   :  { %v8249_v28 = vadd.s32 4294967294, %v1659_v34  ;;  %v2482_v21 = vsel %vm2471_vm2, nan, %v2481_v9  ;;  %v1647_v63 = vadd.s32 %v9651_v61, %v9645_v53  ;;  %v1776_v46 = vadd.s32 %v1774_v10, %v1772_v48  ;;  %v11808_v10 = vld [vmem:[#allocation12_spill] sm:$0xff] }
 0x1a0   :  { %v9726_v33 = vshrl.u32 %v1962_v12, 30  ;;  %v2787_v38 = vsel %vm2785_vm5, %v2772_v5, %v2786_v39  ;;  %v2790_v26 = vsel %vm2788_vm7, %v2789_v16, %v2780_v32  ;;  %v11784_v45 = vand.u32 65535, %v11783_v27 }
 0x1a1   :  { %vm8250_vm8 = vcmp.lt.s32.totalorder %v8249_v28, 0  ;;  %v2791_v42 = vsel %vm2784_vm4, %v2787_v38, %v2790_v26  ;;  %v1787_v58 = vshll.u32 %v11785_v0, 16  ;;  %v1766_v15 = vshrl.u32 %v11766_v23, 16 }
 0x1a2   :  { %v1785_v37 = vmul.u32 %v11784_v45, %v11775_v55  ;;  %v1662_v51 = vsel %vm8250_vm8, 0, %v8249_v28  ;;  %v1964_v40 = vshll.u32 %v9726_v33, 30  ;;  %v2792_v14 = vsel %vm2781_vm3, nan, %v2791_v42 }
 0x1a3   :  { %v1663_v53 = vsub.s32 32, %v1662_v51  ;;  %v1667_v61 = vsub.s32 4294967266, %v1662_v51  ;;  %vm9739_vm9 = vc.u32 %v11786_v57, %v2075_v8  ;;  %v4100_v55 = vpack.c.bf16 %v2792_v14, %v2482_v21 }
 0x1a4   :  { %v1965_v17 = vsub.s32 %v1961_v56, %v1964_v40  ;;  %v11790_v59 = vmov %v11784_v45  ;;  %v1664_v20 = vshll.u32 %v1655_v49, %v1662_v51  ;;  %v1777_v29 = vadd.s32 %v1776_v46, %v1766_v15 }
 0x1a5   :  { %v1783_v31 = vmul.u32 %v11790_v59, %v11789_v47  ;;  %v1665_v36 = vshrl.u32 %v1647_v63, %v1663_v53  ;;  %v1668_v60 = vadd.s32 127, %v1667_v61  ;;  %4269 = vmatpush.bf16.msra.mxu3 %v4100_v55  ;;  %v1789_v3 = vshll.u32 %v1785_v37, 16 }
 0x1a6   :  { %vm1966_vm10 = vcmp.lt.s32.totalorder %v1965_v17, 0  ;;  %v1967_v23 = vsub.s32 0, %v1965_v17  ;;  %vm1555_vm13 = vcmp.lt.s32.totalorder %v11791_v22, 0  ;;  %v1768_v50 = vshrl.u32 %v9698_v7, 16 }
 0x1a7   :  { %vm1791_vm12 = vc.u32 %v1783_v31, %v1787_v58  ;;  %v1666_v5 = vor.u32 %v1665_v36, %v1664_v20  ;;  %v1669_v11 = vshll.u32 %v1668_v60, 23  ;;  %v1793_v9 = vadd.s32 %v1787_v58, %v1783_v31 }
 0x1a8   :  { %v1792_v2 = vsel %vm1791_vm12, 1, %v11690_v35  ;;  %v1968_v13 = vsel %vm1966_vm10, %v1967_v23, %v1965_v17  ;;  %v11793_v56 = vand.u32 65535, %v11710_v19  ;;  %v2081_v48 = vadd.s32 %v2075_v8, %v11786_v57  ;;  %v11799_v23 = vld [vmem:[#allocation4_spill] sm:$0xff] }
 0x1a9   :  { %v1794_v49 = vadd.s32 %v1792_v2, %v11792_v62  ;;  %v1670_v32 = vor.u32 4788187, %v1669_v11  ;;  %v1969_v16 = vclz %v1968_v13  ;;  %vm1795_vm11 = vc.u32 %v1793_v9, %v1789_v3 }
 0x1aa   :  { %v9753_v54 = vmul.u32 %v11793_v56, %v11709_v25  ;;  %v11794_v34 = vand.u32 2147483647, %v11791_v22  ;;  %v9764_v7 = vadd.s32 %v1777_v29, %v1768_v50  ;;  %v1788_v12 = vshrl.u32 %v11785_v0, 16  ;;  %v11801_v50 = vld [vmem:[#allocation27_spill] sm:$0xff] }
 0x1ab   :  { %v1796_v19 = vsel %vm1795_vm11, 1, %v11690_v35  ;;  %v1671_v39 = vand.u32 2147483647, %v1670_v32  ;;  %v1673_v28 = vcvt.s32.f32 %v1666_v5  ;;  %v8255_v21 = vadd.s32 4294967294, %v1969_v16 }
 0x1ac   :  { %vm9760_vm14 = vcmp.le.f32.partialorder %v11794_v34, 0.7853982  ;;  %v1798_v63 = vadd.s32 %v1796_v19, %v1794_v49  ;;  %v1677_v8 = vsub.s32 4, %v9691_v24  ;;  %v1957_v46 = vadd.s32 %v9702_v43, %v9693_v44 }
 0x1ad   :  { %v2077_v38 = vshll.u32 %v9753_v54, 16  ;;  %v2080_v26 = vsel %vm9739_vm9, 1, %v11690_v35  ;;  %v1674_v27 = vmul.f32 %v1673_v28, %v1671_v39  ;;  %vm8256_vm15 = vcmp.lt.s32.totalorder %v8255_v21, 0 }
 0x1ae   :  { %v9775_v45 = vadd.s32 %v1793_v9, %v1789_v3  ;;  %v1799_v42 = vadd.s32 %v1798_v63, %v1788_v12  ;;  %v1972_v51 = vsel %vm8256_vm15, 0, %v8255_v21  ;;  %v1790_v40 = vshrl.u32 %v1785_v37, 16 }
 0x1af   :  { %v2082_v0 = vadd.s32 %v2080_v26, %v9414_v52  ;;  %vm2083_vm1 = vc.u32 %v2081_v48, %v2077_v38  ;;  %v1675_v58 = vxor.u32 2147483648, %v1674_v27  ;;  %v1973_v14 = vsub.s32 32, %v1972_v51 }
 0x1b0   :  { %v1977_v53 = vsub.s32 4294967266, %v1972_v51  ;;  %vm1803_vm2 = vc.u32 %v9764_v7, %v9775_v45  ;;  %v1974_v44 = vshll.u32 %v1965_v17, %v1972_v51  ;;  %v1800_v43 = vadd.s32 %v1799_v42, %v1790_v40  ;;  %v11806_v40 = vld [vmem:[#allocation10_spill] sm:$0xff] }
 0x1b1   :  { %v2084_v61 = vsel %vm2083_vm1, 1, %v11690_v35  ;;  %v11797_v15 = vand.u32 65535, %v11723_v30  ;;  %v1676_v37 = vsel %vm1555_vm13, %v1675_v58, %v1674_v27  ;;  %v1975_v41 = vshrl.u32 %v1957_v46, %v1973_v14 }
 0x1b2   :  { %v1978_v52 = vadd.s32 127, %v1977_v53  ;;  %v2086_v55 = vadd.s32 %v2084_v61, %v2082_v0  ;;  %v9789_v47 = vsel %vm9760_vm14, %v11791_v22, %v1676_v37  ;;  %v1804_v59 = vadd.s32 1, %v1800_v43  ;;  %v11810_v61 = vld [vmem:[#allocation11_spill] sm:$0xff]  ;;  %v11812_v37 = vld [vmem:[#allocation13_spill] sm:$0xff] }
 0x1b3   :  { %v2095_v57 = vmul.u32 %v11797_v15, %v11709_v25  ;;  %v11798_v17 = vmov %v11797_v15  ;;  %v2097_v20 = vshll.u32 %v9504_v4, 16  ;;  %v9797_v25 = vmul.f32 %v9789_v47, %v9789_v47 }
 0x1b4   :  { %v2093_v31 = vmul.u32 %v11798_v17, %v11722_v1  ;;  %v1976_v36 = vor.u32 %v1975_v41, %v1974_v44  ;;  %v1979_v60 = vshll.u32 %v1978_v52, 23  ;;  %v2076_v29 = vshrl.u32 %v11755_v18, 16  ;;  %v11800_v18 = vld [vmem:[#allocation15_spill] sm:$0xff]  ;;  %v11814_v17 = vld [vmem:[#allocation6_spill] sm:$0xff] }
 0x1b5   :  { %vm1865_vm3 = vcmp.lt.s32.totalorder %v11799_v23, 0  ;;  %v1678_v3 = vsel %vm1555_vm13, %v1677_v8, %v9691_v24  ;;  %v1805_v1 = vsel %vm1803_vm2, %v1804_v59, %v1800_v43  ;;  %v2099_v30 = vshll.u32 %v2095_v57, 16 }
 0x1b6   :  { %vm2101_vm4 = vc.u32 %v2093_v31, %v2097_v20  ;;  %v1682_v5 = vmul.f32 -0.001358992, %v9797_v25  ;;  %v1689_v11 = vmul.f32 -0.00019511016, %v9797_v25  ;;  %v1980_v2 = vor.u32 4788187, %v1979_v60 }
 0x1b7   :  { %v2087_v9 = vadd.s32 %v2086_v55, %v2076_v29  ;;  %v1983_v13 = vcvt.s32.f32 %v1976_v36  ;;  %v11802_v62 = vmul.u32 %v11800_v18, %v11801_v50  ;;  %v2102_v56 = vsel %vm2101_vm4, 1, %v11690_v35 }
 0x1b8   :  { %v2103_v24 = vadd.s32 %v2097_v20, %v2093_v31  ;;  %v1683_v48 = vadd.f32 0.041655596, %v1682_v5  ;;  %v1690_v32 = vadd.f32 0.008332121, %v1689_v11  ;;  %v1981_v16 = vand.u32 2147483647, %v1980_v2 }
 0x1b9   :  { %v1806_v49 = vadd.s32 %v1805_v1, %v11802_v62  ;;  %v2104_v34 = vadd.s32 %v2102_v56, %v9526_v6  ;;  %v11803_v12 = vand.u32 2147483647, %v11799_v23  ;;  %v2078_v28 = vshrl.u32 %v9753_v54, 16  ;;  %v11816_v20 = vld [vmem:[#allocation8_spill] sm:$0xff] }
 0x1ba   :  { %vm2105_vm7 = vc.u32 %v2103_v24, %v2099_v30  ;;  %v1680_v21 = vsel %vm9760_vm14, 0, %v1678_v3  ;;  %v1691_v63 = vmul.f32 %v1690_v32, %v9797_v25  ;;  %v1984_v8 = vmul.f32 %v1983_v13, %v1981_v16  ;;  %v11818_v5 = vld [vmem:[#allocation60_spill] sm:$0xff] }
 0x1bb   :  { %vm9816_vm5 = vcmp.le.f32.partialorder %v11803_v12, 0.7853982  ;;  %v1807_v39 = vadd.s32 536870912, %v1806_v49  ;;  %v2106_v46 = vsel %vm2105_vm7, 1, %v11690_v35  ;;  %v9827_v6 = vadd.s32 %v2087_v9, %v2078_v28  ;;  %v11819_v11 = vld [vmem:[#allocation56_spill] sm:$0xff] }
 0x1bc   :  { %v2098_v26 = vshrl.u32 %v9504_v4, 16  ;;  %v2108_v27 = vadd.s32 %v2106_v46, %v2104_v34  ;;  %v1684_v42 = vmul.f32 %v1683_v48, %v9797_v25  ;;  %v1692_v51 = vadd.f32 -0.16666654, %v1691_v63  ;;  %v11821_v34 = vld [vmem:[#allocation7_spill] sm:$0xff] }
 0x1bd   :  { %v9825_v38 = vshrl.u32 %v1807_v39, 30  ;;  %v1985_v54 = vxor.u32 2147483648, %v1984_v8  ;;  %v11807_v0 = vmax.f32 %v11806_v40, 0.0  ;;  %v11809_v58 = vmax.f32 %v11808_v10, 0.0  ;;  %v11823_v39 = vld [vmem:[#allocation9_spill] sm:$0xff] }
 0x1be   :  { %v2100_v44 = vshrl.u32 %v2095_v57, 16  ;;  %v2109_v43 = vadd.s32 %v2108_v27, %v2098_v26  ;;  %v11811_v15 = vmax.f32 %v11810_v61, 0.0  ;;  %v11813_v41 = vmax.f32 %v11812_v37, 0.0 }
 0x1bf   :  { %v9835_v14 = vpack.c.bf16 %v11809_v58, %v11807_v0  ;;  %v1809_v53 = vshll.u32 %v9825_v38, 30  ;;  %v1693_v52 = vmul.f32 %v1692_v51, %v9797_v25  ;;  %v1986_v55 = vsel %vm1865_vm3, %v1985_v54, %v1984_v8  ;;  %v11825_v8 = vld [vmem:[#allocation39_spill] sm:$0xff] }
 0x1c0   :  { %v9842_v4 = vpack.c.bf16 %v11813_v41, %v11811_v15  ;;  %v9847_v59 = vadd.s32 %v2103_v24, %v2099_v30  ;;  %v11815_v31 = vmax.f32 %v11814_v17, 0.0  ;;  %v11817_v36 = vmax.f32 %v11816_v20, 0.0 }
 0x1c1   :  { %v1987_v57 = vsub.s32 4, %v9726_v33  ;;  %v1989_v29 = vsel %vm9816_vm5, %v11799_v23, %v1986_v55  ;;  %v1810_v3 = vsub.s32 %v1806_v49, %v1809_v53  ;;  %v2110_v1 = vadd.s32 %v2109_v43, %v2100_v44 }
 0x1c2   :  { %v9853_v60 = vpack.c.bf16 %v11817_v36, %v11815_v31  ;;  %v2057_v30 = vsel %vm2051_vm6, %v11819_v11, %v11818_v5  ;;  %v1685_v9 = vadd.f32 -0.4999988, %v1684_v42  ;;  %v1991_v13 = vmul.f32 %v1989_v29, %v1989_v29 }
 0x1c3   :  { %vm2113_vm8 = vc.u32 %v9827_v6, %v9847_v59  ;;  %v1694_v18 = vadd.f32 1.0, %v1693_v52  ;;  %vm1811_vm9 = vcmp.lt.s32.totalorder %v1810_v3, 0  ;;  %v1812_v50 = vsub.s32 0, %v1810_v3 }
 0x1c4   :  { %v2114_v62 = vadd.s32 1, %v2110_v1  ;;  %v1697_v56 = vadd.s32 3, %v1680_v21  ;;  %v1992_v24 = vmul.f32 -0.001358992, %v1991_v13  ;;  %v1999_v48 = vmul.f32 -0.00019511016, %v1991_v13 }
 0x1c5   :  { %v1988_v49 = vsel %vm1865_vm3, %v1987_v57, %v9726_v33  ;;  %v1813_v32 = vsel %vm1811_vm9, %v1812_v50, %v1810_v3  ;;  %v11822_v12 = vmax.f32 %v11821_v34, 0.0  ;;  %v11824_v28 = vmax.f32 %v11823_v39, 0.0 }
 0x1c6   :  { %v2115_v16 = vsel %vm2113_vm8, %v2114_v62, %v2110_v1  ;;  %v2111_v46 = vmul.u32 %v11825_v8, %v2057_v30  ;;  %v1686_v26 = vmul.f32 %v1685_v9, %v9797_v25  ;;  %v1993_v27 = vadd.f32 0.041655596, %v1992_v24 }
 0x1c7   :  { %v9872_v63 = vpack.c.bf16 %v11824_v28, %v11822_v12  ;;  %v2000_v21 = vadd.f32 0.008332121, %v1999_v48  ;;  %v1695_v42 = vmul.f32 %v1694_v18, %v9789_v47  ;;  %v1814_v51 = vclz %v1813_v32 }
 0x1c8   :  { %v1990_v33 = vsel %vm9816_vm5, 0, %v1988_v49  ;;  %v1994_v54 = vmul.f32 %v1993_v27, %v1991_v13  ;;  %v2116_v0 = vadd.s32 %v2115_v16, %v2111_v46  ;;  %v1698_v10 = vand.u32 3, %v1697_v56 }
 0x1c9   :  { %v2001_v40 = vmul.f32 %v2000_v21, %v1991_v13  ;;  %v8252_v58 = vadd.s32 4294967294, %v1814_v51  ;;  %v1687_v53 = vadd.f32 1.0, %v1686_v26  ;;  %v1701_v15 = vxor.u32 2147483648, %v1695_v42  ;;  %v11826_v21 = vld [vmem:[#allocation3_spill] sm:$0xff] }
 0x1ca   :  { %v1995_v44 = vadd.f32 -0.4999988, %v1994_v54  ;;  %v2117_v61 = vadd.s32 536870912, %v2116_v0  ;;  %v2007_v37 = vadd.s32 3, %v1990_v33  ;;  %vm1696_vm10 = vweird.f32 %v11791_v22 }
 0x1cb   :  { %v2002_v43 = vadd.f32 -0.16666654, %v2001_v40  ;;  %vm8253_vm6 = vcmp.lt.s32.totalorder %v8252_v58, 0  ;;  %vm1700_vm12 = vcmp.eq.s32.totalorder %v1698_v10, 0  ;;  %vm2006_vm13 = vweird.f32 %v11799_v23 }
 0x1cc   :  { %v1996_v25 = vmul.f32 %v1995_v44, %v1991_v13  ;;  %v1817_v52 = vsel %vm8253_vm6, 0, %v8252_v58  ;;  %v9879_v47 = vshrl.u32 %v2117_v61, 30  ;;  %v1802_v19 = vadd.s32 %v9775_v45, %v9764_v7 }
 0x1cd   :  { %v2003_v41 = vmul.f32 %v2002_v43, %v1991_v13  ;;  %v1818_v55 = vsub.s32 32, %v1817_v52  ;;  %v1822_v17 = vsub.s32 4294967266, %v1817_v52  ;;  %v1704_v31 = vxor.u32 2147483648, %v1687_v53 }
 0x1ce   :  { %v1997_v20 = vadd.f32 1.0, %v1996_v25  ;;  %v2119_v57 = vshll.u32 %v9879_v47, 30  ;;  %v2008_v1 = vand.u32 3, %v2007_v37  ;;  %v1819_v5 = vshll.u32 %v1810_v3, %v1817_v52 }
 0x1cf   :  { %v2004_v36 = vadd.f32 1.0, %v2003_v41  ;;  %v1820_v11 = vshrl.u32 %v1802_v19, %v1818_v55  ;;  %v1823_v2 = vadd.s32 127, %v1822_v17  ;;  %v1702_v30 = vsel %vm1700_vm12, %v1687_v53, %v1701_v15 }
 0x1d0   :  { %v2014_v13 = vxor.u32 2147483648, %v1997_v20  ;;  %v2120_v18 = vsub.s32 %v2116_v0, %v2119_v57  ;;  %vm1699_vm11 = vcmp.lt.s32.totalorder %v1698_v10, 2  ;;  %vm1703_vm14 = vcmp.eq.s32.totalorder %v1698_v10, 2  ;;  %v11830_v57 = vld [vmem:[#allocation5_spill] sm:$0xff] }
 0x1d1   :  { %v2005_v9 = vmul.f32 %v2004_v36, %v1989_v29  ;;  %v1821_v50 = vor.u32 %v1820_v11, %v1819_v5  ;;  %v1824_v62 = vshll.u32 %v1823_v2, 23  ;;  %v1705_v7 = vsel %vm1703_vm14, %v1704_v31, %v1695_v42 }
 0x1d2   :  { %vm2121_vm15 = vcmp.lt.s32.totalorder %v2120_v18, 0  ;;  %v2122_v56 = vsub.s32 0, %v2120_v18  ;;  %v1706_v24 = vsel %vm1699_vm11, %v1702_v30, %v1705_v7  ;;  %vm2010_vm1 = vcmp.eq.s32.totalorder %v2008_v1, 0 }
 0x1d3   :  { %v2011_v45 = vxor.u32 2147483648, %v2005_v9  ;;  %vm2013_vm2 = vcmp.eq.s32.totalorder %v2008_v1, 2  ;;  %v1825_v48 = vor.u32 4788187, %v1824_v62  ;;  %vm2009_vm3 = vcmp.lt.s32.totalorder %v2008_v1, 2 }
 0x1d4   :  { %v2015_v49 = vsel %vm2013_vm2, %v2014_v13, %v2005_v9  ;;  %v2123_v32 = vsel %vm2121_vm15, %v2122_v56, %v2120_v18  ;;  %v1828_v34 = vcvt.s32.f32 %v1821_v50  ;;  %v1707_v39 = vsel %vm1696_vm10, nan, %v1706_v24  ;;  %v8408_v9 = vld [vmem:[%s11409_s3] sm:$0xff] }
 0x1d5   :  { %v2012_v3 = vsel %vm2010_vm1, %v1997_v20, %v2011_v45  ;;  %v1826_v29 = vand.u32 2147483647, %v1825_v48  ;;  %v2124_v12 = vclz %v2123_v32  ;;  %vm1710_vm5 = vcmp.lt.s32.totalorder %v11826_v21, 0 }
 0x1d6   :  { %v2016_v16 = vsel %vm2009_vm3, %v2012_v3, %v2015_v49  ;;  %v11827_v42 = vand.u32 2147483647, %v11826_v21  ;;  %v2112_v23 = vadd.s32 %v9847_v59, %v9827_v6  ;;  %v1832_v31 = vsub.s32 4, %v9825_v38 }
 0x1d7   :  { %v2017_v28 = vsel %vm2006_vm13, nan, %v2016_v16  ;;  %v1829_v46 = vmul.f32 %v1828_v34, %v1826_v29  ;;  %v8258_v26 = vadd.s32 4294967294, %v2124_v12  ;;  %vm2020_vm8 = vcmp.lt.s32.totalorder %v11830_v57, 0 }
 0x1d8   :  { %v4097_v8 = vpack.c.bf16 %v2017_v28, %v1707_v39  ;;  %vm9893_vm7 = vcmp.le.f32.partialorder %v11827_v42, 0.7853982  ;;  %v11831_v1 = vand.u32 2147483647, %v11830_v57  ;;  %v1833_v11 = vsel %vm1710_vm5, %v1832_v31, %v9825_v38 }
 0x1d9   :  { %v1830_v27 = vxor.u32 2147483648, %v1829_v46  ;;  %vm8259_vm4 = vcmp.lt.s32.totalorder %v8258_v26, 0  ;;  %v2142_v2 = vsub.s32 4, %v9879_v47  ;;  %vm4207_vm6 = vcmask 785408  }
 0x1da   :  { %4231 = vmatpush.bf16.msra.mxu2 %v4097_v8  ;;  %v2127_v33 = vsel %vm8259_vm4, 0, %v8258_v26  ;;  %vm9910_vm9 = vcmp.le.f32.partialorder %v11831_v1, 0.7853982  ;;  %v1835_v50 = vsel %vm9893_vm7, 0, %v1833_v11  ;;  %vm1851_vm1 = vweird.f32 %v11826_v21 }
 0x1db   :  { %v1831_v22 = vsel %vm1710_vm5, %v1830_v27, %v1829_v46  ;;  %v2128_v54 = vsub.s32 32, %v2127_v33  ;;  %v2132_v40 = vsub.s32 4294967266, %v2127_v33  ;;  %v2129_v58 = vshll.u32 %v2120_v18, %v2127_v33 }
 0x1dc   :  { %v1834_v0 = vsel %vm9893_vm7, %v11826_v21, %v1831_v22  ;;  %v2143_v45 = vsel %vm2020_vm8, %v2142_v2, %v9879_v47  ;;  %v1852_v3 = vadd.s32 3, %v1835_v50  ;;  %v8409_v22 = vld [vmem:[%s11409_s3 + $0x8] sm:$0xff]  ;;  %vm2161_vm2 = vweird.f32 %v11830_v57  ;;  %v8411_v21 = vld [vmem:[%s11409_s3 + $0x18] sm:$0xff] }
 0x1dd   :  { %v1836_v10 = vmul.f32 %v1834_v0, %v1834_v0  ;;  %v2130_v53 = vshrl.u32 %v2112_v23, %v2128_v54  ;;  %v2133_v44 = vadd.s32 127, %v2132_v40  ;;  %v2145_v32 = vsel %vm9910_vm9, 0, %v2143_v45 }
 0x1de   :  { %4232 = vmatpush.bf16.msra.mxu2 %v9835_v14  ;;  %v1853_v28 = vand.u32 3, %v1852_v3  ;;  %v2162_v8 = vadd.s32 3, %v2145_v32 }
 0x1df   :  { %v1837_v43 = vmul.f32 -0.001358992, %v1836_v10  ;;  %v1844_v61 = vmul.f32 -0.00019511016, %v1836_v10  ;;  %v2131_v15 = vor.u32 %v2130_v53, %v2129_v58  ;;  %v2134_v37 = vshll.u32 %v2133_v44, 23 }
 0x1e0   :  { %vm1855_vm10 = vcmp.eq.s32.totalorder %v1853_v28, 0  ;;  %v2163_v33 = vand.u32 3, %v2162_v8  ;;  %vm1858_vm12 = vcmp.eq.s32.totalorder %v1853_v28, 2  ;;  %vm1854_vm13 = vcmp.lt.s32.totalorder %v1853_v28, 2 }
 0x1e1   :  { %v1845_v25 = vadd.f32 0.008332121, %v1844_v61  ;;  %v2135_v41 = vor.u32 4788187, %v2134_v37  ;;  %v1838_v6 = vadd.f32 0.041655596, %v1837_v43  ;;  %v2138_v19 = vcvt.s32.f32 %v2131_v15 }
 0x1e2   :  { %4233 = vmatpush.bf16.msra.mxu2 %v9853_v60  ;;  %vm2165_vm11 = vcmp.eq.s32.totalorder %v2163_v33, 0  ;;  %vm2168_vm14 = vcmp.eq.s32.totalorder %v2163_v33, 2  ;;  %vm2164_vm15 = vcmp.lt.s32.totalorder %v2163_v33, 2 }
 0x1e3   :  { %v1846_v59 = vmul.f32 %v1845_v25, %v1836_v10  ;;  %v2136_v52 = vand.u32 2147483647, %v2135_v41  ;;  %v1839_v20 = vmul.f32 %v1838_v6, %v1836_v10  ;;  %v8410_v25 = vld [vmem:[%s11409_s3 + $0x10] sm:$0xff] }
 0x1e5   :  { %v1847_v55 = vadd.f32 -0.16666654, %v1846_v59  ;;  %v2139_v17 = vmul.f32 %v2138_v19, %v2136_v52  ;;  %v1840_v13 = vadd.f32 -0.4999988, %v1839_v20  ;;  %8320 = vmatmul.msk.bf16.vlgmr.msra.gmra.mxu2 %vm4207_vm6, %v8408_v9 }
 0x1e7   :  { %v2140_v36 = vxor.u32 2147483648, %v2139_v17  ;;  %v1848_v14 = vmul.f32 %v1847_v55, %v1836_v10  ;;  %v1841_v56 = vmul.f32 %v1840_v13, %v1836_v10  ;;  %v4140_v55 = vpop.permute.xlu2 %4139 }
 0x1e9   :  { %v2141_v60 = vsel %vm2020_vm8, %v2140_v36, %v2139_v17  ;;  %v1849_v62 = vadd.f32 1.0, %v1848_v14  ;;  %v1842_v34 = vadd.f32 1.0, %v1841_v56 }
 0x1ea   :  { %v2144_v30 = vsel %vm9910_vm9, %v11830_v57, %v2141_v60  ;;  %v9977_v57 = vpop.permute.xlu1 %4154  ;;  %v9981_v60 = vpop.permute.xlu0 %4149 }
 0x1eb   :  { %v2146_v18 = vmul.f32 %v2144_v30, %v2144_v30  ;;  %v1850_v49 = vmul.f32 %v1849_v62, %v1834_v0  ;;  %v1859_v42 = vxor.u32 2147483648, %v1842_v34 }
 0x1ed   :  { %v2147_v38 = vmul.f32 -0.001358992, %v2146_v18  ;;  %v2154_v7 = vmul.f32 -0.00019511016, %v2146_v18  ;;  %v1856_v46 = vxor.u32 2147483648, %v1850_v49  ;;  %v1860_v0 = vsel %vm1858_vm12, %v1859_v42, %v1850_v49 }
 0x1ee   :  { %v11837_v49 = vmov 1326507024  }
 0x1ef   :  { %v2148_v24 = vadd.f32 0.041655596, %v2147_v38  ;;  %v2155_v48 = vadd.f32 0.008332121, %v2154_v7  ;;  %v1857_v23 = vsel %vm1855_vm10, %v1842_v34, %v1856_v46 }
 0x1f0   :  { %v1861_v58 = vsel %vm1854_vm13, %v1857_v23, %v1860_v0  ;;  %v11841_v23 = vmov 2475754826  }
 0x1f1   :  { %v2149_v16 = vmul.f32 %v2148_v24, %v2146_v18  ;;  %v2156_v29 = vmul.f32 %v2155_v48, %v2146_v18  ;;  %v1862_v61 = vsel %vm1851_vm1, nan, %v1861_v58 }
 0x1f2   :  { %v9983_v2 = vpop.permute.xlu1 %4169 }
 0x1f3   :  { %v2150_v12 = vadd.f32 -0.4999988, %v2149_v16  ;;  %v2157_v39 = vadd.f32 -0.16666654, %v2156_v29  ;;  %v11838_v29 = vmov 920167782  }
 0x1f5   :  { %v2151_v26 = vmul.f32 %v2150_v12, %v2146_v18  ;;  %v2158_v27 = vmul.f32 %v2157_v39, %v2146_v18  ;;  %8321 = vmatmul.msk.bf16.gmra.mxu2 %vm4207_vm6, %v8409_v22  ;;  %v9989_v18 = vpop.permute.xlu0 %4144 }
 0x1f7   :  { %v2152_v47 = vadd.f32 1.0, %v2151_v26  ;;  %v2159_v51 = vadd.f32 1.0, %v2158_v27  ;;  %v11839_v27 = vmov 2131351028  }
 0x1f9   :  { %v2160_v54 = vmul.f32 %v2159_v51, %v2144_v30  ;;  %v2169_v40 = vxor.u32 2147483648, %v2152_v47  ;;  %v9985_v30 = vpop.permute.xlu2 %4174 }
 0x1fa   :  { %v9991_v62 = vpop.permute.xlu1 %4164 }
 0x1fb   :  { %v2166_v10 = vxor.u32 2147483648, %v2160_v54  ;;  %v2170_v44 = vsel %vm2168_vm14, %v2169_v40, %v2160_v54 }
 0x1fd   :  { %v2167_v53 = vsel %vm2165_vm11, %v2152_v47, %v2166_v10  ;;  %v10004_v39 = vpop.permute.xlu0 %4159  ;;  %v11840_v47 = vmov 2102212464  }
 0x1fe   :  { %v2171_v43 = vsel %vm2164_vm15, %v2167_v53, %v2170_v44 }
 0x1ff   :  { %v2172_v15 = vsel %vm2161_vm2, nan, %v2171_v43 }
 0x200   :  { %v4098_v37 = vpack.c.bf16 %v2172_v15, %v1862_v61  ;;  %v11843_v15 = vmov 683565275  }
 0x201   :  { %v9996_v24 = vpop.permute.xlu2 %4129 }
 0x202   :  { %4270 = vmatpush.bf16.msra.mxu3 %v4098_v37 }
 0x205   :  { %8322 = vmatmul.msk.bf16.gmra.mxu2 %vm4207_vm6, %v8410_v25 }
 0x206   :  { %4271 = vmatpush.bf16.msra.mxu3 %v9842_v4  ;;  %v8412_v4 = vld [vmem:[%s11409_s3 + $0x20] sm:$0xff] }
 0x20a   :  { %4272 = vmatpush.bf16.msra.mxu3 %v9872_v63  ;;  %v8413_v63 = vld [vmem:[%s11409_s3 + $0x28] sm:$0xff] }
 0x20d   :  { %8326 = vmatmul.msk.bf16.vlgmr.msra.gmra.mxu3 %vm4207_vm6, %v8408_v9 }
 0x215   :  { %8323 = vmatmul.msk.bf16.gmra.mxu2 %vm4207_vm6, %v8411_v21 }
 0x21d   :  { %8327 = vmatmul.msk.bf16.gmra.mxu3 %vm4207_vm6, %v8409_v22  ;;  %v4120_v22 = vpop.permute.xlu1 %4119 }
 0x225   :  { %8324 = vmatmul.msk.bf16.gmra.mxu2 %vm4207_vm6, %v8412_v4 }
 0x22d   :  { %8328 = vmatmul.msk.bf16.gmra.mxu3 %vm4207_vm6, %v8410_v25 }
 0x235   :  { %8325 = vmatmul.msk.bf16.gmra.mxu2 %vm4207_vm6, %v8413_v63 }
 0x23d   :  { %8329 = vmatmul.msk.bf16.gmra.mxu3 %vm4207_vm6, %v8411_v21 }
 0x24d   :  { %8330 = vmatmul.msk.bf16.gmra.mxu3 %vm4207_vm6, %v8412_v4 }
 0x25d   :  { %8331 = vmatmul.msk.bf16.gmra.mxu3 %vm4207_vm6, %v8413_v63  ;;  %v4125_v63 = vpop.permute.xlu2 %4124 }
 0x268   :  { %v4235_v41 = vpop.f32.mrf.mxu2 }
 0x269   :  { %v10012_v58 = vadd.f32 %v4235_v41, %v4120_v22 }
 0x26b   :  { %11842 = vst [vmem:[#allocation49_spill] sm:$0xff] %v10012_v58 }
 0x270   :  { %v9964_v6 = vpop.f32.mrf.mxu2 }
 0x278   :  { %v9966_v59 = vpop.f32.mrf.mxu2 }
 0x280   :  { %v9968_v52 = vpop.f32.mrf.mxu2 }
 0x288   :  { %v4245_v19 = vpop.f32.mrf.mxu2 }
 0x289   :  { %v9972_v31 = vadd.f32 %v4245_v19, %v4140_v55 }
 0x28b   :  { %11834 = vst [vmem:[#allocation67_spill] sm:$0xff] %v9972_v31  ;;  %v5547_v20 = vand.u32 2139095040, %v9972_v31  ;;  %v11516_v28 = vand.u32 2147483647, %v9972_v31 }
 0x28d   :  { %v5548_v14 = vshrl.u32 %v5547_v20, 23  ;;  %v5551_v61 = vand.u32 8388607, %v11516_v28 }
 0x28f   :  { %v8356_v1 = vadd.s32 4294967169, %v5548_v14  ;;  %v10021_v14 = vadd.f32 %v9964_v6, %v4125_v63 }
 0x290   :  { %v9970_v17 = vpop.f32.mrf.mxu3  ;;  %v4247_v7 = vpop.f32.mrf.mxu2 }
 0x291   :  { %v5554_v11 = vadd.s32 1, %v8356_v1  ;;  %v9994_v56 = vadd.f32 %v4247_v7, %v9989_v18  ;;  %11844 = vst [vmem:[#allocation57_spill] sm:$0xff] %v10021_v14 }
 0x293   :  { %vm5555_vm3 = vcmp.gt.s32.totalorder %v5554_v11, 0  ;;  %11835 = vst [vmem:[#allocation65_spill] sm:$0xff] %v9994_v56  ;;  %v5857_v3 = vand.u32 2139095040, %v9994_v56 }
 0x294   :  { %v5556_v13 = vsel %vm5555_vm3, %v5554_v11, 0  ;;  %v5552_v11 = vor.u32 8388608, %v5551_v61 }
 0x295   :  { %v5558_v50 = vand.u32 31, %v5556_v13  ;;  %v5858_v12 = vshrl.u32 %v5857_v3, 23  ;;  %v5557_v26 = vshrl.u32 %v5556_v13, 5 }
 0x297   :  { %v5559_v38 = vsub.s32 32, %v5558_v50  ;;  %v5573_v8 = vshll.u32 %v11838_v29, %v5558_v50  ;;  %v5570_v33 = vshll.u32 %v11840_v47, %v5558_v50  ;;  %v8362_v10 = vadd.s32 4294967169, %v5858_v12 }
 0x298   :  { %v9975_v36 = vpop.f32.mrf.mxu3  ;;  %v5564_v53 = vshll.u32 %v11841_v23, %v5558_v50  ;;  %v5567_v44 = vshll.u32 %v11839_v27, %v5558_v50  ;;  %v5561_v37 = vshll.u32 %v11843_v15, %v5558_v50  ;;  %vm5579_vm4 = vcmp.lt.s32.totalorder %v5557_v26, 4 }
 0x299   :  { %v5574_v32 = vshrl.u32 %v11837_v49, %v5559_v38  ;;  %v5571_v34 = vshrl.u32 %v11838_v29, %v5559_v38  ;;  %v5565_v42 = vshrl.u32 %v11839_v27, %v5559_v38  ;;  %v5568_v51 = vshrl.u32 %v11840_v47, %v5559_v38 }
 0x29a   :  { %v5562_v54 = vshrl.u32 %v11841_v23, %v5559_v38  ;;  %v5864_v41 = vadd.s32 1, %v8362_v10  ;;  %vm5576_vm7 = vcmp.lt.s32.totalorder %v5557_v26, 1  ;;  %vm5578_vm8 = vcmp.lt.s32.totalorder %v5557_v26, 3 }
 0x29b   :  { %v5575_v40 = vor.u32 %v5574_v32, %v5573_v8  ;;  %v5572_v43 = vor.u32 %v5571_v34, %v5570_v33  ;;  %v5566_v21 = vor.u32 %v5565_v42, %v5564_v53  ;;  %v5569_v4 = vor.u32 %v5568_v51, %v5567_v44  ;;  %v4135_v32 = vpop.permute.xlu0 %4134 }
 0x29c   :  { %v5563_v19 = vor.u32 %v5562_v54, %v5561_v37  ;;  %v10025_v50 = vadd.f32 %v9966_v59, %v9996_v24  ;;  %vm5865_vm9 = vcmp.gt.s32.totalorder %v5864_v41, 0  ;;  %v10033_v12 = vadd.f32 %v9970_v17, %v4120_v22 }
 0x29d   :  { %v5585_v1 = vsel %vm5579_vm4, %v5572_v43, 920167782  ;;  %v5581_v7 = vsel %vm5579_vm4, %v5569_v4, 2102212464  ;;  %v10036_v8 = vadd.f32 %v9968_v52, %v4135_v32  ;;  %vm5577_vm10 = vcmp.lt.s32.totalorder %v5557_v26, 2 }
 0x29e   :  { %11845 = vst [vmem:[#allocation66_spill] sm:$0xff] %v10025_v50  ;;  %v5584_v6 = vsel %vm5576_vm7, %v5563_v19, %v5566_v21  ;;  %v5586_v34 = vsel %vm5578_vm8, %v5569_v4, %v5585_v1  ;;  %v5582_v42 = vsel %vm5578_vm8, %v5566_v21, %v5581_v7  ;;  %v11515_v17 = vand.u32 2147483647, %v9994_v56 }
 0x29f   :  { %11846 = vst [vmem:[#allocation61_spill] sm:$0xff] %v10033_v12  ;;  %v10046_v33 = vsel %vm5577_vm10, %v5584_v6, %v5586_v34  ;;  %v5866_v22 = vsel %vm5865_vm9, %v5864_v41, 0 }
 0x2a0   :  { %v9979_v5 = vpop.f32.mrf.mxu3  ;;  %11847 = vst [vmem:[#allocation33_spill] sm:$0xff] %v10036_v8  ;;  %v5618_v37 = vshrl.u32 %v10046_v33, 16 }
 0x2a1   :  { %11850 = vst [vmem:[#allocation59_spill] sm:$0xff] %v10046_v33  ;;  %v10057_v26 = vadd.f32 %v9979_v5, %v9996_v24 }
 0x2a3   :  { %11852 = vst [vmem:[#allocation24_spill] sm:$0xff] %v10057_v26 }
 0x2a8   :  { %v9987_v9 = vpop.f32.mrf.mxu3 }
 0x2a9   :  { %v10084_v41 = vadd.f32 %v9987_v9, %v4135_v32 }
 0x2ab   :  { %11856 = vst [vmem:[#allocation30_spill] sm:$0xff] %v10084_v41 }
 0x2b0   :  { %v4284_v45 = vpop.f32.mrf.mxu3 }
 0x2b1   :  { %v9998_v48 = vadd.f32 %v4284_v45, %v4140_v55  ;;  %v5589_v55 = vsel %vm5579_vm4, %v5575_v40, 1326507024  ;;  %v5588_v45 = vsel %vm5576_vm7, %v5566_v21, %v5569_v4  ;;  %v10052_v40 = vadd.f32 %v9975_v36, %v4125_v63 }
 0x2b2   :  { %v5590_v3 = vsel %vm5578_vm8, %v5572_v43, %v5589_v55  ;;  %v5861_v63 = vand.u32 8388607, %v11515_v17 }
 0x2b3   :  { %11836 = vst [vmem:[#allocation68_spill] sm:$0xff] %v9998_v48  ;;  %v5702_v16 = vand.u32 2139095040, %v9998_v48  ;;  %v10042_v51 = vsel %vm5577_vm10, %v5588_v45, %v5590_v3  ;;  %v11514_v54 = vand.u32 2147483647, %v9998_v48 }
 0x2b4   :  { %11848 = vst [vmem:[#allocation58_spill] sm:$0xff] %v10042_v51  ;;  %v5596_v44 = vshrl.u32 %v10042_v51, 16  ;;  %v11517_v36 = vand.u32 65535, %v10042_v51 }
 0x2b5   :  { %v5703_v46 = vshrl.u32 %v5702_v16, 23  ;;  %v5560_v16 = vshrl.u32 %v11843_v15, %v5559_v38  ;;  %v10044_v38 = vshll.u32 %v5552_v11, 8  ;;  %11851 = vst [vmem:[#allocation23_spill] sm:$0xff] %v10052_v40  ;;  %v5706_v4 = vand.u32 8388607, %v11514_v54 }
 0x2b7   :  { %v8359_v0 = vadd.s32 4294967169, %v5703_v46  ;;  %v5580_v46 = vsel %vm5576_vm7, %v5560_v16, %v5563_v19  ;;  %11849 = vst [vmem:[#allocation48_spill] sm:$0xff] %v10044_v38  ;;  %v10072_v5 = vand.u32 65535, %v10044_v38  ;;  %v10075_v24 = vshrl.u32 %v10044_v38, 16 }
 0x2b8   :  { %v10060_v53 = vsel %vm5577_vm10, %v5580_v46, %v5582_v42  ;;  %v4286_v21 = vpop.f32.mrf.mxu3  ;;  %v5707_v34 = vor.u32 8388608, %v5706_v4  ;;  %v5862_v42 = vor.u32 8388608, %v5861_v63 }
 0x2b9   :  { %v5709_v25 = vadd.s32 1, %v8359_v0  ;;  %11853 = vst [vmem:[#allocation46_spill] sm:$0xff] %v10060_v53  ;;  %v10089_v11 = vmul.u32 %v5596_v44, %v10072_v5  ;;  %v10095_v3 = vadd.f32 %v4286_v21, %v9989_v18  ;;  %v10100_v16 = vmul.u32 %v11517_v36, %v10072_v5 }
 0x2ba   :  { %11854 = vst [vmem:[#allocation17_spill] sm:$0xff] %v10072_v5  ;;  %v10103_v9 = vmul.u32 %v5596_v44, %v10075_v24  ;;  %v10106_v32 = vmul.u32 %v5618_v37, %v10072_v5  ;;  %v10136_v10 = vshll.u32 %v5707_v34, 8 }
 0x2bb   :  { %vm5710_vm5 = vcmp.gt.s32.totalorder %v5709_v25, 0  ;;  %11855 = vst [vmem:[#allocation20_spill] sm:$0xff] %v10075_v24  ;;  %v6012_v52 = vand.u32 2139095040, %v10095_v3 }
 0x2bc   :  { %v5711_v13 = vsel %vm5710_vm5, %v5709_v25, 0  ;;  %v10069_v25 = vand.u32 31, %v5866_v22  ;;  %11857 = vst [vmem:[#allocation25_spill] sm:$0xff] %v10089_v11 }
 0x2bd   :  { %v10038_v59 = vand.u32 31, %v5711_v13  ;;  %11858 = vst [vmem:[#allocation64_spill] sm:$0xff] %v10095_v3  ;;  %v10111_v46 = vshrl.u32 %v5711_v13, 5  ;;  %v10124_v13 = vmul.u32 %v5618_v37, %v10075_v24  ;;  %v10138_v37 = vshrl.u32 %v5866_v22, 5 }
 0x2be   :  { %11859 = vst [vmem:[#allocation22_spill] sm:$0xff] %v10100_v16  ;;  %v10109_v6 = vsub.s32 32, %v10069_v25  ;;  %v5883_v28 = vshll.u32 %v11838_v29, %v10069_v25 }
 0x2bf   :  { %v10064_v43 = vsub.s32 32, %v10038_v59  ;;  %11860 = vst [vmem:[#allocation50_spill] sm:$0xff] %v10103_v9  ;;  %v5728_v18 = vshll.u32 %v11838_v29, %v10038_v59  ;;  %v5719_v63 = vshll.u32 %v11841_v23, %v10038_v59  ;;  %v5722_v20 = vshll.u32 %v11839_v27, %v10038_v59 }
 0x2c0   :  { %11861 = vst [vmem:[#allocation51_spill] sm:$0xff] %v10106_v32  ;;  %v5725_v21 = vshll.u32 %v11840_v47, %v10038_v59  ;;  %v5884_v55 = vshrl.u32 %v11837_v49, %v10109_v6  ;;  %vm5734_vm12 = vcmp.lt.s32.totalorder %v10111_v46, 4  ;;  %v5875_v7 = vshrl.u32 %v11839_v27, %v10109_v6 }
 0x2c1   :  { %v5729_v45 = vshrl.u32 %v11837_v49, %v10064_v43  ;;  %v5720_v54 = vshrl.u32 %v11839_v27, %v10064_v43  ;;  %v5723_v44 = vshrl.u32 %v11840_v47, %v10064_v43  ;;  %v5726_v19 = vshrl.u32 %v11838_v29, %v10064_v43  ;;  %11862 = vst [vmem:[#allocation16_spill] sm:$0xff] %v10124_v13 }
 0x2c2   :  { %11863 = vst [vmem:[#allocation26_spill] sm:$0xff] %v10136_v10  ;;  %v5878_v34 = vshrl.u32 %v11840_v47, %v10109_v6  ;;  %v5881_v22 = vshrl.u32 %v11838_v29, %v10109_v6  ;;  %vm5731_vm13 = vcmp.lt.s32.totalorder %v10111_v46, 1  ;;  %vm5733_vm11 = vcmp.lt.s32.totalorder %v10111_v46, 3 }
 0x2c3   :  { %v5730_v4 = vor.u32 %v5729_v45, %v5728_v18  ;;  %v10140_v45 = vshll.u32 %v5862_v42, 8  ;;  %v5721_v18 = vor.u32 %v5720_v54, %v5719_v63  ;;  %v5724_v0 = vor.u32 %v5723_v44, %v5722_v20  ;;  %v4250_v42 = vpop.f32.mrf.mxu2 }
 0x2c4   :  { %v5727_v17 = vor.u32 %v5726_v19, %v5725_v21  ;;  %v5874_v20 = vshll.u32 %v11841_v23, %v10069_v25  ;;  %v5877_v54 = vshll.u32 %v11839_v27, %v10069_v25  ;;  %v5885_v19 = vor.u32 %v5884_v55, %v5883_v28 }
 0x2c5   :  { %11864 = vst [vmem:[#allocation31_spill] sm:$0xff] %v10140_v45  ;;  %v5744_v1 = vsel %vm5734_vm12, %v5730_v4, 1326507024  ;;  %v6013_v21 = vshrl.u32 %v6012_v52, 23  ;;  %v5717_v44 = vshrl.u32 %v11841_v23, %v10064_v43  ;;  %v5880_v4 = vshll.u32 %v11840_v47, %v10069_v25 }
 0x2c6   :  { %v5743_v63 = vsel %vm5731_vm13, %v5721_v18, %v5724_v0  ;;  %v5745_v36 = vsel %vm5733_vm11, %v5727_v17, %v5744_v1  ;;  %v10167_v28 = vadd.f32 %v4250_v42, %v9981_v60  ;;  %v5876_v52 = vor.u32 %v5875_v7, %v5874_v20 }
 0x2c7   :  { %v8365_v61 = vadd.s32 4294967169, %v6013_v21  ;;  %v5879_v55 = vor.u32 %v5878_v34, %v5877_v54  ;;  %v5882_v48 = vor.u32 %v5881_v22, %v5880_v4  ;;  %vm5889_vm14 = vcmp.lt.s32.totalorder %v10138_v37, 4 }
 0x2c8   :  { %11865 = vst [vmem:[#allocation43_spill] sm:$0xff] %v10167_v28  ;;  %v5716_v40 = vshll.u32 %v11843_v15, %v10038_v59  ;;  %vm5732_vm15 = vcmp.lt.s32.totalorder %v10111_v46, 2  ;;  %v5872_v12 = vshrl.u32 %v11841_v23, %v10109_v6  ;;  %v5899_v1 = vsel %vm5889_vm14, %v5885_v19, 1326507024 }
 0x2c9   :  { %v10179_v42 = vsel %vm5732_vm15, %v5743_v63, %v5745_v36  ;;  %v11523_v7 = vand.u32 2147483647, %v10095_v3  ;;  %v6019_v34 = vadd.s32 1, %v8365_v61  ;;  %v6167_v22 = vand.u32 2139095040, %v10167_v28 }
 0x2ca   :  { %11866 = vst [vmem:[#allocation38_spill] sm:$0xff] %v10179_v42  ;;  %v5718_v20 = vor.u32 %v5717_v44, %v5716_v40  ;;  %v5871_v59 = vshll.u32 %v11843_v15, %v10069_v25  ;;  %vm5886_vm1 = vcmp.lt.s32.totalorder %v10138_v37, 1  ;;  %vm5888_vm2 = vcmp.lt.s32.totalorder %v10138_v37, 3 }
 0x2cb   :  { %v5740_v54 = vsel %vm5734_vm12, %v5727_v17, 920167782  ;;  %v5898_v36 = vsel %vm5886_vm1, %v5876_v52, %v5879_v55  ;;  %v5900_v19 = vsel %vm5888_vm2, %v5882_v48, %v5899_v1  ;;  %v6168_v61 = vshrl.u32 %v6167_v22, 23 }
 0x2cc   :  { %v5715_v40 = vshrl.u32 %v11843_v15, %v10064_v43  ;;  %v10196_v21 = vand.u32 65535, %v10136_v10  ;;  %v5751_v25 = vshrl.u32 %v10179_v42, 16  ;;  %v5873_v44 = vor.u32 %v5872_v12, %v5871_v59 }
 0x2cd   :  { %v5870_v4 = vshrl.u32 %v11843_v15, %v10109_v6  ;;  %vm5887_vm3 = vcmp.lt.s32.totalorder %v10138_v37, 2  ;;  %v5895_v17 = vsel %vm5889_vm14, %v5882_v48, 920167782  ;;  %vm6020_vm4 = vcmp.gt.s32.totalorder %v6019_v34, 0 }
 0x2ce   :  { %11867 = vst [vmem:[#allocation63_spill] sm:$0xff] %v10196_v21  ;;  %v5736_v63 = vsel %vm5734_vm12, %v5724_v0, 2102212464  ;;  %v5739_v43 = vsel %vm5731_vm13, %v5718_v20, %v5721_v18  ;;  %v5741_v1 = vsel %vm5733_vm11, %v5724_v0, %v5740_v54  ;;  %v10212_v12 = vsel %vm5887_vm3, %v5898_v36, %v5900_v19 }
 0x2cf   :  { %11868 = vst [vmem:[#allocation52_spill] sm:$0xff] %v10212_v12  ;;  %v5735_v6 = vsel %vm5731_vm13, %v5715_v40, %v5718_v20  ;;  %v5891_v48 = vsel %vm5889_vm14, %v5879_v55, 2102212464  ;;  %v6016_v22 = vand.u32 8388607, %v11523_v7  ;;  %v8368_v59 = vadd.s32 4294967169, %v6168_v61 }
 0x2d0   :  { %v10221_v14 = vmul.u32 %v5751_v25, %v10196_v21  ;;  %v5894_v0 = vsel %vm5886_vm1, %v5873_v44, %v5876_v52  ;;  %v5896_v54 = vsel %vm5888_vm2, %v5879_v55, %v5895_v17  ;;  %v6021_v36 = vsel %vm6020_vm4, %v6019_v34, 0 }
 0x2d1   :  { %v5737_v20 = vsel %vm5733_vm11, %v5721_v18, %v5736_v63  ;;  %v10231_v19 = vsel %vm5732_vm15, %v5739_v43, %v5741_v1  ;;  %v5906_v61 = vshrl.u32 %v10212_v12, 16  ;;  %v11871_v7 = vshll.u32 %v10089_v11, 16 }
 0x2d2   :  { %11869 = vst [vmem:[#allocation55_spill] sm:$0xff] %v10221_v14  ;;  %v5890_v55 = vsel %vm5886_vm1, %v5870_v4, %v5873_v44  ;;  %v5892_v34 = vsel %vm5888_vm2, %v5876_v52, %v5891_v48  ;;  %v10245_v18 = vand.u32 65535, %v10140_v45  ;;  %v10249_v17 = vsel %vm5887_vm3, %v5894_v0, %v5896_v54 }
 0x2d3   :  { %11870 = vst [vmem:[#allocation45_spill] sm:$0xff] %v10231_v19  ;;  %v10238_v3 = vadd.s32 %v11871_v7, %v10100_v16  ;;  %v6017_v63 = vor.u32 8388608, %v6016_v22  ;;  %v6023_v43 = vand.u32 31, %v6021_v36  ;;  %v6174_v1 = vadd.s32 1, %v8368_v59 }
 0x2d4   :  { %11873 = vst [vmem:[#allocation42_spill] sm:$0xff] %v10245_v18  ;;  %v10253_v7 = vsel %vm5732_vm15, %v5735_v6, %v5737_v20  ;;  %v5773_v44 = vshrl.u32 %v10231_v19, 16  ;;  %v10258_v52 = vshrl.u32 %v10140_v45, 16  ;;  %v10261_v4 = vshrl.u32 %v10136_v10, 16 }
 0x2d5   :  { %11872 = vst [vmem:[#allocation53_spill] sm:$0xff] %v10238_v3  ;;  %v11878_v48 = vand.u32 65535, %v10179_v42  ;;  %v10269_v59 = vmul.u32 %v5906_v61, %v10245_v18  ;;  %vm6175_vm5 = vcmp.gt.s32.totalorder %v6174_v1, 0  ;;  %v10273_v46 = vsel %vm5887_vm3, %v5890_v55, %v5892_v34 }
 0x2d6   :  { %11874 = vst [vmem:[#allocation32_spill] sm:$0xff] %v10249_v17  ;;  %v11531_v6 = vand.u32 65535, %v10212_v12  ;;  %v5928_v0 = vshrl.u32 %v10249_v17, 16  ;;  %v6176_v54 = vsel %vm6175_vm5, %v6174_v1, 0  ;;  %v10280_v58 = vshll.u32 %v6017_v63, 8 }
 0x2d7   :  { %11875 = vst [vmem:[#allocation37_spill] sm:$0xff] %v10253_v7  ;;  %v10266_v22 = vmul.u32 %v11878_v48, %v10196_v21  ;;  %v6024_v48 = vsub.s32 32, %v6023_v43  ;;  %v10283_v41 = vmul.u32 %v5751_v25, %v10261_v4  ;;  %v11884_v37 = vshll.u32 %v10221_v14, 16 }
 0x2d8   :  { %11876 = vst [vmem:[#allocation14_spill] sm:$0xff] %v10258_v52  ;;  %v10291_v34 = vmul.u32 %v5773_v44, %v10196_v21  ;;  %v10294_v1 = vmul.u32 %v5773_v44, %v10261_v4  ;;  %v6178_v25 = vand.u32 31, %v6176_v54  ;;  %v10303_v26 = vmul.u32 %v11531_v6, %v10245_v18  ;;  %v4289_v6 = vpop.f32.mrf.mxu3 }
 0x2d9   :  { %11877 = vst [vmem:[#allocation21_spill] sm:$0xff] %v10261_v4  ;;  %v10288_v55 = vadd.s32 %v11884_v37, %v10266_v22  ;;  %v10307_v8 = vmul.u32 %v5928_v0, %v10245_v18  ;;  %v10310_v44 = vmul.u32 %v5928_v0, %v10258_v52  ;;  %v10313_v20 = vmul.u32 %v5906_v61, %v10258_v52 }
 0x2da   :  { %11879 = vst [vmem:[#allocation54_spill] sm:$0xff] %v10266_v22  ;;  %v10315_v63 = vshrl.u32 %v6021_v36, 5  ;;  %v6033_v40 = vshrl.u32 %v11840_v47, %v6024_v48  ;;  %v10319_v50 = vand.u32 65535, %v10280_v58  ;;  %v6027_v56 = vshrl.u32 %v11841_v23, %v6024_v48 }
 0x2db   :  { %11880 = vst [vmem:[#allocation19_spill] sm:$0xff] %v10269_v59  ;;  %v6030_v37 = vshrl.u32 %v11839_v27, %v6024_v48  ;;  %v10324_v7 = vshrl.u32 %v10280_v58, 16  ;;  %v6179_v0 = vsub.s32 32, %v6178_v25  ;;  %v11895_v61 = vshll.u32 %v10269_v59, 16 }
 0x2dc   :  { %11881 = vst [vmem:[#allocation28_spill] sm:$0xff] %v10273_v46  ;;  %v6032_v36 = vshll.u32 %v11839_v27, %v6023_v43  ;;  %v11897_v31 = vand.u32 2147483647, %v10167_v28  ;;  %v6026_v21 = vshll.u32 %v11843_v15, %v6023_v43  ;;  %v6038_v46 = vshll.u32 %v11838_v29, %v6023_v43 }
 0x2dd   :  { %11882 = vst [vmem:[#allocation44_spill] sm:$0xff] %v10280_v58  ;;  %v10329_v10 = vadd.s32 %v11895_v61, %v10303_v26  ;;  %v6039_v58 = vshrl.u32 %v11837_v49, %v6024_v48  ;;  %v6035_v61 = vshll.u32 %v11840_v47, %v6023_v43  ;;  %vm6041_vm7 = vcmp.lt.s32.totalorder %v10315_v63, 1 }
 0x2de   :  { %11883 = vst [vmem:[#allocation35_spill] sm:$0xff] %v10283_v41  ;;  %v6171_v19 = vand.u32 8388607, %v11897_v31  ;;  %v6029_v41 = vshll.u32 %v11841_v23, %v6023_v43  ;;  %v10345_v45 = vshrl.u32 %v11843_v15, %v6024_v48  ;;  %v6028_v31 = vor.u32 %v6027_v56, %v6026_v21 }
 0x2df   :  { %11885 = vst [vmem:[#allocation41_spill] sm:$0xff] %v10288_v55  ;;  %v6194_v42 = vshrl.u32 %v11837_v49, %v6179_v0  ;;  %vm6043_vm8 = vcmp.lt.s32.totalorder %v10315_v63, 3  ;;  %vm6044_vm9 = vcmp.lt.s32.totalorder %v10315_v63, 4  ;;  %v6193_v43 = vshll.u32 %v11838_v29, %v6178_v25 }
 0x2e0   :  { %11886 = vst [vmem:[#allocation40_spill] sm:$0xff] %v10291_v34  ;;  %v6034_v34 = vor.u32 %v6033_v40, %v6032_v36  ;;  %v6031_v55 = vor.u32 %v6030_v37, %v6029_v41  ;;  %v6040_v40 = vor.u32 %v6039_v58, %v6038_v46  ;;  %vm6042_vm10 = vcmp.lt.s32.totalorder %v10315_v63, 2 }
 0x2e1   :  { %11887 = vst [vmem:[#allocation29_spill] sm:$0xff] %v10294_v1  ;;  %v6036_v1 = vshrl.u32 %v11838_v29, %v6024_v48  ;;  %v6177_v41 = vshrl.u32 %v6176_v54, 5  ;;  %v6185_v21 = vshrl.u32 %v11839_v27, %v6179_v0  ;;  %v6191_v48 = vshrl.u32 %v11838_v29, %v6179_v0 }
 0x2e2   :  { %11888 = vst [vmem:[#allocation34_spill] sm:$0xff] %v10303_v26  ;;  %v6046_v56 = vsel %vm6044_vm9, %v6034_v34, 2102212464  ;;  %v6049_v58 = vsel %vm6041_vm7, %v6028_v31, %v6031_v55  ;;  %v6195_v46 = vor.u32 %v6194_v42, %v6193_v43  ;;  %v6182_v36 = vshrl.u32 %v11841_v23, %v6179_v0 }
 0x2e3   :  { %11889 = vst [vmem:[#allocation62_spill] sm:$0xff] %v10307_v8  ;;  %v6037_v4 = vor.u32 %v6036_v1, %v6035_v61  ;;  %v4252_v1 = vpop.f32.mrf.mxu2  ;;  %v6184_v54 = vshll.u32 %v11841_v23, %v6178_v25  ;;  %v6181_v42 = vshll.u32 %v11843_v15, %v6178_v25  ;;  %vm6199_vm12 = vcmp.lt.s32.totalorder %v6177_v41, 4 }
 0x2e4   :  { %11890 = vst [vmem:[#allocation18_spill] sm:$0xff] %v10310_v44  ;;  %v6054_v44 = vsel %vm6044_vm9, %v6040_v40, 1326507024  ;;  %v10370_v22 = vadd.f32 %v4252_v1, %v9977_v57  ;;  %v6053_v18 = vsel %vm6041_vm7, %v6031_v55, %v6034_v34  ;;  %v6209_v17 = vsel %vm6199_vm12, %v6195_v46, 1326507024 }
 0x2e5   :  { %11891 = vst [vmem:[#allocation2_spill] sm:$0xff] %v10313_v20  ;;  %v6050_v61 = vsel %vm6044_vm9, %v6037_v4, 920167782  ;;  %v6186_v43 = vor.u32 %v6185_v21, %v6184_v54  ;;  %v6055_v40 = vsel %vm6043_vm8, %v6037_v4, %v6054_v44  ;;  %vm6196_vm13 = vcmp.lt.s32.totalorder %v6177_v41, 1 }
 0x2e6   :  { %11892 = vst [vmem:[#allocation36_spill] sm:$0xff] %v10315_v63  ;;  %v6051_v8 = vsel %vm6043_vm8, %v6034_v34, %v6050_v61  ;;  %v6477_v1 = vand.u32 2139095040, %v10370_v22  ;;  %vm6198_vm11 = vcmp.lt.s32.totalorder %v6177_v41, 3  ;;  %vm6197_vm14 = vcmp.lt.s32.totalorder %v6177_v41, 2 }
 0x2e7   :  { %11893 = vst [vmem:[#allocation4_spill] sm:$0xff] %v10319_v50  ;;  %v6190_v50 = vshll.u32 %v11840_v47, %v6178_v25 }
 0x2e8   :  { %11894 = vst [vmem:[#allocation15_spill] sm:$0xff] %v10324_v7  ;;  %v10339_v7 = vadd.f32 %v4289_v6, %v9981_v60  ;;  %v6172_v60 = vor.u32 8388608, %v6171_v19  ;;  %v6188_v6 = vshrl.u32 %v11840_v47, %v6179_v0  ;;  %v6187_v19 = vshll.u32 %v11839_v27, %v6178_v25 }
 0x2e9   :  { %11896 = vst [vmem:[#allocation27_spill] sm:$0xff] %v10329_v10  ;;  %v6192_v14 = vor.u32 %v6191_v48, %v6190_v50  ;;  %v6180_v25 = vshrl.u32 %v11843_v15, %v6179_v0  ;;  %v6478_v61 = vshrl.u32 %v6477_v1, 23 }
 0x2ea   :  { %11898 = vst [vmem:[#allocation10_spill] sm:$0xff] %v10339_v7  ;;  %v6322_v37 = vand.u32 2139095040, %v10339_v7  ;;  %v6189_v53 = vor.u32 %v6188_v6, %v6187_v19  ;;  %v6183_v6 = vor.u32 %v6182_v36, %v6181_v42  ;;  %v10386_v4 = vshll.u32 %v6172_v60, 8 }
 0x2eb   :  { %11899 = vst [vmem:[#allocation12_spill] sm:$0xff] %v10370_v22  ;;  %v6205_v48 = vsel %vm6199_vm12, %v6192_v14, 920167782  ;;  %v8374_v0 = vadd.s32 4294967169, %v6478_v61  ;;  %v10404_v60 = vsel %vm6042_vm10, %v6049_v58, %v6051_v8 }
 0x2ec   :  { %v6323_v38 = vshrl.u32 %v6322_v37, 23  ;;  %v6201_v50 = vsel %vm6199_vm12, %v6189_v53, 2102212464  ;;  %v6208_v19 = vsel %vm6196_vm13, %v6186_v43, %v6189_v53  ;;  %v6210_v37 = vsel %vm6198_vm11, %v6192_v14, %v6209_v17  ;;  %11903 = vst [vmem:[#allocation8_spill] sm:$0xff] %v10404_v60 }
 0x2ed   :  { %v6200_v34 = vsel %vm6196_vm13, %v6180_v25, %v6183_v6  ;;  %v6204_v44 = vsel %vm6196_vm13, %v6183_v6, %v6186_v43  ;;  %v6202_v46 = vsel %vm6198_vm11, %v6186_v43, %v6201_v50  ;;  %v10391_v54 = vsel %vm6197_vm14, %v6208_v19, %v6210_v37 }
 0x2ee   :  { %v8371_v10 = vadd.s32 4294967169, %v6323_v38  ;;  %v10384_v38 = vsel %vm6042_vm10, %v6053_v18, %v6055_v40  ;;  %v10396_v18 = vsel %vm6041_vm7, %v10345_v45, %v6028_v31  ;;  %v10400_v17 = vsel %vm6043_vm8, %v6031_v55, %v6046_v56  ;;  %v4291_v45 = vpop.f32.mrf.mxu3 }
 0x2ef   :  { %11900 = vst [vmem:[#allocation11_spill] sm:$0xff] %v10384_v38  ;;  %v10409_v43 = vand.u32 65535, %v10386_v4  ;;  %v6484_v6 = vadd.s32 1, %v8374_v0  ;;  %v10414_v31 = vsel %vm6197_vm14, %v6200_v34, %v6202_v46  ;;  %v10420_v8 = vshrl.u32 %v10386_v4, 16 }
 0x2f0   :  { %v6329_v21 = vadd.s32 1, %v8371_v10  ;;  %v6206_v10 = vsel %vm6198_vm11, %v6189_v53, %v6205_v48  ;;  %11901 = vst [vmem:[#allocation13_spill] sm:$0xff] %v10396_v18  ;;  %v6216_v58 = vshrl.u32 %v10391_v54, 16  ;;  %v11905_v0 = vand.u32 65535, %v10391_v54 }
 0x2f1   :  { %11902 = vst [vmem:[#allocation6_spill] sm:$0xff] %v10400_v17  ;;  %v10417_v55 = vsel %vm6197_vm14, %v6204_v44, %v6206_v10  ;;  %vm6485_vm1 = vcmp.gt.s32.totalorder %v6484_v6, 0  ;;  %v11563_v17 = vand.u32 2147483647, %v10370_v22 }
 0x2f2   :  { %vm6330_vm15 = vcmp.gt.s32.totalorder %v6329_v21, 0  ;;  %v6486_v10 = vsel %vm6485_vm1, %v6484_v6, 0  ;;  %v10447_v56 = vmul.u32 %v6216_v58, %v10409_v43 }
 0x2f3   :  { %v6331_v36 = vsel %vm6330_vm15, %v6329_v21, 0  ;;  %v11904_v21 = vand.u32 2147483647, %v10339_v7 }
 0x2f4   :  { %v6333_v14 = vand.u32 31, %v6331_v36  ;;  %v10424_v1 = vshrl.u32 %v6331_v36, 5  ;;  %v6238_v36 = vshrl.u32 %v10417_v55, 16 }
 0x2f5   :  { %v6326_v41 = vand.u32 8388607, %v11904_v21 }
 0x2f6   :  { %v10411_v40 = vsub.s32 32, %v6333_v14  ;;  %v6348_v19 = vshll.u32 %v11838_v29, %v6333_v14  ;;  %v6339_v61 = vshll.u32 %v11841_v23, %v6333_v14  ;;  %v6342_v34 = vshll.u32 %v11839_v27, %v6333_v14 }
 0x2f7   :  { %v6345_v44 = vshll.u32 %v11840_v47, %v6333_v14  ;;  %vm6354_vm2 = vcmp.lt.s32.totalorder %v10424_v1, 4  ;;  %v6327_v63 = vor.u32 8388608, %v6326_v41  ;;  %v10464_v41 = vmul.u32 %v6238_v36, %v10409_v43 }
 0x2f8   :  { %v6340_v25 = vshrl.u32 %v11839_v27, %v10411_v40  ;;  %v6343_v50 = vshrl.u32 %v11840_v47, %v10411_v40  ;;  %v6346_v48 = vshrl.u32 %v11838_v29, %v10411_v40  ;;  %v6349_v37 = vshrl.u32 %v11837_v49, %v10411_v40 }
 0x2f9   :  { %vm6351_vm3 = vcmp.lt.s32.totalorder %v10424_v1, 1  ;;  %vm6353_vm4 = vcmp.lt.s32.totalorder %v10424_v1, 3  ;;  %v10482_v6 = vshll.u32 %v6327_v63, 8  ;;  %vm6352_vm5 = vcmp.lt.s32.totalorder %v10424_v1, 2 }
 0x2fa   :  { %v6350_v46 = vor.u32 %v6349_v37, %v6348_v19  ;;  %v10443_v21 = vor.u32 %v6340_v25, %v6339_v61  ;;  %v6344_v42 = vor.u32 %v6343_v50, %v6342_v34  ;;  %v6347_v53 = vor.u32 %v6346_v48, %v6345_v44  ;;  %v10477_v44 = vpop.f32.mrf.mxu2 }
 0x2fb   :  { %v10455_v19 = vmul.u32 %v11905_v0, %v10409_v43  ;;  %v6337_v25 = vshrl.u32 %v11841_v23, %v10411_v40  ;;  %v6488_v50 = vand.u32 31, %v6486_v10  ;;  %v10461_v48 = vmul.u32 %v6216_v58, %v10420_v8  ;;  %v10479_v0 = vpop.f32.mrf.mxu3  ;;  %11906 = vst [vmem:[#allocation60_spill] sm:$0xff] %v10482_v6 }
 0x2fc   :  { %v6364_v18 = vsel %vm6354_vm2, %v6350_v46, 1326507024  ;;  %v10469_v37 = vmul.u32 %v6238_v36, %v10420_v8  ;;  %v6336_v61 = vshll.u32 %v11843_v15, %v6333_v14  ;;  %v6363_v34 = vsel %vm6351_vm3, %v10443_v21, %v6344_v42 }
 0x2fd   :  { %v6365_v58 = vsel %vm6353_vm4, %v6347_v53, %v6364_v18  ;;  %v6481_v36 = vand.u32 8388607, %v11563_v17  ;;  %v6489_v38 = vsub.s32 32, %v6488_v50  ;;  %v6360_v20 = vsel %vm6354_vm2, %v6347_v53, 920167782 }
 0x2fe   :  { %v6338_v14 = vor.u32 %v6337_v25, %v6336_v61  ;;  %v10490_v18 = vadd.f32 %v4291_v45, %v9977_v57  ;;  %v10494_v12 = vsel %vm6352_vm5, %v6363_v34, %v6365_v58  ;;  %v10496_v46 = vshrl.u32 %v6486_v10, 5 }
 0x2ff   :  { %v6494_v63 = vshll.u32 %v11841_v23, %v6488_v50  ;;  %v6495_v17 = vshrl.u32 %v11839_v27, %v6489_v38  ;;  %v6497_v25 = vshll.u32 %v11839_v27, %v6488_v50  ;;  %v6498_v61 = vshrl.u32 %v11840_v47, %v6489_v38 }
 0x300   :  { %11907 = vst [vmem:[#allocation56_spill] sm:$0xff] %v10490_v18  ;;  %v6500_v52 = vshll.u32 %v11840_v47, %v6488_v50  ;;  %v6501_v53 = vshrl.u32 %v11838_v29, %v6489_v38  ;;  %v6492_v57 = vshrl.u32 %v11841_v23, %v6489_v38  ;;  %v6503_v34 = vshll.u32 %v11838_v29, %v6488_v50 }
 0x301   :  { %v6496_v45 = vor.u32 %v6495_v17, %v6494_v63  ;;  %v6504_v10 = vshrl.u32 %v11837_v49, %v6489_v38  ;;  %v6482_v58 = vor.u32 8388608, %v6481_v36  ;;  %v6499_v13 = vor.u32 %v6498_v61, %v6497_v25 }
 0x302   :  { %v6502_v32 = vor.u32 %v6501_v53, %v6500_v52  ;;  %v6632_v26 = vand.u32 2139095040, %v10490_v18  ;;  %v6335_v59 = vshrl.u32 %v11843_v15, %v10411_v40  ;;  %v6359_v33 = vsel %vm6351_vm3, %v6338_v14, %v10443_v21  ;;  %v4257_v52 = vpop.f32.mrf.mxu2 }
 0x303   :  { %v6491_v5 = vshll.u32 %v11843_v15, %v6488_v50  ;;  %v6505_v9 = vor.u32 %v6504_v10, %v6503_v34  ;;  %v6361_v17 = vsel %vm6353_vm4, %v6344_v42, %v6360_v20  ;;  %v6371_v63 = vshrl.u32 %v10494_v12, 16  ;;  %v4296_v36 = vpop.f32.mrf.mxu3 }
 0x304   :  { %vm6506_vm7 = vcmp.lt.s32.totalorder %v10496_v46, 1  ;;  %vm6509_vm8 = vcmp.lt.s32.totalorder %v10496_v46, 4  ;;  %vm6508_vm9 = vcmp.lt.s32.totalorder %v10496_v46, 3  ;;  %v6356_v20 = vsel %vm6354_vm2, %v6344_v42, 2102212464 }
 0x305   :  { %v6493_v25 = vor.u32 %v6492_v57, %v6491_v5  ;;  %v6518_v40 = vsel %vm6506_vm7, %v6496_v45, %v6499_v13  ;;  %v6519_v50 = vsel %vm6509_vm8, %v6505_v9, 1326507024  ;;  %vm6507_vm12 = vcmp.lt.s32.totalorder %v10496_v46, 2 }
 0x306   :  { %v6515_v61 = vsel %vm6509_vm8, %v6502_v32, 920167782  ;;  %v6520_v53 = vsel %vm6508_vm9, %v6502_v32, %v6519_v50  ;;  %v11908_v5 = vshll.u32 %v10447_v56, 16  ;;  %v10537_v34 = vand.u32 65535, %v10482_v6 }
 0x307   :  { %v10541_v9 = vsel %vm6507_vm12, %v6518_v40, %v6520_v53  ;;  %v11579_v42 = vand.u32 2147483647, %v10490_v18  ;;  %v6355_v10 = vsel %vm6351_vm3, %v6335_v59, %v6338_v14  ;;  %v10548_v32 = vsel %vm6352_vm5, %v6359_v33, %v6361_v17 }
 0x308   :  { %v10534_v57 = vadd.s32 %v11908_v5, %v10455_v19  ;;  %v10550_v50 = vshll.u32 %v6482_v58, 8  ;;  %v6633_v5 = vshrl.u32 %v6632_v26, 23  ;;  %v6357_v3 = vsel %vm6353_vm4, %v10443_v21, %v6356_v20 }
 0x309   :  { %v10556_v7 = vmul.u32 %v6371_v63, %v10537_v34  ;;  %v6514_v40 = vsel %vm6506_vm7, %v6493_v25, %v6496_v45  ;;  %v6516_v59 = vsel %vm6508_vm9, %v6499_v13, %v6515_v61  ;;  %v6511_v33 = vsel %vm6509_vm8, %v6499_v13, 2102212464 }
 0x30a   :  { %11909 = vst [vmem:[#allocation47_spill] sm:$0xff] %v10550_v50  ;;  %v6526_v26 = vshrl.u32 %v10541_v9, 16  ;;  %v8377_v58 = vadd.s32 4294967169, %v6633_v5  ;;  %v10567_v17 = vshrl.u32 %v10482_v6, 16  ;;  %v6393_v21 = vshrl.u32 %v10548_v32, 16  ;;  %v4260_v51 = vpop.f32.mrf.mxu2 }
 0x30b   :  { %v6490_v20 = vshrl.u32 %v11843_v15, %v6489_v38  ;;  %v6636_v53 = vand.u32 8388607, %v11579_v42  ;;  %v10575_v61 = vsel %vm6352_vm5, %v6355_v10, %v6357_v3  ;;  %v10579_v13 = vsel %vm6507_vm12, %v6514_v40, %v6516_v59  ;;  %v4299_v24 = vpop.f32.mrf.mxu3 }
 0x30c   :  { %11910 = vst [vmem:[#allocation7_spill] sm:$0xff] %v10575_v61  ;;  %v10582_v5 = vand.u32 65535, %v10550_v50  ;;  %v6639_v14 = vadd.s32 1, %v8377_v58  ;;  %v11584_v16 = vshll.u32 %v10556_v7, 16  ;;  %v6512_v3 = vsel %vm6508_vm9, %v6496_v45, %v6511_v33 }
 0x30d   :  { %v6510_v42 = vsel %vm6506_vm7, %v6490_v20, %v6493_v25  ;;  %v11911_v1 = vshll.u32 %v10447_v56, 16  ;;  %v11914_v40 = vand.u32 65535, %v10494_v12  ;;  %v10603_v58 = vmul.u32 %v6371_v63, %v10567_v17 }
 0x30e   :  { %v10606_v25 = vmul.u32 %v6526_v26, %v10582_v5  ;;  %vm6640_vm11 = vcmp.gt.s32.totalorder %v6639_v14, 0  ;;  %v10609_v45 = vmul.u32 %v6393_v21, %v10537_v34  ;;  %v6637_v33 = vor.u32 8388608, %v6636_v53 }
 0x30f   :  { %vm10593_vm13 = vc.u32 %v10455_v19, %v11911_v1  ;;  %v10600_v59 = vmul.u32 %v11914_v40, %v10537_v34  ;;  %v6548_v19 = vshrl.u32 %v10579_v13, 16  ;;  %v6641_v20 = vsel %vm6640_vm11, %v6639_v14, 0 }
 0x310   :  { %11915 = vst [vmem:[#allocation9_spill] sm:$0xff] %v10609_v45  ;;  %v10614_v1 = vsel %vm6507_vm12, %v6510_v42, %v6512_v3  ;;  %v6643_v38 = vand.u32 31, %v6641_v20  ;;  %v4256_v63 = vadd.f32 %v10477_v44, %v10004_v39  ;;  %v10625_v11 = vmul.u32 %v6393_v21, %v10567_v17 }
 0x311   :  { %11916 = vst [vmem:[#allocation39_spill] sm:$0xff] %v10614_v1  ;;  %v10622_v18 = vadd.s32 %v11584_v16, %v10600_v59  ;;  %v4295_v14 = vadd.f32 %v10479_v0, %v10004_v39  ;;  %v4258_v46 = vadd.f32 %v4257_v52, %v9991_v62  ;;  %v10631_v42 = vshrl.u32 %v10550_v50, 16 }
 0x312   :  { %11917 = vst [vmem:[#allocation3_spill] sm:$0xff] %v10625_v11  ;;  %v6531_v53 = vshll.u32 %v10606_v25, 16  ;;  %v10634_v3 = vsub.s32 32, %v6643_v38  ;;  %v4297_v44 = vadd.f32 %v4296_v36, %v9991_v62  ;;  %v10639_v40 = vmul.u32 %v6548_v19, %v10582_v5  ;;  %v4262_v36 = vpop.f32.mrf.mxu2 }
 0x313   :  { %v10643_v39 = vshll.u32 %v6637_v33, 8  ;;  %v11919_v0 = vand.u32 65535, %v10541_v9  ;;  %v10649_v22 = vmul.u32 %v6526_v26, %v10631_v42  ;;  %v10652_v28 = vmul.u32 %v6548_v19, %v10631_v42  ;;  %v4301_v16 = vpop.f32.mrf.mxu3 }
 0x314   :  { %v8040_v62 = vmax.f32 %v4256_v63, 0.0  ;;  %v8041_v6 = vmax.f32 %v4295_v14, 0.0  ;;  %v8042_v61 = vmax.f32 %v4258_v46, 0.0  ;;  %v4261_v60 = vadd.f32 %v4260_v51, %v9983_v2 }
 0x315   :  { %11918 = vst [vmem:[#allocation5_spill] sm:$0xff] %v10643_v39  ;;  %v6527_v52 = vmul.u32 %v11919_v0, %v10582_v5  ;;  %v4300_v33 = vadd.f32 %v4299_v24, %v9983_v2  ;;  %v6659_v0 = vshrl.u32 %v11837_v49, %v10634_v3  ;;  %v8043_v1 = vmax.f32 %v4297_v44, 0.0 }
 0x316   :  { %v4263_v26 = vadd.f32 %v4262_v36, %v9985_v30  ;;  %v10662_v19 = vand.u32 65535, %v10643_v39  ;;  %v10665_v63 = vshrl.u32 %v10643_v39, 16  ;;  %v4302_v14 = vadd.f32 %v4301_v16, %v9985_v30 }
 0x317   :  { %v10656_v21 = vadd.s32 %v6531_v53, %v6527_v52  ;;  %v11922_v51 = vand.u32 65535, %v10391_v54  ;;  %v10673_v24 = vshrl.u32 %v6641_v20, 5  ;;  %v6650_v49 = vshrl.u32 %v11839_v27, %v10634_v3 }
 0x318   :  { %11920 = vst [vmem:[#allocation69_spill] sm:$0xff] %v10662_v19  ;;  %v6653_v46 = vshrl.u32 %v11840_v47, %v10634_v3  ;;  %v6658_v44 = vshll.u32 %v11838_v29, %v6643_v38  ;;  %vm10680_vm14 = vc.u32 %v6527_v52, %v6531_v53  ;;  %v6656_v30 = vshrl.u32 %v11838_v29, %v10634_v3 }
 0x319   :  { %11921 = vst [vmem:[#allocation70_spill] sm:$0xff] %v10665_v63  ;;  %v10671_v2 = vmul.u32 %v11922_v51, %v10420_v8  ;;  %v8044_v16 = vmax.f32 %v4261_v60, 0.0  ;;  %v8046_v54 = vmax.f32 %v4263_v26, 0.0  ;;  %v6226_v20 = vsel %vm10593_vm13, 1, %v11690_v35 }
 0x31a   :  { %v6649_v51 = vshll.u32 %v11841_v23, %v6643_v38  ;;  %v6652_v39 = vshll.u32 %v11839_v27, %v6643_v38  ;;  %v6660_v63 = vor.u32 %v6659_v0, %v6658_v44  ;;  %v8047_v50 = vmax.f32 %v4302_v14, 0.0 }
 0x31b   :  { %v6655_v53 = vshll.u32 %v11840_v47, %v6643_v38  ;;  %v8045_v52 = vmax.f32 %v4300_v33, 0.0  ;;  %v8083_v11 = vpack.c.bf16 %v8046_v54, %v8044_v16  ;;  %v6223_v19 = vshll.u32 %v10671_v2, 16 }
 0x31c   :  { %v10693_v45 = vor.u32 %v6650_v49, %v6649_v51  ;;  %v10695_v29 = vor.u32 %v6653_v46, %v6652_v39  ;;  %vm6664_vm15 = vcmp.lt.s32.totalorder %v10673_v24, 4  ;;  %v8081_v60 = vpack.c.bf16 %v8042_v61, %v8040_v62 }
 0x31d   :  { %v6657_v10 = vor.u32 %v6656_v30, %v6655_v53  ;;  %8096 = vmatpush.bf16.msrb.mxu0 %v8083_v11  ;;  %v8084_v26 = vpack.c.bf16 %v8047_v50, %v8045_v52  ;;  %v6228_v27 = vadd.s32 %v6226_v20, %v10461_v48  ;;  %vm6229_vm1 = vc.u32 %v10534_v57, %v6223_v19 }
 0x31e   :  { %v6647_v47 = vshrl.u32 %v11841_v23, %v10634_v3  ;;  %v6674_v33 = vsel %vm6664_vm15, %v6660_v63, 1326507024  ;;  %v8082_v0 = vpack.c.bf16 %v8043_v1, %v8041_v6  ;;  %v6222_v39 = vshrl.u32 %v10447_v56, 16 }
 0x31f   :  { %v6646_v14 = vshll.u32 %v11843_v15, %v6643_v38  ;;  %vm6661_vm2 = vcmp.lt.s32.totalorder %v10673_v24, 1  ;;  %8109 = vmatpush.bf16.msrb.mxu1 %v8084_v26  ;;  %v6230_v11 = vsel %vm6229_vm1, 1, %v11690_v35  ;;  %v11925_v48 = vand.u32 65535, %v10417_v55 }
 0x320   :  { %v11926_v50 = vshll.u32 %v10556_v7, 16  ;;  %vm6663_vm4 = vcmp.lt.s32.totalorder %v10673_v24, 3  ;;  %v6232_v56 = vadd.s32 %v6230_v11, %v6228_v27  ;;  %v6243_v38 = vshll.u32 %v10464_v41, 16 }
 0x321   :  { %v6241_v57 = vmul.u32 %v11925_v48, %v10420_v8  ;;  %v11929_v6 = vmov %v11925_v48  ;;  %vm6662_vm5 = vcmp.lt.s32.totalorder %v10673_v24, 2  ;;  %v6673_v8 = vsel %vm6661_vm2, %v10693_v45, %v10695_v29  ;;  %8097 = vmatpush.bf16.msrb.mxu0 %v8081_v60 }
 0x322   :  { %vm10714_vm3 = vc.u32 %v10600_v59, %v11926_v50  ;;  %v6239_v61 = vmul.u32 %v11929_v6, %v10409_v43  ;;  %v6675_v59 = vsel %vm6663_vm4, %v6657_v10, %v6674_v33  ;;  %v11930_v1 = vand.u32 65535, %v10541_v9 }
 0x323   :  { %v10735_v43 = vshrl.u32 %v11843_v15, %v10634_v3  ;;  %v10737_v55 = vor.u32 %v6647_v47, %v6646_v14  ;;  %v10742_v19 = vsel %vm6664_vm15, %v10695_v29, 2102212464  ;;  %8110 = vmatpush.bf16.msrb.mxu1 %v8082_v0  ;;  %v6245_v63 = vshll.u32 %v6241_v57, 16 }
 0x324   :  { %v6529_v62 = vmul.u32 %v11930_v1, %v10631_v42  ;;  %vm6247_vm7 = vc.u32 %v6239_v61, %v6243_v38  ;;  %v6249_v46 = vadd.s32 %v6243_v38, %v6239_v61  ;;  %v10747_v9 = vsel %vm6662_vm5, %v6673_v8, %v6675_v59 }
 0x325   :  { %v6248_v49 = vsel %vm6247_vm7, 1, %v11690_v35  ;;  %v6233_v15 = vadd.s32 %v6232_v56, %v6222_v39  ;;  %v6536_v30 = vsel %vm10680_vm14, 1, %v11690_v35  ;;  %v6670_v16 = vsel %vm6664_vm15, %v6657_v10, 920167782 }
 0x326   :  { %v6533_v44 = vshll.u32 %v6529_v62, 16  ;;  %v6250_v3 = vadd.s32 %v6248_v49, %v10469_v37  ;;  %vm6251_vm8 = vc.u32 %v6249_v46, %v6245_v63  ;;  %v6538_v54 = vadd.s32 %v6536_v30, %v10649_v22 }
 0x327   :  { %v6224_v20 = vshrl.u32 %v10671_v2, 16  ;;  %v6252_v51 = vsel %vm6251_vm8, 1, %v11690_v35  ;;  %v11931_v37 = vand.u32 65535, %v10579_v13  ;;  %v6681_v36 = vshrl.u32 %v10747_v9, 16 }
 0x328   :  { %vm6539_vm9 = vc.u32 %v10656_v21, %v6533_v44  ;;  %v6244_v60 = vshrl.u32 %v10464_v41, 16  ;;  %v6254_v10 = vadd.s32 %v6252_v51, %v6250_v3  ;;  %v6532_v22 = vshrl.u32 %v10606_v25, 16  ;;  %v11937_v3 = vld [vmem:[#allocation9_spill] sm:$0xff] }
 0x329   :  { %v6540_v53 = vsel %vm6539_vm9, 1, %v11690_v35  ;;  %v6551_v52 = vmul.u32 %v11931_v37, %v10631_v42  ;;  %v10765_v27 = vadd.s32 %v6233_v15, %v6224_v20  ;;  %v11932_v21 = vmov %v11931_v37 }
 0x32a   :  { %v6542_v26 = vadd.s32 %v6540_v53, %v6538_v54  ;;  %v6549_v2 = vmul.u32 %v11932_v21, %v10582_v5  ;;  %v6553_v47 = vshll.u32 %v10639_v40, 16  ;;  %v6246_v33 = vshrl.u32 %v6241_v57, 16  ;;  %v11938_v54 = vld [vmem:[#allocation69_spill] sm:$0xff] }
 0x32b   :  { %v10772_v0 = vadd.s32 %v6249_v46, %v6245_v63  ;;  %v6255_v42 = vadd.s32 %v6254_v10, %v6244_v60  ;;  %v6555_v39 = vshll.u32 %v6551_v52, 16  ;;  %v11933_v11 = vand.u32 65535, %v10494_v12  ;;  %v11939_v60 = vld [vmem:[#allocation3_spill] sm:$0xff] }
 0x32c   :  { %v6543_v14 = vadd.s32 %v6542_v26, %v6532_v22  ;;  %vm6557_vm12 = vc.u32 %v6549_v2, %v6553_v47  ;;  %v6559_v41 = vadd.s32 %v6553_v47, %v6549_v2  ;;  %v6534_v25 = vshrl.u32 %v6529_v62, 16 }
 0x32d   :  { %v6374_v48 = vmul.u32 %v11933_v11, %v10567_v17  ;;  %v6256_v50 = vadd.s32 %v6255_v42, %v6246_v33  ;;  %v6558_v56 = vsel %vm6557_vm12, 1, %v11690_v35  ;;  %v6381_v13 = vsel %vm10714_vm3, 1, %v11690_v35 }
 0x32e   :  { %vm6259_vm13 = vc.u32 %v10765_v27, %v10772_v0  ;;  %v6560_v5 = vadd.s32 %v6558_v56, %v10652_v28  ;;  %vm6561_vm11 = vc.u32 %v6559_v41, %v6555_v39  ;;  %v6554_v61 = vshrl.u32 %v10639_v40, 16 }
 0x32f   :  { %v6378_v57 = vshll.u32 %v6374_v48, 16  ;;  %v6260_v6 = vadd.s32 1, %v6256_v50  ;;  %v6562_v12 = vsel %vm6561_vm11, 1, %v11690_v35  ;;  %v6383_v38 = vadd.s32 %v6381_v13, %v10603_v58 }
 0x330   :  { %v10787_v8 = vadd.s32 %v6543_v14, %v6534_v25  ;;  %v6556_v59 = vshrl.u32 %v6551_v52, 16  ;;  %v6564_v1 = vadd.s32 %v6562_v12, %v6560_v5  ;;  %v11934_v28 = vand.u32 65535, %v10548_v32 }
 0x331   :  { %vm6384_vm14 = vc.u32 %v10622_v18, %v6378_v57  ;;  %v6261_v23 = vsel %vm6259_vm13, %v6260_v6, %v6256_v50  ;;  %v11936_v58 = vmul.u32 %v10386_v4, %v10414_v31  ;;  %v6398_v30 = vshll.u32 %v11937_v3, 16 }
 0x332   :  { %v6385_v62 = vsel %vm6384_vm14, 1, %v11690_v35  ;;  %v6394_v63 = vmul.u32 %v11934_v28, %v10537_v34  ;;  %v11935_v40 = vmov %v11934_v28  ;;  %v6565_v44 = vadd.s32 %v6564_v1, %v6554_v61  ;;  %v11943_v61 = vld [vmem:[#allocation70_spill] sm:$0xff] }
 0x333   :  { %v6396_v49 = vmul.u32 %v11935_v40, %v10567_v17  ;;  %v6262_v46 = vadd.s32 %v6261_v23, %v11936_v58  ;;  %v6387_v15 = vadd.s32 %v6385_v62, %v6383_v38  ;;  %v6669_v18 = vsel %vm6661_vm2, %v10737_v55, %v10693_v45  ;;  %v11944_v38 = vld [vmem:[#allocation8_spill] sm:$0xff]  ;;  %v11945_v40 = vld [vmem:[#allocation7_spill] sm:$0xff] }
 0x334   :  { %v6671_v34 = vsel %vm6663_vm4, %v10695_v29, %v6670_v16  ;;  %v10811_v32 = vmul.u32 %v6681_v36, %v11938_v54  ;;  %v10813_v4 = vadd.s32 %v6559_v41, %v6555_v39  ;;  %v6566_v17 = vadd.s32 %v6565_v44, %v6556_v59  ;;  %v11940_v39 = vld [vmem:[#allocation47_spill] sm:$0xff] }
 0x335   :  { %v6263_v31 = vadd.s32 536870912, %v6262_v46  ;;  %v6377_v20 = vshrl.u32 %v10556_v7, 16  ;;  %vm6402_vm15 = vc.u32 %v6394_v63, %v6398_v30  ;;  %v6400_v51 = vshll.u32 %v6396_v49, 16 }
 0x336   :  { %vm6569_vm1 = vc.u32 %v10787_v8, %v10813_v4  ;;  %v6403_v53 = vsel %vm6402_vm15, 1, %v11690_v35  ;;  %v6404_v37 = vadd.s32 %v6398_v30, %v6394_v63  ;;  %v6570_v16 = vadd.s32 1, %v6566_v17  ;;  %v11947_v30 = vld [vmem:[#allocation5_spill] sm:$0xff] }
 0x337   :  { %v10819_v29 = vshrl.u32 %v6263_v31, 30  ;;  %v6388_v52 = vadd.s32 %v6387_v15, %v6377_v20  ;;  %v6405_v10 = vadd.s32 %v6403_v53, %v11939_v60  ;;  %v6665_v26 = vsel %vm6661_vm2, %v10735_v43, %v10737_v55  ;;  %v11941_v43 = vld [vmem:[#allocation39_spill] sm:$0xff] }
 0x338   :  { %v10828_v7 = vsel %vm6662_vm5, %v6669_v18, %v6671_v34  ;;  %v6680_v22 = vand.u32 65535, %v10747_v9  ;;  %vm6406_vm3 = vc.u32 %v6404_v37, %v6400_v51  ;;  %v6571_v2 = vsel %vm6569_vm1, %v6570_v16, %v6566_v17 }
 0x339   :  { %v6265_v21 = vshll.u32 %v10819_v29, 30  ;;  %v6379_v47 = vshrl.u32 %v6374_v48, 16  ;;  %v6407_v33 = vsel %vm6406_vm3, 1, %v11690_v35  ;;  %v6667_v42 = vsel %vm6663_vm4, %v10693_v45, %v10742_v19 }
 0x33a   :  { %v11942_v55 = vmul.u32 %v11940_v39, %v11941_v43  ;;  %v6399_v41 = vshrl.u32 %v11937_v3, 16  ;;  %v6409_v11 = vadd.s32 %v6407_v33, %v6405_v10  ;;  %v6686_v50 = vshll.u32 %v10811_v32, 16 }
 0x33b   :  { %v6703_v25 = vshrl.u32 %v10828_v7, 16  ;;  %v6266_v56 = vsub.s32 %v6262_v46, %v6265_v21  ;;  %v10843_v48 = vadd.s32 %v6388_v52, %v6379_v47  ;;  %v6682_v13 = vmul.u32 %v6680_v22, %v11938_v54  ;;  %v11948_v47 = vld [vmem:[#allocation43_spill] sm:$0xff] }
 0x33c   :  { %v6572_v14 = vadd.s32 %v6571_v2, %v11942_v55  ;;  %v6401_v57 = vshrl.u32 %v6396_v49, 16  ;;  %v6410_v6 = vadd.s32 %v6409_v11, %v6399_v41  ;;  %v6408_v19 = vadd.s32 %v6404_v37, %v6400_v51  ;;  %v11946_v49 = vld [vmem:[#allocation60_spill] sm:$0xff] }
 0x33d   :  { %vm6267_vm2 = vcmp.lt.s32.totalorder %v6266_v56, 0  ;;  %v6268_v45 = vsub.s32 0, %v6266_v56  ;;  %v10847_v12 = vmul.u32 %v6680_v22, %v11943_v61  ;;  %v6082_v59 = vand.u32 65535, %v11944_v38 }
 0x33e   :  { %v6573_v5 = vadd.s32 536870912, %v6572_v14  ;;  %v10852_v1 = vsel %vm6662_vm5, %v6665_v26, %v6667_v42  ;;  %v6411_v62 = vadd.s32 %v6410_v6, %v6401_v57  ;;  %vm6690_vm4 = vc.u32 %v6682_v13, %v6686_v50 }
 0x33f   :  { %v6692_v28 = vadd.s32 %v6686_v50, %v6682_v13  ;;  %v6269_v63 = vsel %vm6267_vm2, %v6268_v45, %v6266_v56  ;;  %vm6414_vm7 = vc.u32 %v10843_v48, %v6408_v19  ;;  %v6412_v58 = vmul.u32 %v11946_v49, %v11945_v40 }
 0x340   :  { %v10854_v23 = vshrl.u32 %v6573_v5, 30  ;;  %v6270_v46 = vclz %v6269_v63  ;;  %v6415_v15 = vadd.s32 1, %v6411_v62  ;;  %v6702_v3 = vand.u32 65535, %v10828_v7  ;;  %v11952_v63 = vld [vmem:[#allocation12_spill] sm:$0xff] }
 0x341   :  { %v10862_v24 = vmul.u32 %v6703_v25, %v11938_v54  ;;  %v6722_v18 = vmul.u32 %v11947_v30, %v10852_v1  ;;  %v6688_v34 = vshll.u32 %v10847_v12, 16  ;;  %v6691_v51 = vsel %vm6690_vm4, 1, %v11690_v35 }
 0x342   :  { %v6575_v44 = vshll.u32 %v10854_v23, 30  ;;  %v8369_v31 = vadd.s32 4294967294, %v6270_v46  ;;  %v6416_v20 = vsel %vm6414_vm7, %v6415_v15, %v6411_v62  ;;  %v6685_v53 = vmul.u32 %v6681_v36, %v11943_v61 }
 0x343   :  { %v6707_v37 = vmul.u32 %v6703_v25, %v11943_v61  ;;  %v6417_v16 = vadd.s32 %v6416_v20, %v6412_v58  ;;  %vm6694_vm5 = vc.u32 %v6692_v28, %v6688_v34  ;;  %v6258_v52 = vadd.s32 %v10772_v0, %v10765_v27 }
 0x344   :  { %v10867_v17 = vsub.s32 %v6572_v14, %v6575_v44  ;;  %vm8370_vm8 = vcmp.lt.s32.totalorder %v8369_v31, 0  ;;  %v6693_v7 = vadd.s32 %v6691_v51, %v6685_v53  ;;  %v6708_v22 = vshll.u32 %v10862_v24, 16 }
 0x345   :  { %v6273_v10 = vsel %vm8370_vm8, 0, %v8369_v31  ;;  %v6418_v26 = vadd.s32 536870912, %v6417_v16  ;;  %v6695_v2 = vsel %vm6694_vm5, 1, %v11690_v35  ;;  %vm6166_vm12 = vcmp.lt.s32.totalorder %v11948_v47, 0 }
 0x346   :  { %vm6577_vm9 = vcmp.lt.s32.totalorder %v10867_v17, 0  ;;  %v6578_v60 = vsub.s32 0, %v10867_v17  ;;  %v6274_v21 = vsub.s32 32, %v6273_v10  ;;  %v6278_v9 = vsub.s32 4294967266, %v6273_v10 }
 0x347   :  { %v10882_v27 = vshrl.u32 %v6418_v26, 30  ;;  %v6704_v0 = vmul.u32 %v6702_v3, %v11938_v54  ;;  %v10886_v42 = vmul.u32 %v6702_v3, %v11943_v61  ;;  %v6275_v39 = vshll.u32 %v6266_v56, %v6273_v10 }
 0x348   :  { %v6579_v36 = vsel %vm6577_vm9, %v6578_v60, %v10867_v17  ;;  %v6276_v43 = vshrl.u32 %v6258_v52, %v6274_v21  ;;  %v6279_v55 = vadd.s32 127, %v6278_v9  ;;  %v6568_v14 = vadd.s32 %v10813_v4, %v10787_v8 }
 0x349   :  { %v6580_v33 = vclz %v6579_v36  ;;  %v6697_v11 = vadd.s32 %v6695_v2, %v6693_v7  ;;  %vm6712_vm13 = vc.u32 %v6704_v0, %v6708_v22  ;;  %v6714_v50 = vadd.s32 %v6708_v22, %v6704_v0 }
 0x34a   :  { %v11949_v25 = vand.u32 2147483647, %v11948_v47  ;;  %v6277_v54 = vor.u32 %v6276_v43, %v6275_v39  ;;  %v6280_v5 = vshll.u32 %v6279_v55, 23  ;;  %v6420_v57 = vshll.u32 %v10882_v27, 30  ;;  %v11956_v39 = vld [vmem:[#allocation25_spill] sm:$0xff]  ;;  %v11958_v55 = vld [vmem:[#allocation22_spill] sm:$0xff] }
 0x34b   :  { %v8375_v41 = vadd.s32 4294967294, %v6580_v33  ;;  %v6687_v56 = vshrl.u32 %v10811_v32, 16  ;;  %v6288_v6 = vsub.s32 4, %v10819_v29  ;;  %v6413_v8 = vadd.s32 %v6408_v19, %v10843_v48 }
 0x34c   :  { %vm10892_vm11 = vcmp.le.f32.partialorder %v11949_v25, 0.7853982  ;;  %v6710_v4 = vshll.u32 %v10886_v42, 16  ;;  %v6281_v45 = vor.u32 4788187, %v6280_v5  ;;  %v10901_v62 = vsub.s32 %v6417_v16, %v6420_v57 }
 0x34d   :  { %vm8376_vm14 = vcmp.lt.s32.totalorder %v8375_v41, 0  ;;  %v6713_v28 = vsel %vm6712_vm13, 1, %v11690_v35  ;;  %vm6476_vm15 = vcmp.lt.s32.totalorder %v11952_v63, 0  ;;  %v6698_v58 = vadd.s32 %v6697_v11, %v6687_v56 }
 0x34e   :  { %v6583_v61 = vsel %vm8376_vm14, 0, %v8375_v41  ;;  %vm6716_vm1 = vc.u32 %v6714_v50, %v6710_v4  ;;  %v6282_v32 = vand.u32 2147483647, %v6281_v45  ;;  %v6284_v46 = vcvt.s32.f32 %v6277_v54 }
 0x34f   :  { %v6584_v40 = vsub.s32 32, %v6583_v61  ;;  %v6588_v49 = vsub.s32 4294967266, %v6583_v61  ;;  %vm6422_vm3 = vcmp.lt.s32.totalorder %v10901_v62, 0  ;;  %v6423_v48 = vsub.s32 0, %v10901_v62 }
 0x350   :  { %v6585_v19 = vshll.u32 %v10867_v17, %v6583_v61  ;;  %v6715_v3 = vadd.s32 %v6713_v28, %v6707_v37  ;;  %v6285_v34 = vmul.f32 %v6284_v46, %v6282_v32  ;;  %v6289_v31 = vsel %vm6166_vm12, %v6288_v6, %v10819_v29 }
 0x351   :  { %v6586_v44 = vshrl.u32 %v6568_v14, %v6584_v40  ;;  %v6589_v15 = vadd.s32 127, %v6588_v49  ;;  %v6424_v20 = vsel %vm6422_vm3, %v6423_v48, %v10901_v62  ;;  %v6717_v51 = vsel %vm6716_vm1, 1, %v11690_v35 }
 0x352   :  { %v11953_v53 = vand.u32 2147483647, %v11952_v63  ;;  %v6425_v60 = vclz %v6424_v20  ;;  %v6689_v37 = vshrl.u32 %v10847_v12, 16  ;;  %v6286_v10 = vxor.u32 2147483648, %v6285_v34 }
 0x353   :  { %v6587_v52 = vor.u32 %v6586_v44, %v6585_v19  ;;  %v6590_v17 = vshll.u32 %v6589_v15, 23  ;;  %v6598_v26 = vsub.s32 4, %v10854_v23  ;;  %v6709_v29 = vshrl.u32 %v10862_v24, 16  ;;  %v11968_v24 = vld [vmem:[#allocation53_spill] sm:$0xff] }
 0x354   :  { %vm10915_vm2 = vcmp.le.f32.partialorder %v11953_v53, 0.7853982  ;;  %v6719_v7 = vadd.s32 %v6717_v51, %v6715_v3  ;;  %v6291_v22 = vsel %vm10892_vm11, 0, %v6289_v31  ;;  %v8372_v9 = vadd.s32 4294967294, %v6425_v60  ;;  %v11962_v31 = vld [vmem:[#allocation58_spill] sm:$0xff] }
 0x355   :  { %v6591_v21 = vor.u32 4788187, %v6590_v17  ;;  %v10924_v36 = vadd.s32 %v6698_v58, %v6689_v37  ;;  %v6287_v2 = vsel %vm6166_vm12, %v6286_v10, %v6285_v34  ;;  %v6711_v33 = vshrl.u32 %v10886_v42, 16  ;;  %v11964_v53 = vld [vmem:[#allocation10_spill] sm:$0xff] }
 0x356   :  { %v10929_v0 = vadd.s32 %v6714_v50, %v6710_v4  ;;  %v6720_v12 = vadd.s32 %v6719_v7, %v6709_v29  ;;  %v11957_v43 = vshll.u32 %v11956_v39, 16  ;;  %v6290_v14 = vsel %vm10892_vm11, %v11948_v47, %v6287_v2 }
 0x357   :  { %v6592_v41 = vand.u32 2147483647, %v6591_v21  ;;  %v6594_v11 = vcvt.s32.f32 %v6587_v52  ;;  %vm8373_vm7 = vcmp.lt.s32.totalorder %v8372_v9, 0  ;;  %v6292_v25 = vmul.f32 %v6290_v14, %v6290_v14 }
 0x358   :  { %vm10934_vm4 = vc.u32 %v11958_v55, %v11957_v43  ;;  %v6599_v42 = vsel %vm6476_vm15, %v6598_v26, %v10854_v23  ;;  %v6428_v50 = vsel %vm8373_vm7, 0, %v8372_v9  ;;  %v6721_v54 = vadd.s32 %v6720_v12, %v6711_v33 }
 0x359   :  { %v6595_v5 = vmul.f32 %v6594_v11, %v6592_v41  ;;  %v6429_v57 = vsub.s32 32, %v6428_v50  ;;  %v6433_v56 = vsub.s32 4294967266, %v6428_v50  ;;  %vm6724_vm5 = vc.u32 %v10924_v36, %v10929_v0 }
 0x35a   :  { %v6293_v6 = vmul.f32 -0.001358992, %v6292_v25  ;;  %v6300_v4 = vmul.f32 -0.00019511016, %v6292_v25  ;;  %v6308_v13 = vadd.s32 3, %v6291_v22  ;;  %v6725_v45 = vadd.s32 1, %v6721_v54 }
 0x35b   :  { %v6596_v61 = vxor.u32 2147483648, %v6595_v5  ;;  %v6430_v28 = vshll.u32 %v10901_v62, %v6428_v50  ;;  %v6431_v40 = vshrl.u32 %v6413_v8, %v6429_v57  ;;  %v6434_v49 = vadd.s32 127, %v6433_v56  ;;  %v11961_v62 = vld [vmem:[#allocation20_spill] sm:$0xff] }
 0x35c   :  { %v6294_v58 = vadd.f32 0.041655596, %v6293_v6  ;;  %v6301_v32 = vadd.f32 0.008332121, %v6300_v4  ;;  %v6601_v23 = vsel %vm10915_vm2, 0, %v6599_v42  ;;  %v6726_v46 = vsel %vm6724_vm5, %v6725_v45, %v6721_v54  ;;  %v11969_v4 = vld [vmem:[#allocation50_spill] sm:$0xff] }
 0x35d   :  { %v6597_v48 = vsel %vm6476_vm15, %v6596_v61, %v6595_v5  ;;  %v6432_v19 = vor.u32 %v6431_v40, %v6430_v28  ;;  %v6435_v44 = vshll.u32 %v6434_v49, 23  ;;  %v6727_v15 = vadd.s32 %v6726_v46, %v6722_v18 }
 0x35e   :  { %v6295_v3 = vmul.f32 %v6294_v58, %v6292_v25  ;;  %v6302_v34 = vmul.f32 %v6301_v32, %v6292_v25  ;;  %v10957_v8 = vsel %vm10915_vm2, %v11952_v63, %v6597_v48  ;;  %v11963_v20 = vand.u32 65535, %v11962_v31 }
 0x35f   :  { %vm6321_vm8 = vcmp.lt.s32.totalorder %v11964_v53, 0  ;;  %v6602_v52 = vmul.f32 %v10957_v8, %v10957_v8  ;;  %v6436_v17 = vor.u32 4788187, %v6435_v44  ;;  %v6728_v1 = vadd.s32 536870912, %v6727_v15 }
 0x360   :  { %v10962_v51 = vmul.u32 %v11963_v20, %v11961_v62  ;;  %v6296_v30 = vadd.f32 -0.4999988, %v6295_v3  ;;  %v6303_v18 = vadd.f32 -0.16666654, %v6302_v34  ;;  %v10967_v60 = vand.u32 3, %v6308_v13 }
 0x361   :  { %v6618_v37 = vadd.s32 3, %v6601_v23  ;;  %v6603_v16 = vmul.f32 -0.001358992, %v6602_v52  ;;  %v6610_v10 = vmul.f32 -0.00019511016, %v6602_v52  ;;  %v6439_v29 = vcvt.s32.f32 %v6432_v19  ;;  %v11970_v19 = vld [vmem:[#allocation56_spill] sm:$0xff] }
 0x362   :  { %v6437_v26 = vand.u32 2147483647, %v6436_v17  ;;  %v6304_v7 = vmul.f32 %v6303_v18, %v6292_v25  ;;  %v10969_v22 = vshrl.u32 %v6728_v1, 30  ;;  %v5603_v21 = vshll.u32 %v10962_v51, 16 }
 0x363   :  { %v5606_v9 = vsel %vm10934_vm4, 1, %v11690_v35  ;;  %v6297_v2 = vmul.f32 %v6296_v30, %v6292_v25  ;;  %v6604_v33 = vadd.f32 0.041655596, %v6603_v16  ;;  %v6611_v12 = vadd.f32 0.008332121, %v6610_v10 }
 0x364   :  { %v6440_v43 = vmul.f32 %v6439_v29, %v6437_v26  ;;  %v6305_v55 = vadd.f32 1.0, %v6304_v7  ;;  %v10975_v41 = vand.u32 3, %v6618_v37  ;;  %v11965_v11 = vand.u32 2147483647, %v11964_v53  ;;  %v11974_v29 = vld [vmem:[#allocation17_spill] sm:$0xff]  ;;  %v11975_v7 = vld [vmem:[#allocation59_spill] sm:$0xff] }
 0x365   :  { %v6730_v50 = vshll.u32 %v10969_v22, 30  ;;  %v6605_v54 = vmul.f32 %v6604_v33, %v6602_v52  ;;  %v6612_v5 = vmul.f32 %v6611_v12, %v6602_v52  ;;  %vm5609_vm12 = vc.u32 %v11968_v24, %v5603_v21 }
 0x366   :  { %vm10979_vm9 = vcmp.le.f32.partialorder %v11965_v11, 0.7853982  ;;  %v6441_v57 = vxor.u32 2147483648, %v6440_v43  ;;  %v6306_v25 = vmul.f32 %v6305_v55, %v6290_v14  ;;  %v6443_v56 = vsub.s32 4, %v10882_v27  ;;  %v11979_v11 = vld [vmem:[#allocation34_spill] sm:$0xff] }
 0x367   :  { %v10986_v6 = vsub.s32 %v6727_v15, %v6730_v50  ;;  %v5608_v13 = vadd.s32 %v5606_v9, %v11969_v4  ;;  %v6298_v45 = vadd.f32 1.0, %v6297_v2  ;;  %vm6310_vm13 = vcmp.lt.s32.totalorder %v10967_v60, 2  ;;  %v11992_v50 = vld [vmem:[#allocation42_spill] sm:$0xff] }
 0x368   :  { %v6606_v61 = vadd.f32 -0.4999988, %v6605_v54  ;;  %v6613_v28 = vadd.f32 -0.16666654, %v6612_v5  ;;  %v6442_v40 = vsel %vm6321_vm8, %v6441_v57, %v6440_v43  ;;  %v6312_v49 = vxor.u32 2147483648, %v6306_v25  ;;  %v11977_v43 = vld [vmem:[#allocation19_spill] sm:$0xff] }
 0x369   :  { %v10995_v58 = vsel %vm10979_vm9, %v11964_v53, %v6442_v40  ;;  %vm6732_vm11 = vcmp.lt.s32.totalorder %v10986_v6, 0  ;;  %v5610_v14 = vsel %vm5609_vm12, 1, %v11690_v35  ;;  %v6733_v48 = vsub.s32 0, %v10986_v6  ;;  %v11982_v54 = vld [vmem:[#allocation51_spill] sm:$0xff] }
 0x36a   :  { %v6607_v32 = vmul.f32 %v6606_v61, %v6602_v52  ;;  %v6614_v23 = vmul.f32 %v6613_v28, %v6602_v52  ;;  %v11001_v46 = vmul.f32 %v10995_v58, %v10995_v58  ;;  %vm6307_vm14 = vweird.f32 %v11948_v47 }
 0x36b   :  { %vm6311_vm15 = vcmp.eq.s32.totalorder %v10967_v60, 0  ;;  %vm6314_vm1 = vcmp.eq.s32.totalorder %v10967_v60, 2  ;;  %vm6617_vm3 = vweird.f32 %v11952_v63  ;;  %vm6620_vm2 = vcmp.lt.s32.totalorder %v10975_v41, 2 }
 0x36c   :  { %vm6621_vm4 = vcmp.eq.s32.totalorder %v10975_v41, 0  ;;  %vm6631_vm7 = vcmp.lt.s32.totalorder %v11970_v19, 0  ;;  %v6315_v44 = vxor.u32 2147483648, %v6298_v45  ;;  %v6608_v15 = vadd.f32 1.0, %v6607_v32 }
 0x36d   :  { %v6615_v3 = vadd.f32 1.0, %v6614_v23  ;;  %vm6624_vm5 = vcmp.eq.s32.totalorder %v10975_v41, 2  ;;  %v6444_v34 = vsel %vm6321_vm8, %v6443_v56, %v10882_v27  ;;  %v6455_v31 = vmul.f32 -0.00019511016, %v11001_v46 }
 0x36e   :  { %v6734_v20 = vsel %vm6732_vm11, %v6733_v48, %v10986_v6  ;;  %v5612_v52 = vadd.s32 %v5610_v14, %v5608_v13  ;;  %v6313_v17 = vsel %vm6311_vm15, %v6298_v45, %v6312_v49  ;;  %v6625_v30 = vxor.u32 2147483648, %v6608_v15 }
 0x36f   :  { %v6616_v1 = vmul.f32 %v6615_v3, %v10957_v8  ;;  %v6735_v18 = vclz %v6734_v20  ;;  %v6456_v37 = vadd.f32 0.008332121, %v6455_v31  ;;  %v11971_v16 = vand.u32 2147483647, %v11970_v19 }
 0x370   :  { %v6723_v27 = vadd.s32 %v10929_v0, %v10924_v36  ;;  %v5602_v26 = vshrl.u32 %v11956_v39, 16  ;;  %v11976_v21 = vand.u32 65535, %v11975_v7  ;;  %v6316_v8 = vsel %vm6314_vm1, %v6315_v44, %v6306_v25  ;;  %v11984_v44 = vld [vmem:[#allocation16_spill] sm:$0xff] }
 0x371   :  { %vm11022_vm12 = vcmp.le.f32.partialorder %v11971_v16, 0.7853982  ;;  %v6622_v2 = vxor.u32 2147483648, %v6616_v1  ;;  %v6448_v33 = vmul.f32 -0.001358992, %v11001_v46  ;;  %v8378_v12 = vadd.s32 4294967294, %v6735_v18 }
 0x372   :  { %v5619_v9 = vmul.u32 %v11976_v21, %v11974_v29  ;;  %v11978_v55 = vshll.u32 %v11977_v43, 16  ;;  %v6317_v36 = vsel %vm6310_vm13, %v6313_v17, %v6316_v8  ;;  %v6753_v0 = vsub.s32 4, %v10969_v22  ;;  %v11985_v18 = vld [vmem:[#allocation14_spill] sm:$0xff] }
 0x373   :  { %v5613_v39 = vadd.s32 %v5612_v52, %v5602_v26  ;;  %v5623_v5 = vshll.u32 %v11982_v54, 16  ;;  %v6623_v57 = vsel %vm6621_vm4, %v6608_v15, %v6622_v2  ;;  %v6626_v24 = vsel %vm6624_vm5, %v6625_v30, %v6616_v1 }
 0x374   :  { %vm11038_vm8 = vc.u32 %v11979_v11, %v11978_v55  ;;  %vm8379_vm11 = vcmp.lt.s32.totalorder %v8378_v12, 0  ;;  %v11983_v25 = vmov %v11976_v21  ;;  %v6627_v60 = vsel %vm6620_vm2, %v6623_v57, %v6626_v24 }
 0x375   :  { %v5621_v56 = vmul.u32 %v11983_v25, %v11961_v62  ;;  %v6457_v4 = vmul.f32 %v6456_v37, %v11001_v46  ;;  %v6738_v13 = vsel %vm8379_vm11, 0, %v8378_v12  ;;  %vm5627_vm13 = vc.u32 %v5619_v9, %v5623_v5  ;;  %v11986_v37 = vld [vmem:[#allocation52_spill] sm:$0xff] }
 0x376   :  { %v6318_v45 = vsel %vm6307_vm14, nan, %v6317_v36  ;;  %v6628_v61 = vsel %vm6617_vm3, nan, %v6627_v60  ;;  %v6449_v28 = vadd.f32 0.041655596, %v6448_v33  ;;  %v6739_v40 = vsub.s32 32, %v6738_v13  ;;  %v11988_v36 = vld [vmem:[#allocation2_spill] sm:$0xff] }
 0x377   :  { %v8079_v49 = vpack.c.bf16 %v6628_v61, %v6318_v45  ;;  %v6743_v14 = vsub.s32 4294967266, %v6738_v13  ;;  %v6754_v62 = vsel %vm6631_vm7, %v6753_v0, %v10969_v22  ;;  %v5628_v41 = vsel %vm5627_vm13, 1, %v11690_v35 }
 0x378   :  { %v6741_v32 = vshrl.u32 %v6723_v27, %v6739_v40  ;;  %v5625_v23 = vshll.u32 %v5621_v56, 16  ;;  %v5629_v48 = vadd.s32 %v5623_v5, %v5619_v9  ;;  %v5630_v15 = vadd.s32 %v5628_v41, %v11984_v44  ;;  %v11990_v5 = vld [vmem:[#allocation32_spill] sm:$0xff] }
 0x379   :  { %8098 = vmatpush.bf16.msrb.mxu0 %v8079_v49  ;;  %v6446_v47 = vsel %vm10979_vm9, 0, %v6444_v34  ;;  %v6458_v63 = vadd.f32 -0.16666654, %v6457_v4  ;;  %v6740_v3 = vshll.u32 %v10986_v6, %v6738_v13  ;;  %v6744_v31 = vadd.s32 127, %v6743_v14  ;;  %v11994_v13 = vld [vmem:[#allocation62_spill] sm:$0xff] }
 0x37a   :  { %v6450_v20 = vmul.f32 %v6449_v28, %v11001_v46  ;;  %v6756_v22 = vsel %vm11022_vm12, 0, %v6754_v62  ;;  %v5604_v52 = vshrl.u32 %v10962_v51, 16  ;;  %vm5631_vm14 = vc.u32 %v5629_v48, %v5625_v23 }
 0x37b   :  { %v6742_v17 = vor.u32 %v6741_v32, %v6740_v3  ;;  %v6745_v1 = vshll.u32 %v6744_v31, 23  ;;  %v5632_v30 = vsel %vm5631_vm14, 1, %v11690_v35  ;;  %v11987_v42 = vand.u32 65535, %v11986_v37  ;;  %v12000_v31 = vld [vmem:[#allocation48_spill] sm:$0xff] }
 0x37c   :  { %v6463_v16 = vadd.s32 3, %v6446_v47  ;;  %v11076_v27 = vadd.s32 %v5613_v39, %v5604_v52  ;;  %v5624_v6 = vshrl.u32 %v11982_v54, 16  ;;  %v5634_v26 = vadd.s32 %v5632_v30, %v5630_v15  ;;  %v11989_v54 = vld [vmem:[#allocation27_spill] sm:$0xff]  ;;  %v12003_v52 = vld [vmem:[#allocation18_spill] sm:$0xff] }
 0x37d   :  { %v5909_v34 = vmul.u32 %v11987_v42, %v11985_v18  ;;  %v6459_v29 = vmul.f32 %v6458_v63, %v11001_v46  ;;  %v6746_v7 = vor.u32 4788187, %v6745_v1  ;;  %v6773_v21 = vadd.s32 3, %v6756_v22  ;;  %v11995_v15 = vld [vmem:[#allocation55_spill] sm:$0xff]  ;;  %v11997_v63 = vld [vmem:[#allocation54_spill] sm:$0xff] }
 0x37e   :  { %v5626_v51 = vshrl.u32 %v5621_v56, 16  ;;  %v11080_v9 = vadd.s32 %v5629_v48, %v5625_v23  ;;  %v5635_v8 = vadd.s32 %v5634_v26, %v5624_v6  ;;  %v5916_v33 = vsel %vm11038_vm8, 1, %v11690_v35 }
 0x37f   :  { %v5913_v2 = vshll.u32 %v5909_v34, 16  ;;  %v6451_v12 = vadd.f32 -0.4999988, %v6450_v20  ;;  %v6747_v55 = vand.u32 2147483647, %v6746_v7  ;;  %v6749_v11 = vcvt.s32.f32 %v6742_v17  ;;  %v12001_v20 = vld [vmem:[#allocation46_spill] sm:$0xff] }
 0x380   :  { %v5918_v0 = vadd.s32 %v5916_v33, %v11988_v36  ;;  %v5636_v39 = vadd.s32 %v5635_v8, %v5626_v51  ;;  %vm5639_vm9 = vc.u32 %v11076_v27, %v11080_v9  ;;  %v11991_v57 = vand.u32 65535, %v11990_v5  ;;  %v12004_v7 = vld [vmem:[#allocation4_spill] sm:$0xff]  ;;  %v12005_v51 = vld [vmem:[#allocation11_spill] sm:$0xff]  ;;  %v12008_v5 = vld [vmem:[#allocation38_spill] sm:$0xff] }
 0x381   :  { %vm5919_vm15 = vc.u32 %v11989_v54, %v5913_v2  ;;  %v6750_v25 = vmul.f32 %v6749_v11, %v6747_v55  ;;  %v5933_v45 = vshll.u32 %v11994_v13, 16  ;;  %v6460_v61 = vadd.f32 1.0, %v6459_v29  ;;  %v12007_v54 = vld [vmem:[#allocation21_spill] sm:$0xff] }
 0x382   :  { %v5931_v24 = vmul.u32 %v11991_v57, %v11985_v18  ;;  %v5920_v56 = vsel %vm5919_vm15, 1, %v11690_v35  ;;  %v11993_v60 = vmov %v11991_v57  ;;  %v5640_v28 = vadd.s32 1, %v5636_v39 }
 0x383   :  { %v5929_v4 = vmul.u32 %v11993_v60, %v11992_v50  ;;  %v5912_v40 = vshrl.u32 %v11977_v43, 16  ;;  %v5922_v49 = vadd.s32 %v5920_v56, %v5918_v0  ;;  %v6751_v14 = vxor.u32 2147483648, %v6750_v25 }
 0x384   :  { %v5935_v62 = vshll.u32 %v5931_v24, 16  ;;  %v6452_v32 = vmul.f32 %v6451_v12, %v11001_v46  ;;  %v5641_v23 = vsel %vm5639_vm9, %v5640_v28, %v5636_v39  ;;  %v11996_v47 = vshll.u32 %v11995_v15, 16 }
 0x385   :  { %vm5937_vm1 = vc.u32 %v5929_v4, %v5933_v45  ;;  %v5939_v41 = vadd.s32 %v5933_v45, %v5929_v4  ;;  %v5923_v48 = vadd.s32 %v5922_v49, %v5912_v40  ;;  %v6752_v43 = vsel %vm6631_vm7, %v6751_v14, %v6750_v25 }
 0x386   :  { %v5938_v44 = vsel %vm5937_vm1, 1, %v11690_v35  ;;  %vm11106_vm3 = vc.u32 %v11997_v63, %v11996_v47  ;;  %v12002_v46 = vmul.u32 %v12000_v31, %v12001_v20  ;;  %v6461_v1 = vmul.f32 %v6460_v61, %v10995_v58  ;;  %v12013_v31 = vld [vmem:[#allocation31_spill] sm:$0xff]  ;;  %v12014_v20 = vld [vmem:[#allocation28_spill] sm:$0xff] }
 0x387   :  { %v5940_v17 = vadd.s32 %v5938_v44, %v12003_v52  ;;  %vm5941_vm2 = vc.u32 %v5939_v41, %v5935_v62  ;;  %v11120_v30 = vsel %vm11022_vm12, %v11970_v19, %v6752_v43  ;;  %v5914_v18 = vshrl.u32 %v5909_v34, 16 }
 0x388   :  { %v5642_v22 = vadd.s32 %v5641_v23, %v12002_v46  ;;  %v5942_v37 = vsel %vm5941_vm2, 1, %v11690_v35  ;;  %v6757_v42 = vmul.f32 %v11120_v30, %v11120_v30  ;;  %v5934_v26 = vshrl.u32 %v11994_v13, 16 }
 0x389   :  { %v5944_v29 = vadd.s32 %v5942_v37, %v5940_v17  ;;  %v12006_v8 = vshrl.u32 %v12005_v51, 16  ;;  %v6453_v58 = vadd.f32 1.0, %v6452_v32  ;;  %v6464_v33 = vand.u32 3, %v6463_v16 }
 0x38a   :  { %v5643_v6 = vadd.s32 536870912, %v5642_v22  ;;  %v11131_v10 = vadd.s32 %v5923_v48, %v5914_v18  ;;  %v6758_v12 = vmul.f32 -0.001358992, %v6757_v42  ;;  %v6765_v34 = vmul.f32 -0.00019511016, %v6757_v42  ;;  %v12010_v48 = vld [vmem:[#allocation41_spill] sm:$0xff] }
 0x38b   :  { %v11129_v2 = vmul.u32 %v12006_v8, %v12004_v7  ;;  %v5945_v11 = vadd.s32 %v5944_v29, %v5934_v26  ;;  %v6467_v36 = vxor.u32 2147483648, %v6461_v1  ;;  %v11135_v0 = vand.u32 3, %v6773_v21  ;;  %v12017_v26 = vld [vmem:[#allocation35_spill] sm:$0xff] }
 0x38c   :  { %v11133_v55 = vshrl.u32 %v5643_v6, 30  ;;  %v5936_v39 = vshrl.u32 %v5931_v24, 16  ;;  %v12009_v57 = vand.u32 65535, %v12008_v5  ;;  %v6759_v56 = vadd.f32 0.041655596, %v6758_v12  ;;  %v12019_v12 = vld [vmem:[#allocation45_spill] sm:$0xff] }
 0x38d   :  { %v6766_v50 = vadd.f32 0.008332121, %v6765_v34  ;;  %v11143_v60 = vadd.s32 %v5939_v41, %v5935_v62  ;;  %vm6462_vm4 = vweird.f32 %v11964_v53  ;;  %vm6465_vm7 = vcmp.lt.s32.totalorder %v6464_v33, 2 }
 0x38e   :  { %v11140_v25 = vmul.u32 %v12009_v57, %v12007_v54  ;;  %v5645_v16 = vshll.u32 %v11133_v55, 30  ;;  %vm6466_vm5 = vcmp.eq.s32.totalorder %v6464_v33, 0  ;;  %v6470_v4 = vxor.u32 2147483648, %v6453_v58 }
 0x38f   :  { %v5946_v13 = vadd.s32 %v5945_v11, %v5936_v39  ;;  %v6760_v21 = vmul.f32 %v6759_v56, %v6757_v42  ;;  %v6767_v45 = vmul.f32 %v6766_v50, %v6757_v42  ;;  %vm5949_vm12 = vc.u32 %v11131_v10, %v11143_v60 }
 0x390   :  { %v11146_v24 = vsub.s32 %v5642_v22, %v5645_v16  ;;  %v6468_v61 = vsel %vm6466_vm5, %v6453_v58, %v6467_v36  ;;  %vm6469_vm8 = vcmp.eq.s32.totalorder %v6464_v33, 2  ;;  %v5758_v40 = vshll.u32 %v11140_v25, 16  ;;  %v12018_v33 = vld [vmem:[#allocation63_spill] sm:$0xff] }
 0x391   :  { %v5950_v28 = vadd.s32 1, %v5946_v13  ;;  %v6761_v49 = vadd.f32 -0.4999988, %v6760_v21  ;;  %v6768_v14 = vadd.f32 -0.16666654, %v6767_v45  ;;  %vm6779_vm11 = vcmp.eq.s32.totalorder %v11135_v0, 2 }
 0x392   :  { %vm5647_vm13 = vcmp.lt.s32.totalorder %v11146_v24, 0  ;;  %v5648_v62 = vsub.s32 0, %v11146_v24  ;;  %v6471_v41 = vsel %vm6469_vm8, %v6470_v4, %v6461_v1  ;;  %vm6776_vm14 = vcmp.eq.s32.totalorder %v11135_v0, 0  ;;  %v12016_v1 = vld [vmem:[#allocation40_spill] sm:$0xff] }
 0x393   :  { %v5951_v32 = vsel %vm5949_vm12, %v5950_v28, %v5946_v13  ;;  %v5761_v23 = vsel %vm11106_vm3, 1, %v11690_v35  ;;  %vm11159_vm9 = vc.u32 %v12010_v48, %v5758_v40  ;;  %v6762_v47 = vmul.f32 %v6761_v49, %v6757_v42 }
 0x394   :  { %v6769_v63 = vmul.f32 %v6768_v14, %v6757_v42  ;;  %vm6775_vm15 = vcmp.lt.s32.totalorder %v11135_v0, 2  ;;  %v5649_v43 = vsel %vm5647_vm13, %v5648_v62, %v11146_v24  ;;  %v12015_v46 = vmul.u32 %v12013_v31, %v12014_v20  ;;  %v12023_v31 = vld [vmem:[#allocation29_spill] sm:$0xff] }
 0x395   :  { %v6472_v52 = vsel %vm6465_vm7, %v6468_v61, %v6471_v41  ;;  %vm6772_vm1 = vweird.f32 %v11970_v19  ;;  %v5638_v3 = vadd.s32 %v11080_v9, %v11076_v27  ;;  %v5650_v17 = vclz %v5649_v43 }
 0x396   :  { %v5952_v22 = vadd.s32 %v5951_v32, %v12015_v46  ;;  %v5778_v18 = vshll.u32 %v12016_v1, 16  ;;  %v6763_v37 = vadd.f32 1.0, %v6762_v47  ;;  %v6770_v42 = vadd.f32 1.0, %v6769_v63  ;;  %v12022_v63 = vld [vmem:[#allocation67_spill] sm:$0xff] }
 0x397   :  { %v5763_v29 = vadd.s32 %v5761_v23, %v12017_v26  ;;  %v8357_v8 = vadd.s32 4294967294, %v5650_v17  ;;  %v5765_v58 = vsel %vm11159_vm9, 1, %v11690_v35  ;;  %v12020_v34 = vand.u32 65535, %v12019_v12 }
 0x398   :  { %v5953_v6 = vadd.s32 536870912, %v5952_v22  ;;  %v6473_v36 = vsel %vm6462_vm4, nan, %v6472_v52  ;;  %v6771_v39 = vmul.f32 %v6770_v42, %v11120_v30  ;;  %v6780_v5 = vxor.u32 2147483648, %v6763_v37 }
 0x399   :  { %v5774_v11 = vmul.u32 %v12020_v34, %v12018_v33  ;;  %v12021_v27 = vmov %v12020_v34  ;;  %vm8358_vm3 = vcmp.lt.s32.totalorder %v8357_v8, 0  ;;  %v5757_v56 = vshrl.u32 %v11995_v15, 16 }
 0x39a   :  { %v5776_v9 = vmul.u32 %v12021_v27, %v12007_v54  ;;  %v11186_v57 = vshrl.u32 %v5953_v6, 30  ;;  %v6777_v16 = vxor.u32 2147483648, %v6771_v39  ;;  %v5653_v4 = vsel %vm8358_vm3, 0, %v8357_v8 }
 0x39b   :  { %vm5782_vm2 = vc.u32 %v5774_v11, %v5778_v18  ;;  %v5784_v50 = vadd.s32 %v5778_v18, %v5774_v11  ;;  %v5767_v21 = vadd.s32 %v5765_v58, %v5763_v29  ;;  %v6781_v54 = vsel %vm6779_vm11, %v6780_v5, %v6771_v39  ;;  %v12025_v18 = vld [vmem:[#allocation15_spill] sm:$0xff] }
 0x39c   :  { %v5955_v13 = vshll.u32 %v11186_v57, 30  ;;  %v5654_v53 = vsub.s32 32, %v5653_v4  ;;  %v5658_v45 = vsub.s32 4294967266, %v5653_v4  ;;  %v5780_v61 = vshll.u32 %v5776_v9, 16 }
 0x39d   :  { %v6778_v30 = vsel %vm6776_vm14, %v6763_v37, %v6777_v16  ;;  %v5655_v28 = vshll.u32 %v11146_v24, %v5653_v4  ;;  %v5783_v15 = vsel %vm5782_vm2, 1, %v11690_v35  ;;  %v5768_v23 = vadd.s32 %v5767_v21, %v5757_v56 }
 0x39e   :  { %v5956_v40 = vsub.s32 %v5952_v22, %v5955_v13  ;;  %v6782_v49 = vsel %vm6775_vm15, %v6778_v30, %v6781_v54  ;;  %v5656_v14 = vshrl.u32 %v5638_v3, %v5654_v53  ;;  %v5659_v62 = vadd.s32 127, %v5658_v45 }
 0x39f   :  { %vm5786_vm4 = vc.u32 %v5784_v50, %v5780_v61  ;;  %v6783_v41 = vsel %vm6772_vm1, nan, %v6782_v49  ;;  %v6083_v48 = vshrl.u32 %v11944_v38, 16  ;;  %vm5546_vm5 = vcmp.lt.s32.totalorder %v12022_v63, 0 }
 0x3a0   :  { %vm5957_vm7 = vcmp.lt.s32.totalorder %v5956_v40, 0  ;;  %v5958_v32 = vsub.s32 0, %v5956_v40  ;;  %v8080_v44 = vpack.c.bf16 %v6783_v41, %v6473_v36  ;;  %v5657_v47 = vor.u32 %v5656_v14, %v5655_v28  ;;  %v12031_v41 = vld [vmem:[#allocation26_spill] sm:$0xff] }
 0x3a1   :  { %v5660_v24 = vshll.u32 %v5659_v62, 23  ;;  %v5759_v0 = vshrl.u32 %v11140_v25, 16  ;;  %v5785_v20 = vadd.s32 %v5783_v15, %v12023_v31  ;;  %v5787_v46 = vsel %vm5786_vm4, 1, %v11690_v35 }
 0x3a2   :  { %v5959_v43 = vsel %vm5957_vm7, %v5958_v32, %v5956_v40  ;;  %v12024_v19 = vand.u32 65535, %v12005_v51  ;;  %v6066_v52 = vshll.u32 %v11129_v2, 16  ;;  %8111 = vmatpush.bf16.msrb.mxu1 %v8080_v44  ;;  %v12026_v37 = vshrl.u32 %v12005_v51, 16  ;;  %v12032_v32 = vld [vmem:[#allocation37_spill] sm:$0xff] }
 0x3a3   :  { %v5661_v3 = vor.u32 4788187, %v5660_v24  ;;  %v5960_v17 = vclz %v5959_v43  ;;  %v11212_v6 = vadd.s32 %v5768_v23, %v5759_v0  ;;  %v5779_v25 = vshrl.u32 %v12016_v1, 16 }
 0x3a4   :  { %v6062_v22 = vmul.u32 %v12024_v19, %v12004_v7  ;;  %v6065_v42 = vmul.u32 %v12026_v37, %v12025_v18  ;;  %v5789_v26 = vadd.s32 %v5787_v46, %v5785_v20  ;;  %v11216_v29 = vmul.u32 %v6083_v48, %v12004_v7 }
 0x3a5   :  { %v5662_v8 = vand.u32 2147483647, %v5661_v3  ;;  %v5664_v58 = vcvt.s32.f32 %v5657_v47  ;;  %v8363_v33 = vadd.s32 4294967294, %v5960_v17  ;;  %v5781_v12 = vshrl.u32 %v5776_v9, 16  ;;  %v12034_v47 = vld [vmem:[#allocation65_spill] sm:$0xff] }
 0x3a6   :  { %v11218_v34 = vadd.s32 %v5784_v50, %v5780_v61  ;;  %v5790_v11 = vadd.s32 %v5789_v26, %v5779_v25  ;;  %v12027_v27 = vmov %v12024_v19  ;;  %vm6070_vm12 = vc.u32 %v6062_v22, %v6066_v52  ;;  %v12035_v26 = vld [vmem:[#allocation6_spill] sm:$0xff] }
 0x3a7   :  { %v11223_v36 = vmul.u32 %v12027_v27, %v12025_v18  ;;  %v6072_v39 = vadd.s32 %v6066_v52, %v6062_v22  ;;  %v5665_v5 = vmul.f32 %v5664_v58, %v5662_v8  ;;  %vm8364_vm8 = vcmp.lt.s32.totalorder %v8363_v33, 0  ;;  %v12036_v8 = vld [vmem:[#allocation13_spill] sm:$0xff] }
 0x3a8   :  { %v5948_v1 = vadd.s32 %v11143_v60, %v11131_v10  ;;  %v5963_v56 = vsel %vm8364_vm8, 0, %v8363_v33  ;;  %v5791_v16 = vadd.s32 %v5790_v11, %v5781_v12  ;;  %vm5794_vm11 = vc.u32 %v11212_v6, %v11218_v34 }
 0x3a9   :  { %v5666_v9 = vxor.u32 2147483648, %v5665_v5  ;;  %v5964_v50 = vsub.s32 32, %v5963_v56  ;;  %v5968_v4 = vsub.s32 4294967266, %v5963_v56  ;;  %v6068_v13 = vshll.u32 %v11223_v36, 16 }
 0x3aa   :  { %v12028_v51 = vand.u32 2147483647, %v12022_v63  ;;  %v5965_v54 = vshll.u32 %v5956_v40, %v5963_v56  ;;  %v5795_v53 = vadd.s32 1, %v5791_v16  ;;  %v6071_v10 = vsel %vm6070_vm12, 1, %v11690_v35 }
 0x3ab   :  { %v5667_v60 = vsel %vm5546_vm5, %v5666_v9, %v5665_v5  ;;  %v5966_v45 = vshrl.u32 %v5948_v1, %v5964_v50  ;;  %v5969_v61 = vadd.s32 127, %v5968_v4  ;;  %vm6074_vm14 = vc.u32 %v6072_v39, %v6068_v13 }
 0x3ac   :  { %vm11232_vm13 = vcmp.le.f32.partialorder %v12028_v51, 0.7853982  ;;  %v5796_v28 = vsel %vm5794_vm11, %v5795_v53, %v5791_v16  ;;  %v11247_v15 = vmul.u32 %v6082_v59, %v12025_v18  ;;  %v6088_v40 = vshll.u32 %v11216_v29, 16 }
 0x3ad   :  { %v11242_v30 = vsel %vm11232_vm13, %v12022_v63, %v5667_v60  ;;  %v5967_v14 = vor.u32 %v5966_v45, %v5965_v54  ;;  %v5970_v62 = vshll.u32 %v5969_v61, 23  ;;  %v12033_v23 = vmul.u32 %v12031_v41, %v12032_v32  ;;  %v12041_v54 = vld [vmem:[#allocation66_spill] sm:$0xff] }
 0x3ae   :  { %v11252_v49 = vmul.f32 %v11242_v30, %v11242_v30  ;;  %vm5856_vm9 = vcmp.lt.s32.totalorder %v12034_v47, 0  ;;  %v6087_v24 = vmul.u32 %v6083_v48, %v12025_v18  ;;  %v5668_v43 = vsub.s32 4, %v11133_v55 }
 0x3af   :  { %v5797_v44 = vadd.s32 %v5796_v28, %v12033_v23  ;;  %v6075_v0 = vsel %vm6074_vm14, 1, %v11690_v35  ;;  %v6084_v31 = vmul.u32 %v6082_v59, %v12004_v7  ;;  %v5971_v19 = vor.u32 4788187, %v5970_v62 }
 0x3b0   :  { %v5673_v20 = vmul.f32 -0.001358992, %v11252_v49  ;;  %v5680_v46 = vmul.f32 -0.00019511016, %v11252_v49  ;;  %v6073_v22 = vadd.s32 %v6071_v10, %v6065_v42  ;;  %v6090_v3 = vshll.u32 %v11247_v15, 16  ;;  %v12043_v10 = vld [vmem:[#allocation33_spill] sm:$0xff] }
 0x3b1   :  { %v5798_v52 = vadd.s32 536870912, %v5797_v44  ;;  %vm6092_vm15 = vc.u32 %v6084_v31, %v6088_v40  ;;  %v6094_v17 = vadd.s32 %v6088_v40, %v6084_v31  ;;  %v5972_v37 = vand.u32 2147483647, %v5971_v19  ;;  %v12047_v31 = vld [vmem:[#allocation30_spill] sm:$0xff]  ;;  %v12049_v19 = vld [vmem:[#allocation49_spill] sm:$0xff] }
 0x3b2   :  { %v5674_v48 = vadd.f32 0.041655596, %v5673_v20  ;;  %v5681_v18 = vadd.f32 0.008332121, %v5680_v46  ;;  %v5974_v25 = vcvt.s32.f32 %v5967_v14  ;;  %v11271_v38 = vsel %vm6042_vm10, %v12036_v8, %v12035_v26 }
 0x3b3   :  { %v11273_v59 = vshrl.u32 %v5798_v52, 30  ;;  %v6093_v7 = vsel %vm6092_vm15, 1, %v11690_v35  ;;  %vm6096_vm1 = vc.u32 %v6094_v17, %v6090_v3  ;;  %v6077_v12 = vadd.s32 %v6075_v0, %v6073_v22 }
 0x3b4   :  { %v5682_v42 = vmul.f32 %v5681_v18, %v11252_v49  ;;  %v5975_v33 = vmul.f32 %v5974_v25, %v5972_v37  ;;  %v6095_v11 = vadd.s32 %v6093_v7, %v6087_v24  ;;  %v5669_v27 = vsel %vm5546_vm5, %v5668_v43, %v11133_v55  ;;  %v12045_v43 = vld [vmem:[#allocation24_spill] sm:$0xff] }
 0x3b5   :  { %v5978_v39 = vsub.s32 4, %v11186_v57  ;;  %v5800_v5 = vshll.u32 %v11273_v59, 30  ;;  %v6097_v1 = vsel %vm6096_vm1, 1, %v11690_v35  ;;  %v5675_v56 = vmul.f32 %v5674_v48, %v11252_v49 }
 0x3b6   :  { %v5683_v16 = vadd.f32 -0.16666654, %v5682_v42  ;;  %v5976_v9 = vxor.u32 2147483648, %v5975_v33  ;;  %v6067_v50 = vshrl.u32 %v11129_v2, 16  ;;  %v12038_v4 = vand.u32 2147483647, %v12034_v47 }
 0x3b7   :  { %v11291_v51 = vsub.s32 %v5797_v44, %v5800_v5  ;;  %v6099_v55 = vadd.s32 %v6097_v1, %v6095_v11  ;;  %v12042_v53 = vmax.f32 %v12041_v54, 0.0  ;;  %v12044_v60 = vmax.f32 %v12043_v10, 0.0  ;;  %v12053_v11 = vld [vmem:[#allocation44_spill] sm:$0xff]  ;;  %v12054_v1 = vld [vmem:[#allocation61_spill] sm:$0xff] }
 0x3b8   :  { %vm11287_vm10 = vcmp.le.f32.partialorder %v12038_v4, 0.7853982  ;;  %v5671_v45 = vsel %vm11232_vm13, 0, %v5669_v27  ;;  %v5684_v2 = vmul.f32 %v5683_v16, %v11252_v49  ;;  %v5977_v61 = vsel %vm5856_vm9, %v5976_v9, %v5975_v33  ;;  %v12056_v16 = vld [vmem:[#allocation23_spill] sm:$0xff] }
 0x3b9   :  { %v11297_v35 = vpack.c.bf16 %v12044_v60, %v12042_v53  ;;  %v6078_v28 = vadd.s32 %v6077_v12, %v6067_v50  ;;  %v5980_v40 = vsel %vm11287_vm10, %v12034_v47, %v5977_v61  ;;  %vm5802_vm3 = vcmp.lt.s32.totalorder %v11291_v51, 0 }
 0x3ba   :  { %v5803_v14 = vsub.s32 0, %v11291_v51  ;;  %v6089_v62 = vshrl.u32 %v11216_v29, 16  ;;  %v5676_v41 = vadd.f32 -0.4999988, %v5675_v56  ;;  %v5979_v21 = vsel %vm5856_vm9, %v5978_v39, %v11186_v57  ;;  %v12051_v29 = vld [vmem:[#allocation57_spill] sm:$0xff] }
 0x3bb   :  { %v5982_v32 = vmul.f32 %v5980_v40, %v5980_v40  ;;  %v6069_v23 = vshrl.u32 %v11223_v36, 16  ;;  %v12046_v0 = vmax.f32 %v12045_v43, 0.0  ;;  %v12048_v20 = vmax.f32 %v12047_v31, 0.0 }
 0x3bc   :  { %v5804_v44 = vsel %vm5802_vm3, %v5803_v14, %v11291_v51  ;;  %v6100_v24 = vadd.s32 %v6099_v55, %v6089_v62  ;;  %v12050_v22 = vmax.f32 %v12049_v19, 0.0  ;;  %v12052_v52 = vmax.f32 %v12051_v29, 0.0 }
 0x3bd   :  { %v11319_v46 = vpack.c.bf16 %v12048_v20, %v12046_v0  ;;  %v5685_v18 = vadd.f32 1.0, %v5684_v2  ;;  %v5983_v57 = vmul.f32 -0.001358992, %v5982_v32  ;;  %v5990_v37 = vmul.f32 -0.00019511016, %v5982_v32 }
 0x3be   :  { %v11325_v48 = vpack.c.bf16 %v12052_v52, %v12050_v22  ;;  %v11327_v25 = vadd.s32 %v6078_v28, %v6069_v23  ;;  %v5688_v36 = vadd.s32 3, %v5671_v45  ;;  %v5981_v26 = vsel %vm11287_vm10, 0, %v5979_v21 }
 0x3bf   :  { %v5805_v8 = vclz %v5804_v44  ;;  %v6091_v58 = vshrl.u32 %v11247_v15, 16  ;;  %v5677_v7 = vmul.f32 %v5676_v41, %v11252_v49  ;;  %v5984_v42 = vadd.f32 0.041655596, %v5983_v57 }
 0x3c0   :  { %v5991_v33 = vadd.f32 0.008332121, %v5990_v37  ;;  %v11333_v12 = vadd.s32 %v6094_v17, %v6090_v3  ;;  %v6102_v27 = vmul.u32 %v12053_v11, %v11271_v38  ;;  %v12055_v56 = vmax.f32 %v12054_v1, 0.0 }
 0x3c1   :  { %v8360_v39 = vadd.s32 4294967294, %v5805_v8  ;;  %v6101_v5 = vadd.s32 %v6100_v24, %v6091_v58  ;;  %v12057_v9 = vmax.f32 %v12056_v16, 0.0  ;;  %v5686_v4 = vmul.f32 %v5685_v18, %v11242_v30 }
 0x3c2   :  { %v5985_v15 = vmul.f32 %v5984_v42, %v5982_v32  ;;  %v5992_v13 = vmul.f32 %v5991_v33, %v5982_v32  ;;  %vm6104_vm2 = vc.u32 %v11327_v25, %v11333_v12  ;;  %v5689_v49 = vand.u32 3, %v5688_v36 }
 0x3c3   :  { %v11341_v50 = vpack.c.bf16 %v12057_v9, %v12055_v56  ;;  %v5998_v3 = vadd.s32 3, %v5981_v26  ;;  %vm8361_vm4 = vcmp.lt.s32.totalorder %v8360_v39, 0  ;;  %v6105_v17 = vadd.s32 1, %v6101_v5 }
 0x3c4   :  { %v5678_v38 = vadd.f32 1.0, %v5677_v7  ;;  %v5986_v55 = vadd.f32 -0.4999988, %v5985_v15  ;;  %v5993_v54 = vadd.f32 -0.16666654, %v5992_v13  ;;  %v5808_v53 = vsel %vm8361_vm4, 0, %v8360_v39 }
 0x3c5   :  { %v5793_v10 = vadd.s32 %v11218_v34, %v11212_v6  ;;  %v5809_v60 = vsub.s32 32, %v5808_v53  ;;  %v5813_v45 = vsub.s32 4294967266, %v5808_v53  ;;  %v6106_v2 = vsel %vm6104_vm2, %v6105_v17, %v6101_v5  ;;  %v12058_v39 = vld [vmem:[#allocation68_spill] sm:$0xff] }
 0x3c6   :  { %v5692_v30 = vxor.u32 2147483648, %v5686_v4  ;;  %v5987_v61 = vmul.f32 %v5986_v55, %v5982_v32  ;;  %v5994_v28 = vmul.f32 %v5993_v54, %v5982_v32  ;;  %v6107_v14 = vadd.s32 %v6106_v2, %v6102_v27 }
 0x3c7   :  { %v5999_v62 = vand.u32 3, %v5998_v3  ;;  %v5810_v41 = vshll.u32 %v11291_v51, %v5808_v53  ;;  %v5811_v21 = vshrl.u32 %v5793_v10, %v5809_v60  ;;  %v5814_v23 = vadd.s32 127, %v5813_v45 }
 0x3c8   :  { %v5695_v44 = vxor.u32 2147483648, %v5678_v38  ;;  %v5988_v24 = vadd.f32 1.0, %v5987_v61  ;;  %v5995_v43 = vadd.f32 1.0, %v5994_v28  ;;  %v6108_v0 = vadd.s32 536870912, %v6107_v14 }
 0x3c9   :  { %vm5691_vm7 = vcmp.eq.s32.totalorder %v5689_v49, 0  ;;  %v5812_v31 = vor.u32 %v5811_v21, %v5810_v41  ;;  %v5815_v20 = vshll.u32 %v5814_v23, 23  ;;  %vm5690_vm5 = vcmp.lt.s32.totalorder %v5689_v49, 2  ;;  %v12062_v21 = vld [vmem:[#allocation64_spill] sm:$0xff] }
 0x3ca   :  { %v5693_v6 = vsel %vm5691_vm7, %v5678_v38, %v5692_v30  ;;  %v5996_v34 = vmul.f32 %v5995_v43, %v5980_v40  ;;  %v6005_v19 = vxor.u32 2147483648, %v5988_v24  ;;  %v11349_v22 = vshrl.u32 %v6108_v0, 30 }
 0x3cb   :  { %vm5694_vm12 = vcmp.eq.s32.totalorder %v5689_v49, 2  ;;  %v5816_v32 = vor.u32 4788187, %v5815_v20  ;;  %vm6001_vm8 = vcmp.eq.s32.totalorder %v5999_v62, 0  ;;  %vm6004_vm11 = vcmp.eq.s32.totalorder %v5999_v62, 2 }
 0x3cc   :  { %v5696_v29 = vsel %vm5694_vm12, %v5695_v44, %v5686_v4  ;;  %v6002_v51 = vxor.u32 2147483648, %v5996_v34  ;;  %v6110_v52 = vshll.u32 %v11349_v22, 30  ;;  %v5819_v37 = vcvt.s32.f32 %v5812_v31  ;;  %v8072_v20 = vld [vmem:[%s11410_s5] sm:$0x3] }
 0x3cd   :  { %v5697_v18 = vsel %vm5690_vm5, %v5693_v6, %v5696_v29  ;;  %v5817_v57 = vand.u32 2147483647, %v5816_v32  ;;  %vm6000_vm13 = vcmp.lt.s32.totalorder %v5999_v62, 2  ;;  %v6006_v26 = vsel %vm6004_vm11, %v6005_v19, %v5996_v34 }
 0x3ce   :  { %v6003_v36 = vsel %vm6001_vm8, %v5988_v24, %v6002_v51  ;;  %v6111_v8 = vsub.s32 %v6107_v14, %v6110_v52  ;;  %vm5687_vm14 = vweird.f32 %v12022_v63  ;;  %vm5997_vm9 = vweird.f32 %v12034_v47 }
 0x3cf   :  { %v6007_v40 = vsel %vm6000_vm13, %v6003_v36, %v6006_v26  ;;  %v5820_v58 = vmul.f32 %v5819_v37, %v5817_v57  ;;  %v5698_v7 = vsel %vm5687_vm14, nan, %v5697_v18  ;;  %vm5701_vm1 = vcmp.lt.s32.totalorder %v12058_v39, 0 }
 0x3d0   :  { %v6008_v42 = vsel %vm5997_vm9, nan, %v6007_v40  ;;  %vm6112_vm15 = vcmp.lt.s32.totalorder %v6111_v8, 0  ;;  %v6113_v33 = vsub.s32 0, %v6111_v8  ;;  %v12059_v1 = vand.u32 2147483647, %v12058_v39 }
 0x3d1   :  { %v8077_v11 = vpack.c.bf16 %v6008_v42, %v5698_v7  ;;  %v5821_v27 = vxor.u32 2147483648, %v5820_v58  ;;  %v6103_v49 = vadd.s32 %v11333_v12, %v11327_v25  ;;  %v5823_v25 = vsub.s32 4, %v11273_v59 }
 0x3d2   :  { %v6114_v5 = vsel %vm6112_vm15, %v6113_v33, %v6111_v8  ;;  %vm11357_vm10 = vcmp.le.f32.partialorder %v12059_v1, 0.7853982  ;;  %vm6011_vm2 = vcmp.lt.s32.totalorder %v12062_v21, 0  ;;  %v12063_v23 = vand.u32 2147483647, %v12062_v21 }
 0x3d3   :  { %8099 = vmatpush.bf16.msrb.mxu0 %v8077_v11  ;;  %v5822_v63 = vsel %vm5701_vm1, %v5821_v27, %v5820_v58  ;;  %v6115_v47 = vclz %v6114_v5  ;;  %v5824_v43 = vsel %vm5701_vm1, %v5823_v25, %v11273_v59  ;;  %v6133_v0 = vsub.s32 4, %v11349_v22 }
 0x3d4   :  { %v5825_v16 = vsel %vm11357_vm10, %v12058_v39, %v5822_v63  ;;  %vm11374_vm4 = vcmp.le.f32.partialorder %v12063_v23, 0.7853982  ;;  %v5826_v19 = vsel %vm11357_vm10, 0, %v5824_v43  ;;  %vm5842_vm14 = vweird.f32 %v12058_v39 }
 0x3d5   :  { %v5827_v9 = vmul.f32 %v5825_v16, %v5825_v16  ;;  %v8366_v4 = vadd.s32 4294967294, %v6115_v47  ;;  %v6134_v51 = vsel %vm6011_vm2, %v6133_v0, %v11349_v22  ;;  %v5843_v37 = vadd.s32 3, %v5826_v19 }
 0x3d6   :  { %v6136_v26 = vsel %vm11374_vm4, 0, %v6134_v51  ;;  %vm6152_vm9 = vweird.f32 %v12062_v21 }
 0x3d7   :  { %vm8367_vm3 = vcmp.lt.s32.totalorder %v8366_v4, 0  ;;  %8100 = vmatpush.bf16.msrb.mxu0 %v11297_v35  ;;  %v5835_v15 = vmul.f32 -0.00019511016, %v5827_v9  ;;  %v5828_v10 = vmul.f32 -0.001358992, %v5827_v9  ;;  %v5844_v33 = vand.u32 3, %v5843_v37 }
 0x3d8   :  { %v6118_v13 = vsel %vm8367_vm3, 0, %v8366_v4  ;;  %v6153_v11 = vadd.s32 3, %v6136_v26 }
 0x3d9   :  { %v6119_v3 = vsub.s32 32, %v6118_v13  ;;  %v6123_v17 = vsub.s32 4294967266, %v6118_v13  ;;  %v5836_v55 = vadd.f32 0.008332121, %v5835_v15  ;;  %v6120_v54 = vshll.u32 %v6111_v8, %v6118_v13 }
 0x3da   :  { %v5829_v61 = vadd.f32 0.041655596, %v5828_v10  ;;  %vm5846_vm7 = vcmp.eq.s32.totalorder %v5844_v33, 0  ;;  %v6154_v47 = vand.u32 3, %v6153_v11  ;;  %vm5849_vm5 = vcmp.eq.s32.totalorder %v5844_v33, 2 }
 0x3db   :  { %v6121_v38 = vshrl.u32 %v6103_v49, %v6119_v3  ;;  %8101 = vmatpush.bf16.msrb.mxu0 %v11325_v48  ;;  %v6124_v53 = vadd.s32 127, %v6123_v17  ;;  %v5837_v2 = vmul.f32 %v5836_v55, %v5827_v9  ;;  %vm5845_vm12 = vcmp.lt.s32.totalorder %v5844_v33, 2 }
 0x3dc   :  { %v5830_v12 = vmul.f32 %v5829_v61, %v5827_v9  ;;  %vm6156_vm8 = vcmp.eq.s32.totalorder %v6154_v47, 0  ;;  %vm6159_vm11 = vcmp.eq.s32.totalorder %v6154_v47, 2  ;;  %vm6155_vm13 = vcmp.lt.s32.totalorder %v6154_v47, 2 }
 0x3dd   :  { %v6122_v60 = vor.u32 %v6121_v38, %v6120_v54  ;;  %v6125_v45 = vshll.u32 %v6124_v53, 23  ;;  %v5838_v14 = vadd.f32 -0.16666654, %v5837_v2 }
 0x3de   :  { %v5831_v6 = vadd.f32 -0.4999988, %v5830_v12  ;;  %8404 = vmatmul.msk.bf16.vlgmr.msrb.gmra.mxu0 %vm4207_vm6, %v8072_v20 }
 0x3df   :  { %v6126_v30 = vor.u32 4788187, %v6125_v45  ;;  %v6129_v28 = vcvt.s32.f32 %v6122_v60  ;;  %v5839_v48 = vmul.f32 %v5838_v14, %v5827_v9  ;;  %v8089_v60 = vpop.permute.xlu0 %8088 }
 0x3e0   :  { %v5832_v52 = vmul.f32 %v5831_v6, %v5827_v9 }
 0x3e1   :  { %v6127_v35 = vand.u32 2147483647, %v6126_v30  ;;  %v5840_v32 = vadd.f32 1.0, %v5839_v48 }
 0x3e2   :  { %v5833_v58 = vadd.f32 1.0, %v5832_v52 }
 0x3e3   :  { %v6130_v62 = vmul.f32 %v6129_v28, %v6127_v35  ;;  %v5841_v36 = vmul.f32 %v5840_v32, %v5825_v16 }
 0x3e4   :  { %v5850_v56 = vxor.u32 2147483648, %v5833_v58 }
 0x3e5   :  { %v6131_v41 = vxor.u32 2147483648, %v6130_v62  ;;  %v5847_v27 = vxor.u32 2147483648, %v5841_v36 }
 0x3e6   :  { %v5851_v15 = vsel %vm5849_vm5, %v5850_v56, %v5841_v36  ;;  %vm8182_vm5 = vcmask 1041408  }
 0x3e7   :  { %v6132_v24 = vsel %vm6011_vm2, %v6131_v41, %v6130_v62  ;;  %v5848_v9 = vsel %vm5846_vm7, %v5833_v58, %v5847_v27 }
 0x3e8   :  { %v6135_v31 = vsel %vm11374_vm4, %v12062_v21, %v6132_v24  ;;  %v5852_v49 = vsel %vm5845_vm12, %v5848_v9, %v5851_v15  ;;  %vm8190_vm12 = vcmask 1043456  }
 0x3e9   :  { %v6137_v34 = vmul.f32 %v6135_v31, %v6135_v31  ;;  %v5853_v55 = vsel %vm5842_vm14, nan, %v5852_v49 }
 0x3eb   :  { %v6138_v29 = vmul.f32 -0.001358992, %v6137_v34  ;;  %v6145_v59 = vmul.f32 -0.00019511016, %v6137_v34 }
 0x3ed   :  { %v6139_v18 = vadd.f32 0.041655596, %v6138_v29  ;;  %v6146_v57 = vadd.f32 0.008332121, %v6145_v59 }
 0x3ef   :  { %v6140_v8 = vmul.f32 %v6139_v18, %v6137_v34  ;;  %v6147_v40 = vmul.f32 %v6146_v57, %v6137_v34 }
 0x3f1   :  { %v6141_v7 = vadd.f32 -0.4999988, %v6140_v8  ;;  %v6148_v42 = vadd.f32 -0.16666654, %v6147_v40 }
 0x3f3   :  { %v6142_v5 = vmul.f32 %v6141_v7, %v6137_v34  ;;  %v6149_v1 = vmul.f32 %v6148_v42, %v6137_v34 }
 0x3f5   :  { %v6143_v22 = vadd.f32 1.0, %v6142_v5  ;;  %v6150_v63 = vadd.f32 1.0, %v6149_v1 }
 0x3f7   :  { %v6151_v16 = vmul.f32 %v6150_v63, %v6135_v31  ;;  %v6160_v4 = vxor.u32 2147483648, %v6143_v22 }
 0x3f9   :  { %v6157_v13 = vxor.u32 2147483648, %v6151_v16  ;;  %v6161_v17 = vsel %vm6159_vm11, %v6160_v4, %v6151_v16 }
 0x3fb   :  { %v6158_v3 = vsel %vm6156_vm8, %v6143_v22, %v6157_v13 }
 0x3fc   :  { %v6162_v38 = vsel %vm6155_vm13, %v6158_v3, %v6161_v17 }
 0x3fd   :  { %v6163_v54 = vsel %vm6152_vm9, nan, %v6162_v38 }
 0x3fe   :  { %v8078_v53 = vpack.c.bf16 %v6163_v54, %v5853_v55 }
 0x400   :  { %8112 = vmatpush.bf16.msrb.mxu1 %v8078_v53 }
 0x404   :  { %8113 = vmatpush.bf16.msrb.mxu1 %v11319_v46 }
 0x408   :  { %8114 = vmatpush.bf16.msrb.mxu1 %v11341_v50 }
 0x40b   :  { %8405 = vmatmul.msk.bf16.vlgmr.msrb.gmra.mxu1 %vm4207_vm6, %v8072_v20 }
 0x45b   :  { %v8103_v10 = vpop.f32.mrf.mxu0 }
 0x45c   :  { %v8104_v45 = vadd.f32 %v8103_v10, %v8089_v60 }
 0x45e   :  { %v8406_v30 = vmul.f32 -1.442695, %v8104_v45  ;;  %v8168_v59 = vrot.slane %v8104_v45, 7  ;;  %v8160_v18 = vrot.slane %v8104_v45, 6 }
 0x460   :  { %8424 = vpow2.f32 %v8406_v30 }
 0x463   :  { %v8105_v2 = vpop.f32.mrf.mxu0 }
 0x466   :  { %v8425_v39 = vpop.eup %8424 }
 0x467   :  { %v8126_v61 = vadd.f32 1.0, %v8425_v39 }
 0x469   :  { %8426 = vrcp.f32 %v8126_v61  ;;  %v8139_v23 = vand.u32 2147483648, %v8126_v61  ;;  %vm8133_vm15 = vweird.f32 %v8126_v61  ;;  %v8137_v44 = vand.u32 2147483647, %v8126_v61 }
 0x46b   :  { %v8140_v0 = vor.u32 1.1754944e-38, %v8139_v23  ;;  %vm8138_vm10 = vcmp.eq.f32.partialorder %v8137_v44, 8.507059e+37 }
 0x46f   :  { %v8427_v35 = vpop.eup %8426 }
 0x470   :  { %v8129_v62 = vmul.f32 %v8427_v35, %v8126_v61  ;;  %vm8134_vm6 = vweird.f32 %v8427_v35 }
 0x471   :  { %vm8135_vm1 = vmor %vm8133_vm15, %vm8134_vm6 }
 0x472   :  { %v8130_v46 = vsub.f32 1.0, %v8129_v62 }
 0x474   :  { %v8131_v41 = vmul.f32 %v8427_v35, %v8130_v46 }
 0x476   :  { %v8132_v48 = vadd.f32 %v8427_v35, %v8131_v41 }
 0x478   :  { %v8136_v24 = vsel %vm8135_vm1, %v8427_v35, %v8132_v48 }
 0x479   :  { %v8141_v20 = vsel %vm8138_vm10, %v8140_v0, %v8136_v24 }
 0x47a   :  { %v8166_v19 = vsub.f32 1.0, %v8141_v20  ;;  %v8164_v26 = vmul.f32 %v8160_v18, %v8141_v20  ;;  %v8183_v22 = vsel %vm8182_vm5, %v8104_v45, %v8141_v20 }
 0x47c   :  { %v8172_v57 = vmul.f32 %v8168_v59, %v8166_v19 }
 0x47e   :  { %v8174_v7 = vadd.f32 %v8172_v57, %v8164_v26 }
 0x480   :  { %v8178_v27 = vrot.slane %v8174_v7, 7 }
 0x482   :  { %v8185_v47 = vsel %vm153_vm0, %v8183_v22, %v8178_v27 }
 0x488   :  { %v8116_v28 = vpop.f32.mrf.mxu1 }
 0x489   :  { %v8117_v14 = vadd.f32 %v8116_v28, %v8089_v60 }
 0x48b   :  { %v8407_v25 = vmul.f32 -1.442695, %v8117_v14  ;;  %v8161_v8 = vrot.slane %v8117_v14, 6  ;;  %v8169_v58 = vrot.slane %v8117_v14, 7 }
 0x48d   :  { %8428 = vpow2.f32 %v8407_v25 }
 0x490   :  { %v8118_v12 = vpop.f32.mrf.mxu1 }
 0x493   :  { %v8429_v50 = vpop.eup %8428 }
 0x494   :  { %v8127_v21 = vadd.f32 1.0, %v8429_v50 }
 0x496   :  { %8430 = vrcp.f32 %v8127_v21  ;;  %v8154_v34 = vand.u32 2147483648, %v8127_v21  ;;  %v8152_v29 = vand.u32 2147483647, %v8127_v21  ;;  %vm8148_vm2 = vweird.f32 %v8127_v21 }
 0x498   :  { %v8155_v52 = vor.u32 1.1754944e-38, %v8154_v34  ;;  %vm8153_vm7 = vcmp.eq.f32.partialorder %v8152_v29, 8.507059e+37 }
 0x49c   :  { %v8431_v43 = vpop.eup %8430 }
 0x49d   :  { %v8144_v31 = vmul.f32 %v8431_v43, %v8127_v21  ;;  %vm8149_vm3 = vweird.f32 %v8431_v43 }
 0x49e   :  { %vm8150_vm4 = vmor %vm8148_vm2, %vm8149_vm3 }
 0x49f   :  { %v8145_v6 = vsub.f32 1.0, %v8144_v31 }
 0x4a1   :  { %v8146_v32 = vmul.f32 %v8431_v43, %v8145_v6 }
 0x4a3   :  { %v8147_v51 = vadd.f32 %v8431_v43, %v8146_v32 }
 0x4a5   :  { %v8151_v37 = vsel %vm8150_vm4, %v8431_v43, %v8147_v51 }
 0x4a6   :  { %v8156_v36 = vsel %vm8153_vm7, %v8155_v52, %v8151_v37 }
 0x4a7   :  { %v8167_v40 = vsub.f32 1.0, %v8156_v36  ;;  %v8165_v42 = vmul.f32 %v8161_v8, %v8156_v36  ;;  %v8184_v1 = vsel %vm8182_vm5, %v8117_v14, %v8156_v36 }
 0x4a9   :  { %v8173_v33 = vmul.f32 %v8169_v58, %v8167_v40 }
 0x4ab   :  { %v8175_v11 = vadd.f32 %v8173_v33, %v8165_v42 }
 0x4ad   :  { %v8179_v5 = vrot.slane %v8175_v11, 7 }
 0x4af   :  { %v8186_v56 = vsel %vm153_vm0, %v8184_v1, %v8179_v5 }
 0x4b0   :  { %v8189_v63 = vrot.slane %v8186_v56, 4 }
 0x4b2   :  { %v8191_v9 = vsel %vm8190_vm12, %v8185_v47, %v8189_v63 }
 0x4b3   :  { %8193 = vst [vmem:[%s11411_s7] sm:$0xff] %v8191_v9 }

</bundles_post_ra>
